<compile_context>
chip_gen: v6e
topology: v6e:2x2x1
jax: 0.10.0
libtpu: 0.0.40
codegen_flags: <defaults>
</compile_context>

<pallas_src>
import jax
import jax.numpy as jnp
from jax.experimental import pallas as pl
from jax.experimental.pallas import tpu as pltpu


def _accum(terms):
    acc = terms[0]
    for t in terms[1:]:
        acc = acc + t
    return acc


def _beam_kernel(x_ref, w1_ref, b1_ref, w2_ref, b2_ref,
                 fw1_ref, fb1_ref, fw2_ref, fb2_ref,
                 o_ref, pe_s, po_s):
    B = o_ref.shape[0]
    M7 = 7 * B
    f32 = jnp.float32
    bf16 = jnp.bfloat16

    # ---- conv1 (im2col, K=84) + ReLU + MaxPool(2), fused --------------------
    # x_ref holds 4 sections of 7*B rows (position-major per sample block):
    #   section p, row j*B + s  ==  im2col row of conv1 output position 4j+p of
    #   sample s (84 lanes = 3 taps * 28 in-channels side by side).
    # Pooled outputs:
    #   p_{2j}   = relu(max(c[4j],   c[4j+1]) + b1)   -> pe_s block j
    #   p_{2j+1} = relu(max(c[4j+2], c[4j+3]) + b1)   -> po_s block j
    w1 = w1_ref[...]
    b1 = b1_ref[...]
    ya = jnp.dot(x_ref[pl.ds(0 * M7, M7), :], w1, preferred_element_type=f32)
    yb = jnp.dot(x_ref[pl.ds(1 * M7, M7), :], w1, preferred_element_type=f32)
    pe_s[...] = jnp.maximum(jnp.maximum(ya, yb) + b1, 0.0).astype(bf16)
    yc = jnp.dot(x_ref[pl.ds(2 * M7, M7), :], w1, preferred_element_type=f32)
    yd = jnp.dot(x_ref[pl.ds(3 * M7, M7), :], w1, preferred_element_type=f32)
    po_s[...] = jnp.maximum(jnp.maximum(yc, yd) + b1, 0.0).astype(bf16)

    # ---- conv2 + ReLU + MaxPool(2) + fc1, fused per output position u -------
    # conv2's pad=2 zero rows are handled by statically dropping the boundary
    # terms (u==0 / u==7), so no zero blocks, no masking, no strided access.
    w2_0 = w2_ref[0]
    w2_1 = w2_ref[1]
    w2_2 = w2_ref[2]
    b2 = b2_ref[...]
    z1 = None
    for u in range(8):
        te, to = [], []
        if u >= 1:
            pe0 = pe_s[pl.ds((u - 1) * B, B), :]
            po0 = po_s[pl.ds((u - 1) * B, B), :]
            te.append(jnp.dot(pe0, w2_0, preferred_element_type=f32))
            te.append(jnp.dot(po0, w2_1, preferred_element_type=f32))
            to.append(jnp.dot(po0, w2_0, preferred_element_type=f32))
        if u <= 6:
            pe1 = pe_s[pl.ds(u * B, B), :]
            po1 = po_s[pl.ds(u * B, B), :]
            te.append(jnp.dot(pe1, w2_2, preferred_element_type=f32))
            to.append(jnp.dot(pe1, w2_1, preferred_element_type=f32))
            to.append(jnp.dot(po1, w2_2, preferred_element_type=f32))
        q = jnp.maximum(jnp.maximum(_accum(te), _accum(to)) + b2, 0.0).astype(bf16)
        zc = jnp.dot(q, fw1_ref[pl.ds(u * 64, 64), :], preferred_element_type=f32)
        z1 = zc if z1 is None else z1 + zc

    # ---- fc1 bias + ReLU, fc2 (lane-dense 128-wide output) ------------------
    z1 = jnp.maximum(z1 + fb1_ref[...], 0.0).astype(bf16)
    o_ref[...] = jnp.dot(z1, fw2_ref[...], preferred_element_type=f32) + fb2_ref[...]


def beam_search_net_forward(x_ncl, params, block_b=256):
    """x_ncl: (N, 28, 26) float32, PyTorch NCL convention. Returns (N, 4)."""
    N, C, L = x_ncl.shape
    assert (C, L) == (28, 26), "Beam_search_Net implies input (N, 28, 26)"
    B = block_b
    assert B % 16 == 0, "block_b must be a multiple of 16 (bf16 sublane tiling)"
    n_blocks = -(-N // B)
    n_pad = n_blocks * B

    # ---- plain-JAX layout plumbing: bf16 im2col, phase-split, position-major --
    x = jnp.pad(x_ncl.astype(jnp.bfloat16), ((0, n_pad - N), (0, 0), (0, 0)))
    x = jnp.transpose(x, (0, 2, 1))                 # (n_pad, 26, 28)  (L, C)
    xp = jnp.pad(x, ((0, 0), (2, 2), (0, 0)))       # (n_pad, 30, 28)  conv1 pad=2
    # conv1 output position i (0..27) uses taps xp[i], xp[i+1], xp[i+2]:
    im = jnp.concatenate([xp[:, 0:28, :], xp[:, 1:29, :], xp[:, 2:30, :]], axis=-1)
    # split rows by pooling phase (i mod 4), position-major within each B-sample
    # block: per grid block the kernel sees 4 sections of (7*B, 84).
    im = im.reshape(n_blocks, B, 7, 4, 84)
    im = jnp.transpose(im, (0, 3, 2, 1, 4))         # (n_blocks, 4, 7, B, 84)
    x_flat = im.reshape(n_blocks * 28 * B, 84)

    # ---- weights: bf16 once, matmul-friendly layouts --------------------------
    w1k = jnp.transpose(params["conv1_w"], (2, 1, 0)).reshape(84, 32).astype(jnp.bfloat16)
    b1 = params["conv1_b"].reshape(1, 32).astype(jnp.float32)
    w2k = jnp.transpose(params["conv2_w"], (2, 1, 0)).astype(jnp.bfloat16)   # (3,32,64)
    b2 = params["conv2_b"].reshape(1, 64).astype(jnp.float32)
    # fc1 weight K axis permuted from PyTorch's (c*8 + u) flatten to the kernel's
    # position-major (u*64 + c) order, so fc1 is 8 accumulated (B,64)@(64,256) GEMMs.
    fw1 = (params["fc1_w"].reshape(256, 64, 8).transpose(2, 1, 0)
           .reshape(512, 256).astype(jnp.bfloat16))
    fb1 = params["fc1_b"].reshape(1, 256).astype(jnp.float32)
    # fc2 weight / bias zero-padded to 128 output lanes for a lane-dense store.
    fw2 = jnp.zeros((256, 128), jnp.float32).at[:, :4].set(params["fc2_w"].T)
    fw2 = fw2.astype(jnp.bfloat16)
    fb2 = jnp.zeros((1, 128), jnp.float32).at[0, :4].set(params["fc2_b"])

    grid_spec = pltpu.PrefetchScalarGridSpec(
        num_scalar_prefetch=0,
        grid=(n_blocks,),
        in_specs=[
            pl.BlockSpec((28 * B, 84), lambda n: (n, 0)),    # bf16 im2col input
            pl.BlockSpec((84, 32), lambda n: (0, 0)),        # conv1 weight (taps stacked)
            pl.BlockSpec((1, 32), lambda n: (0, 0)),         # conv1 bias
            pl.BlockSpec((3, 32, 64), lambda n: (0, 0, 0)),  # conv2 weight
            pl.BlockSpec((1, 64), lambda n: (0, 0)),         # conv2 bias
            pl.BlockSpec((512, 256), lambda n: (0, 0)),      # fc1 weight (K-permuted)
            pl.BlockSpec((1, 256), lambda n: (0, 0)),        # fc1 bias
            pl.BlockSpec((256, 128), lambda n: (0, 0)),      # fc2 weight (lane-padded)
            pl.BlockSpec((1, 128), lambda n: (0, 0)),        # fc2 bias (lane-padded)
        ],
        out_specs=pl.BlockSpec((B, 128), lambda n: (n, 0)),
        scratch_shapes=[
            pltpu.VMEM((7 * B, 32), jnp.bfloat16),   # pooled conv1, even positions
            pltpu.VMEM((7 * B, 32), jnp.bfloat16),   # pooled conv1, odd positions
        ],
    )

    out = pl.pallas_call(
        _beam_kernel,
        out_shape=jax.ShapeDtypeStruct((n_pad, 128), jnp.float32),
        grid_spec=grid_spec,
        compiler_params=pltpu.CompilerParams(
            dimension_semantics=("parallel",),
            # Default scoped VMEM (16/32 MiB) is ample up to block_b ~= 512 even
            # with 128-lane padding; raise it for bigger blocks (stay under v7x's
            # 64 MiB/TC physical VMEM).
            vmem_limit_bytes=(60 * 1024 * 1024 if B > 256 else None),
        ),
    )(x_flat, w1k, b1, w2k, b2, fw1, fb1, fw2, fb2)
    return out[:N, :4]


def init_params(key):
    """Deterministic synthetic parameters in PyTorch-convention shapes."""
    ks = jax.random.split(key, 8)
    return {
        "conv1_w": 0.10 * jax.random.normal(ks[0], (32, 28, 3), jnp.float32),
        "conv1_b": 0.10 * jax.random.normal(ks[1], (32,), jnp.float32),
        "conv2_w": 0.10 * jax.random.normal(ks[2], (64, 32, 3), jnp.float32),
        "conv2_b": 0.10 * jax.random.normal(ks[3], (64,), jnp.float32),
        "fc1_w": 0.05 * jax.random.normal(ks[4], (256, 512), jnp.float32),
        "fc1_b": 0.05 * jax.random.normal(ks[5], (256,), jnp.float32),
        "fc2_w": 0.05 * jax.random.normal(ks[6], (4, 256), jnp.float32),
        "fc2_b": 0.05 * jax.random.normal(ks[7], (4,), jnp.float32),
    }


def ref_forward(x, p):
    """Pure-JAX reference replicating the PyTorch forward (NCL layout, f32)."""
    dn = ("NCH", "OIH", "NCH")
    y1 = jax.lax.conv_general_dilated(x, p["conv1_w"], (1,), ((2, 2),),
                                      dimension_numbers=dn)
    y1 = jnp.maximum(y1 + p["conv1_b"][None, :, None], 0.0)
    y1 = jax.lax.reduce_window(y1, -jnp.inf, jax.lax.max,
                               (1, 1, 2), (1, 1, 2), "VALID")
    y2 = jax.lax.conv_general_dilated(y1, p["conv2_w"], (1,), ((2, 2),),
                                      dimension_numbers=dn)
    y2 = jnp.maximum(y2 + p["conv2_b"][None, :, None], 0.0)
    y2 = jax.lax.reduce_window(y2, -jnp.inf, jax.lax.max,
                               (1, 1, 2), (1, 1, 2), "VALID")
    flat = y2.reshape(x.shape[0], -1)                        # (N, 512)
    z1 = flat @ p["fc1_w"].T + p["fc1_b"]
    z2 = jnp.maximum(z1, 0.0) @ p["fc2_w"].T + p["fc2_b"]
    return z2


if __name__ == "__main__":
    key = jax.random.PRNGKey(0)
    kx, kp = jax.random.split(key)
    N = 100
    x = jax.random.normal(kx, (N, 28, 26), jnp.float32)      # (N, C=28, L=26)
    params = init_params(kp)

    # block_b=64 -> 2 grid blocks at N=100 (exercises multi-block + parallel axis).
    out = beam_search_net_forward(x, params, block_b=64)
    out = jax.block_until_ready(out)
    assert out.shape == (N, 4)

    ref = ref_forward(x, params)
    # bf16 matmul operands (f32 accumulation) -> slightly loose tolerance vs f32 ref.
    if not jnp.allclose(out, ref, atol=5e-2, rtol=5e-2):
        raise AssertionError(
            f"kernel/reference mismatch: max abs err = {jnp.max(jnp.abs(out - ref))}")

    print("KERNEL_OK")
</pallas_src>

<mosaic_0001>
module attributes {stable_mosaic.version = 11 : i64} {
  func.func @_beam_kernel(%arg0: i32, %arg1: memref<1792x84xbf16, #tpu.memory_space<vmem>>, %arg2: memref<84x32xbf16, #tpu.memory_space<vmem>>, %arg3: memref<1x32xf32, #tpu.memory_space<vmem>>, %arg4: memref<3x32x64xbf16, #tpu.memory_space<vmem>>, %arg5: memref<1x64xf32, #tpu.memory_space<vmem>>, %arg6: memref<512x256xbf16, #tpu.memory_space<vmem>>, %arg7: memref<1x256xf32, #tpu.memory_space<vmem>>, %arg8: memref<256x128xbf16, #tpu.memory_space<vmem>>, %arg9: memref<1x128xf32, #tpu.memory_space<vmem>>, %arg10: memref<64x128xf32, #tpu.memory_space<vmem>>, %arg11: memref<448x32xbf16, #tpu.memory_space<vmem>>, %arg12: memref<448x32xbf16, #tpu.memory_space<vmem>>) attributes {dimension_semantics = [#tpu.dimension_semantics<parallel>], iteration_bounds = array<i64: 2>, scalar_prefetch = 0 : i64, scratch_operands = 2 : i64, tpu.core_type = #tpu.core_type<tc>, window_params = [{transform_indices = @transform_0, window_bounds = array<i64: 1792, 84>}, {pipeline_mode = #tpu.pipeline_mode<synchronous>, transform_indices = @transform_1, window_bounds = array<i64: 84, 32>}, {pipeline_mode = #tpu.pipeline_mode<synchronous>, transform_indices = @transform_2, window_bounds = array<i64: 1, 32>}, {pipeline_mode = #tpu.pipeline_mode<synchronous>, transform_indices = @transform_3, window_bounds = array<i64: 3, 32, 64>}, {pipeline_mode = #tpu.pipeline_mode<synchronous>, transform_indices = @transform_4, window_bounds = array<i64: 1, 64>}, {pipeline_mode = #tpu.pipeline_mode<synchronous>, transform_indices = @transform_5, window_bounds = array<i64: 512, 256>}, {pipeline_mode = #tpu.pipeline_mode<synchronous>, transform_indices = @transform_6, window_bounds = array<i64: 1, 256>}, {pipeline_mode = #tpu.pipeline_mode<synchronous>, transform_indices = @transform_7, window_bounds = array<i64: 256, 128>}, {pipeline_mode = #tpu.pipeline_mode<synchronous>, transform_indices = @transform_8, window_bounds = array<i64: 1, 128>}, {transform_indices = @transform_9, window_bounds = array<i64: 64, 128>}]} {
    %c0 = arith.constant 0 : index
    %c0_0 = arith.constant 0 : index
    %0 = vector.load %arg2[%c0, %c0_0] : memref<84x32xbf16, #tpu.memory_space<vmem>>, vector<84x32xbf16>
    %c0_1 = arith.constant 0 : index
    %c0_2 = arith.constant 0 : index
    %1 = vector.load %arg3[%c0_1, %c0_2] : memref<1x32xf32, #tpu.memory_space<vmem>>, vector<1x32xf32>
    %c0_3 = arith.constant 0 : index
    %c0_4 = arith.constant 0 : index
    %2 = vector.load %arg1[%c0_3, %c0_4] : memref<1792x84xbf16, #tpu.memory_space<vmem>>, vector<448x84xbf16>
    %cst = arith.constant dense<0.000000e+00> : vector<448x32xf32>
    %3 = tpu.matmul %2, %0, %cst {dimension_numbers = #tpu.dot_dimension_numbers<[1], [0], [0], [1], [0, 0, 1, 1], [], []>} : vector<448x84xbf16>, vector<84x32xbf16>, vector<448x32xf32> -> vector<448x32xf32>
    %c448 = arith.constant 448 : index
    %c0_5 = arith.constant 0 : index
    %4 = vector.load %arg1[%c448, %c0_5] : memref<1792x84xbf16, #tpu.memory_space<vmem>>, vector<448x84xbf16>
    %cst_6 = arith.constant dense<0.000000e+00> : vector<448x32xf32>
    %5 = tpu.matmul %4, %0, %cst_6 {dimension_numbers = #tpu.dot_dimension_numbers<[1], [0], [0], [1], [0, 0, 1, 1], [], []>} : vector<448x84xbf16>, vector<84x32xbf16>, vector<448x32xf32> -> vector<448x32xf32>
    %6 = arith.maximumf %3, %5 : vector<448x32xf32>
    %7 = vector.broadcast %1 : vector<1x32xf32> to vector<448x32xf32>
    %8 = arith.addf %6, %7 : vector<448x32xf32>
    %cst_7 = arith.constant 0.000000e+00 : f32
    %9 = vector.broadcast %cst_7 : f32 to vector<448x32xf32>
    %10 = arith.maximumf %8, %9 : vector<448x32xf32>
    %11 = arith.truncf %10 : vector<448x32xf32> to vector<448x32xbf16>
    %c0_8 = arith.constant 0 : index
    %c0_9 = arith.constant 0 : index
    %12 = vector.load %arg11[%c0_8, %c0_9] : memref<448x32xbf16, #tpu.memory_space<vmem>>, vector<448x32xbf16>
    tpu.vector_store %arg11[%c0_8, %c0_9], %11 {strides = array<i32>} : memref<448x32xbf16, #tpu.memory_space<vmem>>, vector<448x32xbf16>,
    %c896 = arith.constant 896 : index
    %c0_10 = arith.constant 0 : index
    %13 = vector.load %arg1[%c896, %c0_10] : memref<1792x84xbf16, #tpu.memory_space<vmem>>, vector<448x84xbf16>
    %cst_11 = arith.constant dense<0.000000e+00> : vector<448x32xf32>
    %14 = tpu.matmul %13, %0, %cst_11 {dimension_numbers = #tpu.dot_dimension_numbers<[1], [0], [0], [1], [0, 0, 1, 1], [], []>} : vector<448x84xbf16>, vector<84x32xbf16>, vector<448x32xf32> -> vector<448x32xf32>
    %c1344 = arith.constant 1344 : index
    %c0_12 = arith.constant 0 : index
    %15 = vector.load %arg1[%c1344, %c0_12] : memref<1792x84xbf16, #tpu.memory_space<vmem>>, vector<448x84xbf16>
    %cst_13 = arith.constant dense<0.000000e+00> : vector<448x32xf32>
    %16 = tpu.matmul %15, %0, %cst_13 {dimension_numbers = #tpu.dot_dimension_numbers<[1], [0], [0], [1], [0, 0, 1, 1], [], []>} : vector<448x84xbf16>, vector<84x32xbf16>, vector<448x32xf32> -> vector<448x32xf32>
    %17 = arith.maximumf %14, %16 : vector<448x32xf32>
    %18 = vector.broadcast %1 : vector<1x32xf32> to vector<448x32xf32>
    %19 = arith.addf %17, %18 : vector<448x32xf32>
    %cst_14 = arith.constant 0.000000e+00 : f32
    %20 = vector.broadcast %cst_14 : f32 to vector<448x32xf32>
    %21 = arith.maximumf %19, %20 : vector<448x32xf32>
    %22 = arith.truncf %21 : vector<448x32xf32> to vector<448x32xbf16>
    %c0_15 = arith.constant 0 : index
    %c0_16 = arith.constant 0 : index
    %23 = vector.load %arg12[%c0_15, %c0_16] : memref<448x32xbf16, #tpu.memory_space<vmem>>, vector<448x32xbf16>
    tpu.vector_store %arg12[%c0_15, %c0_16], %22 {strides = array<i32>} : memref<448x32xbf16, #tpu.memory_space<vmem>>, vector<448x32xbf16>,
    %c0_17 = arith.constant 0 : index
    %c0_18 = arith.constant 0 : index
    %c0_19 = arith.constant 0 : index
    %24 = vector.load %arg4[%c0_17, %c0_18, %c0_19] : memref<3x32x64xbf16, #tpu.memory_space<vmem>>, vector<1x32x64xbf16>
    %25 = vector.shape_cast %24 : vector<1x32x64xbf16> to vector<32x64xbf16>
    %c1 = arith.constant 1 : index
    %c0_20 = arith.constant 0 : index
    %c0_21 = arith.constant 0 : index
    %26 = vector.load %arg4[%c1, %c0_20, %c0_21] : memref<3x32x64xbf16, #tpu.memory_space<vmem>>, vector<1x32x64xbf16>
    %27 = vector.shape_cast %26 : vector<1x32x64xbf16> to vector<32x64xbf16>
    %c2 = arith.constant 2 : index
    %c0_22 = arith.constant 0 : index
    %c0_23 = arith.constant 0 : index
    %28 = vector.load %arg4[%c2, %c0_22, %c0_23] : memref<3x32x64xbf16, #tpu.memory_space<vmem>>, vector<1x32x64xbf16>
    %29 = vector.shape_cast %28 : vector<1x32x64xbf16> to vector<32x64xbf16>
    %c0_24 = arith.constant 0 : index
    %c0_25 = arith.constant 0 : index
    %30 = vector.load %arg5[%c0_24, %c0_25] : memref<1x64xf32, #tpu.memory_space<vmem>>, vector<1x64xf32>
    %c0_26 = arith.constant 0 : index
    %c0_27 = arith.constant 0 : index
    %31 = vector.load %arg11[%c0_26, %c0_27] : memref<448x32xbf16, #tpu.memory_space<vmem>>, vector<64x32xbf16>
    %c0_28 = arith.constant 0 : index
    %c0_29 = arith.constant 0 : index
    %32 = vector.load %arg12[%c0_28, %c0_29] : memref<448x32xbf16, #tpu.memory_space<vmem>>, vector<64x32xbf16>
    %cst_30 = arith.constant dense<0.000000e+00> : vector<64x64xf32>
    %33 = tpu.matmul %31, %29, %cst_30 {dimension_numbers = #tpu.dot_dimension_numbers<[1], [0], [0], [1], [0, 0, 1, 1], [], []>} : vector<64x32xbf16>, vector<32x64xbf16>, vector<64x64xf32> -> vector<64x64xf32>
    %cst_31 = arith.constant dense<0.000000e+00> : vector<64x64xf32>
    %34 = tpu.matmul %31, %27, %cst_31 {dimension_numbers = #tpu.dot_dimension_numbers<[1], [0], [0], [1], [0, 0, 1, 1], [], []>} : vector<64x32xbf16>, vector<32x64xbf16>, vector<64x64xf32> -> vector<64x64xf32>
    %cst_32 = arith.constant dense<0.000000e+00> : vector<64x64xf32>
    %35 = tpu.matmul %32, %29, %cst_32 {dimension_numbers = #tpu.dot_dimension_numbers<[1], [0], [0], [1], [0, 0, 1, 1], [], []>} : vector<64x32xbf16>, vector<32x64xbf16>, vector<64x64xf32> -> vector<64x64xf32>
    %36 = arith.addf %34, %35 : vector<64x64xf32>
    %37 = arith.maximumf %33, %36 : vector<64x64xf32>
    %38 = vector.broadcast %30 : vector<1x64xf32> to vector<64x64xf32>
    %39 = arith.addf %37, %38 : vector<64x64xf32>
    %cst_33 = arith.constant 0.000000e+00 : f32
    %40 = vector.broadcast %cst_33 : f32 to vector<64x64xf32>
    %41 = arith.maximumf %39, %40 : vector<64x64xf32>
    %42 = arith.truncf %41 : vector<64x64xf32> to vector<64x64xbf16>
    %c0_34 = arith.constant 0 : index
    %c0_35 = arith.constant 0 : index
    %43 = vector.load %arg6[%c0_34, %c0_35] : memref<512x256xbf16, #tpu.memory_space<vmem>>, vector<64x256xbf16>
    %cst_36 = arith.constant dense<0.000000e+00> : vector<64x256xf32>
    %44 = tpu.matmul %42, %43, %cst_36 {dimension_numbers = #tpu.dot_dimension_numbers<[1], [0], [0], [1], [0, 0, 1, 1], [], []>} : vector<64x64xbf16>, vector<64x256xbf16>, vector<64x256xf32> -> vector<64x256xf32>
    %c0_37 = arith.constant 0 : index
    %c0_38 = arith.constant 0 : index
    %45 = vector.load %arg11[%c0_37, %c0_38] : memref<448x32xbf16, #tpu.memory_space<vmem>>, vector<64x32xbf16>
    %c0_39 = arith.constant 0 : index
    %c0_40 = arith.constant 0 : index
    %46 = vector.load %arg12[%c0_39, %c0_40] : memref<448x32xbf16, #tpu.memory_space<vmem>>, vector<64x32xbf16>
    %cst_41 = arith.constant dense<0.000000e+00> : vector<64x64xf32>
    %47 = tpu.matmul %45, %25, %cst_41 {dimension_numbers = #tpu.dot_dimension_numbers<[1], [0], [0], [1], [0, 0, 1, 1], [], []>} : vector<64x32xbf16>, vector<32x64xbf16>, vector<64x64xf32> -> vector<64x64xf32>
    %cst_42 = arith.constant dense<0.000000e+00> : vector<64x64xf32>
    %48 = tpu.matmul %46, %27, %cst_42 {dimension_numbers = #tpu.dot_dimension_numbers<[1], [0], [0], [1], [0, 0, 1, 1], [], []>} : vector<64x32xbf16>, vector<32x64xbf16>, vector<64x64xf32> -> vector<64x64xf32>
    %cst_43 = arith.constant dense<0.000000e+00> : vector<64x64xf32>
    %49 = tpu.matmul %46, %25, %cst_43 {dimension_numbers = #tpu.dot_dimension_numbers<[1], [0], [0], [1], [0, 0, 1, 1], [], []>} : vector<64x32xbf16>, vector<32x64xbf16>, vector<64x64xf32> -> vector<64x64xf32>
    %c64 = arith.constant 64 : index
    %c0_44 = arith.constant 0 : index
    %50 = vector.load %arg11[%c64, %c0_44] : memref<448x32xbf16, #tpu.memory_space<vmem>>, vector<64x32xbf16>
    %c64_45 = arith.constant 64 : index
    %c0_46 = arith.constant 0 : index
    %51 = vector.load %arg12[%c64_45, %c0_46] : memref<448x32xbf16, #tpu.memory_space<vmem>>, vector<64x32xbf16>
    %cst_47 = arith.constant dense<0.000000e+00> : vector<64x64xf32>
    %52 = tpu.matmul %50, %29, %cst_47 {dimension_numbers = #tpu.dot_dimension_numbers<[1], [0], [0], [1], [0, 0, 1, 1], [], []>} : vector<64x32xbf16>, vector<32x64xbf16>, vector<64x64xf32> -> vector<64x64xf32>
    %cst_48 = arith.constant dense<0.000000e+00> : vector<64x64xf32>
    %53 = tpu.matmul %50, %27, %cst_48 {dimension_numbers = #tpu.dot_dimension_numbers<[1], [0], [0], [1], [0, 0, 1, 1], [], []>} : vector<64x32xbf16>, vector<32x64xbf16>, vector<64x64xf32> -> vector<64x64xf32>
    %cst_49 = arith.constant dense<0.000000e+00> : vector<64x64xf32>
    %54 = tpu.matmul %51, %29, %cst_49 {dimension_numbers = #tpu.dot_dimension_numbers<[1], [0], [0], [1], [0, 0, 1, 1], [], []>} : vector<64x32xbf16>, vector<32x64xbf16>, vector<64x64xf32> -> vector<64x64xf32>
    %55 = arith.addf %47, %48 : vector<64x64xf32>
    %56 = arith.addf %55, %52 : vector<64x64xf32>
    %57 = arith.addf %49, %53 : vector<64x64xf32>
    %58 = arith.addf %57, %54 : vector<64x64xf32>
    %59 = arith.maximumf %56, %58 : vector<64x64xf32>
    %60 = vector.broadcast %30 : vector<1x64xf32> to vector<64x64xf32>
    %61 = arith.addf %59, %60 : vector<64x64xf32>
    %cst_50 = arith.constant 0.000000e+00 : f32
    %62 = vector.broadcast %cst_50 : f32 to vector<64x64xf32>
    %63 = arith.maximumf %61, %62 : vector<64x64xf32>
    %64 = arith.truncf %63 : vector<64x64xf32> to vector<64x64xbf16>
    %c64_51 = arith.constant 64 : index
    %c0_52 = arith.constant 0 : index
    %65 = vector.load %arg6[%c64_51, %c0_52] : memref<512x256xbf16, #tpu.memory_space<vmem>>, vector<64x256xbf16>
    %cst_53 = arith.constant dense<0.000000e+00> : vector<64x256xf32>
    %66 = tpu.matmul %64, %65, %cst_53 {dimension_numbers = #tpu.dot_dimension_numbers<[1], [0], [0], [1], [0, 0, 1, 1], [], []>} : vector<64x64xbf16>, vector<64x256xbf16>, vector<64x256xf32> -> vector<64x256xf32>
    %67 = arith.addf %44, %66 : vector<64x256xf32>
    %c64_54 = arith.constant 64 : index
    %c0_55 = arith.constant 0 : index
    %68 = vector.load %arg11[%c64_54, %c0_55] : memref<448x32xbf16, #tpu.memory_space<vmem>>, vector<64x32xbf16>
    %c64_56 = arith.constant 64 : index
    %c0_57 = arith.constant 0 : index
    %69 = vector.load %arg12[%c64_56, %c0_57] : memref<448x32xbf16, #tpu.memory_space<vmem>>, vector<64x32xbf16>
    %cst_58 = arith.constant dense<0.000000e+00> : vector<64x64xf32>
    %70 = tpu.matmul %68, %25, %cst_58 {dimension_numbers = #tpu.dot_dimension_numbers<[1], [0], [0], [1], [0, 0, 1, 1], [], []>} : vector<64x32xbf16>, vector<32x64xbf16>, vector<64x64xf32> -> vector<64x64xf32>
    %cst_59 = arith.constant dense<0.000000e+00> : vector<64x64xf32>
    %71 = tpu.matmul %69, %27, %cst_59 {dimension_numbers = #tpu.dot_dimension_numbers<[1], [0], [0], [1], [0, 0, 1, 1], [], []>} : vector<64x32xbf16>, vector<32x64xbf16>, vector<64x64xf32> -> vector<64x64xf32>
    %cst_60 = arith.constant dense<0.000000e+00> : vector<64x64xf32>
    %72 = tpu.matmul %69, %25, %cst_60 {dimension_numbers = #tpu.dot_dimension_numbers<[1], [0], [0], [1], [0, 0, 1, 1], [], []>} : vector<64x32xbf16>, vector<32x64xbf16>, vector<64x64xf32> -> vector<64x64xf32>
    %c128 = arith.constant 128 : index
    %c0_61 = arith.constant 0 : index
    %73 = vector.load %arg11[%c128, %c0_61] : memref<448x32xbf16, #tpu.memory_space<vmem>>, vector<64x32xbf16>
    %c128_62 = arith.constant 128 : index
    %c0_63 = arith.constant 0 : index
    %74 = vector.load %arg12[%c128_62, %c0_63] : memref<448x32xbf16, #tpu.memory_space<vmem>>, vector<64x32xbf16>
    %cst_64 = arith.constant dense<0.000000e+00> : vector<64x64xf32>
    %75 = tpu.matmul %73, %29, %cst_64 {dimension_numbers = #tpu.dot_dimension_numbers<[1], [0], [0], [1], [0, 0, 1, 1], [], []>} : vector<64x32xbf16>, vector<32x64xbf16>, vector<64x64xf32> -> vector<64x64xf32>
    %cst_65 = arith.constant dense<0.000000e+00> : vector<64x64xf32>
    %76 = tpu.matmul %73, %27, %cst_65 {dimension_numbers = #tpu.dot_dimension_numbers<[1], [0], [0], [1], [0, 0, 1, 1], [], []>} : vector<64x32xbf16>, vector<32x64xbf16>, vector<64x64xf32> -> vector<64x64xf32>
    %cst_66 = arith.constant dense<0.000000e+00> : vector<64x64xf32>
    %77 = tpu.matmul %74, %29, %cst_66 {dimension_numbers = #tpu.dot_dimension_numbers<[1], [0], [0], [1], [0, 0, 1, 1], [], []>} : vector<64x32xbf16>, vector<32x64xbf16>, vector<64x64xf32> -> vector<64x64xf32>
    %78 = arith.addf %70, %71 : vector<64x64xf32>
    %79 = arith.addf %78, %75 : vector<64x64xf32>
    %80 = arith.addf %72, %76 : vector<64x64xf32>
    %81 = arith.addf %80, %77 : vector<64x64xf32>
    %82 = arith.maximumf %79, %81 : vector<64x64xf32>
    %83 = vector.broadcast %30 : vector<1x64xf32> to vector<64x64xf32>
    %84 = arith.addf %82, %83 : vector<64x64xf32>
    %cst_67 = arith.constant 0.000000e+00 : f32
    %85 = vector.broadcast %cst_67 : f32 to vector<64x64xf32>
    %86 = arith.maximumf %84, %85 : vector<64x64xf32>
    %87 = arith.truncf %86 : vector<64x64xf32> to vector<64x64xbf16>
    %c128_68 = arith.constant 128 : index
    %c0_69 = arith.constant 0 : index
    %88 = vector.load %arg6[%c128_68, %c0_69] : memref<512x256xbf16, #tpu.memory_space<vmem>>, vector<64x256xbf16>
    %cst_70 = arith.constant dense<0.000000e+00> : vector<64x256xf32>
    %89 = tpu.matmul %87, %88, %cst_70 {dimension_numbers = #tpu.dot_dimension_numbers<[1], [0], [0], [1], [0, 0, 1, 1], [], []>} : vector<64x64xbf16>, vector<64x256xbf16>, vector<64x256xf32> -> vector<64x256xf32>
    %90 = arith.addf %67, %89 : vector<64x256xf32>
    %c128_71 = arith.constant 128 : index
    %c0_72 = arith.constant 0 : index
    %91 = vector.load %arg11[%c128_71, %c0_72] : memref<448x32xbf16, #tpu.memory_space<vmem>>, vector<64x32xbf16>
    %c128_73 = arith.constant 128 : index
    %c0_74 = arith.constant 0 : index
    %92 = vector.load %arg12[%c128_73, %c0_74] : memref<448x32xbf16, #tpu.memory_space<vmem>>, vector<64x32xbf16>
    %cst_75 = arith.constant dense<0.000000e+00> : vector<64x64xf32>
    %93 = tpu.matmul %91, %25, %cst_75 {dimension_numbers = #tpu.dot_dimension_numbers<[1], [0], [0], [1], [0, 0, 1, 1], [], []>} : vector<64x32xbf16>, vector<32x64xbf16>, vector<64x64xf32> -> vector<64x64xf32>
    %cst_76 = arith.constant dense<0.000000e+00> : vector<64x64xf32>
    %94 = tpu.matmul %92, %27, %cst_76 {dimension_numbers = #tpu.dot_dimension_numbers<[1], [0], [0], [1], [0, 0, 1, 1], [], []>} : vector<64x32xbf16>, vector<32x64xbf16>, vector<64x64xf32> -> vector<64x64xf32>
    %cst_77 = arith.constant dense<0.000000e+00> : vector<64x64xf32>
    %95 = tpu.matmul %92, %25, %cst_77 {dimension_numbers = #tpu.dot_dimension_numbers<[1], [0], [0], [1], [0, 0, 1, 1], [], []>} : vector<64x32xbf16>, vector<32x64xbf16>, vector<64x64xf32> -> vector<64x64xf32>
    %c192 = arith.constant 192 : index
    %c0_78 = arith.constant 0 : index
    %96 = vector.load %arg11[%c192, %c0_78] : memref<448x32xbf16, #tpu.memory_space<vmem>>, vector<64x32xbf16>
    %c192_79 = arith.constant 192 : index
    %c0_80 = arith.constant 0 : index
    %97 = vector.load %arg12[%c192_79, %c0_80] : memref<448x32xbf16, #tpu.memory_space<vmem>>, vector<64x32xbf16>
    %cst_81 = arith.constant dense<0.000000e+00> : vector<64x64xf32>
    %98 = tpu.matmul %96, %29, %cst_81 {dimension_numbers = #tpu.dot_dimension_numbers<[1], [0], [0], [1], [0, 0, 1, 1], [], []>} : vector<64x32xbf16>, vector<32x64xbf16>, vector<64x64xf32> -> vector<64x64xf32>
    %cst_82 = arith.constant dense<0.000000e+00> : vector<64x64xf32>
    %99 = tpu.matmul %96, %27, %cst_82 {dimension_numbers = #tpu.dot_dimension_numbers<[1], [0], [0], [1], [0, 0, 1, 1], [], []>} : vector<64x32xbf16>, vector<32x64xbf16>, vector<64x64xf32> -> vector<64x64xf32>
    %cst_83 = arith.constant dense<0.000000e+00> : vector<64x64xf32>
    %100 = tpu.matmul %97, %29, %cst_83 {dimension_numbers = #tpu.dot_dimension_numbers<[1], [0], [0], [1], [0, 0, 1, 1], [], []>} : vector<64x32xbf16>, vector<32x64xbf16>, vector<64x64xf32> -> vector<64x64xf32>
    %101 = arith.addf %93, %94 : vector<64x64xf32>
    %102 = arith.addf %101, %98 : vector<64x64xf32>
    %103 = arith.addf %95, %99 : vector<64x64xf32>
    %104 = arith.addf %103, %100 : vector<64x64xf32>
    %105 = arith.maximumf %102, %104 : vector<64x64xf32>
    %106 = vector.broadcast %30 : vector<1x64xf32> to vector<64x64xf32>
    %107 = arith.addf %105, %106 : vector<64x64xf32>
    %cst_84 = arith.constant 0.000000e+00 : f32
    %108 = vector.broadcast %cst_84 : f32 to vector<64x64xf32>
    %109 = arith.maximumf %107, %108 : vector<64x64xf32>
    %110 = arith.truncf %109 : vector<64x64xf32> to vector<64x64xbf16>
    %c192_85 = arith.constant 192 : index
    %c0_86 = arith.constant 0 : index
    %111 = vector.load %arg6[%c192_85, %c0_86] : memref<512x256xbf16, #tpu.memory_space<vmem>>, vector<64x256xbf16>
    %cst_87 = arith.constant dense<0.000000e+00> : vector<64x256xf32>
    %112 = tpu.matmul %110, %111, %cst_87 {dimension_numbers = #tpu.dot_dimension_numbers<[1], [0], [0], [1], [0, 0, 1, 1], [], []>} : vector<64x64xbf16>, vector<64x256xbf16>, vector<64x256xf32> -> vector<64x256xf32>
    %113 = arith.addf %90, %112 : vector<64x256xf32>
    %c192_88 = arith.constant 192 : index
    %c0_89 = arith.constant 0 : index
    %114 = vector.load %arg11[%c192_88, %c0_89] : memref<448x32xbf16, #tpu.memory_space<vmem>>, vector<64x32xbf16>
    %c192_90 = arith.constant 192 : index
    %c0_91 = arith.constant 0 : index
    %115 = vector.load %arg12[%c192_90, %c0_91] : memref<448x32xbf16, #tpu.memory_space<vmem>>, vector<64x32xbf16>
    %cst_92 = arith.constant dense<0.000000e+00> : vector<64x64xf32>
    %116 = tpu.matmul %114, %25, %cst_92 {dimension_numbers = #tpu.dot_dimension_numbers<[1], [0], [0], [1], [0, 0, 1, 1], [], []>} : vector<64x32xbf16>, vector<32x64xbf16>, vector<64x64xf32> -> vector<64x64xf32>
    %cst_93 = arith.constant dense<0.000000e+00> : vector<64x64xf32>
    %117 = tpu.matmul %115, %27, %cst_93 {dimension_numbers = #tpu.dot_dimension_numbers<[1], [0], [0], [1], [0, 0, 1, 1], [], []>} : vector<64x32xbf16>, vector<32x64xbf16>, vector<64x64xf32> -> vector<64x64xf32>
    %cst_94 = arith.constant dense<0.000000e+00> : vector<64x64xf32>
    %118 = tpu.matmul %115, %25, %cst_94 {dimension_numbers = #tpu.dot_dimension_numbers<[1], [0], [0], [1], [0, 0, 1, 1], [], []>} : vector<64x32xbf16>, vector<32x64xbf16>, vector<64x64xf32> -> vector<64x64xf32>
    %c256 = arith.constant 256 : index
    %c0_95 = arith.constant 0 : index
    %119 = vector.load %arg11[%c256, %c0_95] : memref<448x32xbf16, #tpu.memory_space<vmem>>, vector<64x32xbf16>
    %c256_96 = arith.constant 256 : index
    %c0_97 = arith.constant 0 : index
    %120 = vector.load %arg12[%c256_96, %c0_97] : memref<448x32xbf16, #tpu.memory_space<vmem>>, vector<64x32xbf16>
    %cst_98 = arith.constant dense<0.000000e+00> : vector<64x64xf32>
    %121 = tpu.matmul %119, %29, %cst_98 {dimension_numbers = #tpu.dot_dimension_numbers<[1], [0], [0], [1], [0, 0, 1, 1], [], []>} : vector<64x32xbf16>, vector<32x64xbf16>, vector<64x64xf32> -> vector<64x64xf32>
    %cst_99 = arith.constant dense<0.000000e+00> : vector<64x64xf32>
    %122 = tpu.matmul %119, %27, %cst_99 {dimension_numbers = #tpu.dot_dimension_numbers<[1], [0], [0], [1], [0, 0, 1, 1], [], []>} : vector<64x32xbf16>, vector<32x64xbf16>, vector<64x64xf32> -> vector<64x64xf32>
    %cst_100 = arith.constant dense<0.000000e+00> : vector<64x64xf32>
    %123 = tpu.matmul %120, %29, %cst_100 {dimension_numbers = #tpu.dot_dimension_numbers<[1], [0], [0], [1], [0, 0, 1, 1], [], []>} : vector<64x32xbf16>, vector<32x64xbf16>, vector<64x64xf32> -> vector<64x64xf32>
    %124 = arith.addf %116, %117 : vector<64x64xf32>
    %125 = arith.addf %124, %121 : vector<64x64xf32>
    %126 = arith.addf %118, %122 : vector<64x64xf32>
    %127 = arith.addf %126, %123 : vector<64x64xf32>
    %128 = arith.maximumf %125, %127 : vector<64x64xf32>
    %129 = vector.broadcast %30 : vector<1x64xf32> to vector<64x64xf32>
    %130 = arith.addf %128, %129 : vector<64x64xf32>
    %cst_101 = arith.constant 0.000000e+00 : f32
    %131 = vector.broadcast %cst_101 : f32 to vector<64x64xf32>
    %132 = arith.maximumf %130, %131 : vector<64x64xf32>
    %133 = arith.truncf %132 : vector<64x64xf32> to vector<64x64xbf16>
    %c256_102 = arith.constant 256 : index
    %c0_103 = arith.constant 0 : index
    %134 = vector.load %arg6[%c256_102, %c0_103] : memref<512x256xbf16, #tpu.memory_space<vmem>>, vector<64x256xbf16>
    %cst_104 = arith.constant dense<0.000000e+00> : vector<64x256xf32>
    %135 = tpu.matmul %133, %134, %cst_104 {dimension_numbers = #tpu.dot_dimension_numbers<[1], [0], [0], [1], [0, 0, 1, 1], [], []>} : vector<64x64xbf16>, vector<64x256xbf16>, vector<64x256xf32> -> vector<64x256xf32>
    %136 = arith.addf %113, %135 : vector<64x256xf32>
    %c256_105 = arith.constant 256 : index
    %c0_106 = arith.constant 0 : index
    %137 = vector.load %arg11[%c256_105, %c0_106] : memref<448x32xbf16, #tpu.memory_space<vmem>>, vector<64x32xbf16>
    %c256_107 = arith.constant 256 : index
    %c0_108 = arith.constant 0 : index
    %138 = vector.load %arg12[%c256_107, %c0_108] : memref<448x32xbf16, #tpu.memory_space<vmem>>, vector<64x32xbf16>
    %cst_109 = arith.constant dense<0.000000e+00> : vector<64x64xf32>
    %139 = tpu.matmul %137, %25, %cst_109 {dimension_numbers = #tpu.dot_dimension_numbers<[1], [0], [0], [1], [0, 0, 1, 1], [], []>} : vector<64x32xbf16>, vector<32x64xbf16>, vector<64x64xf32> -> vector<64x64xf32>
    %cst_110 = arith.constant dense<0.000000e+00> : vector<64x64xf32>
    %140 = tpu.matmul %138, %27, %cst_110 {dimension_numbers = #tpu.dot_dimension_numbers<[1], [0], [0], [1], [0, 0, 1, 1], [], []>} : vector<64x32xbf16>, vector<32x64xbf16>, vector<64x64xf32> -> vector<64x64xf32>
    %cst_111 = arith.constant dense<0.000000e+00> : vector<64x64xf32>
    %141 = tpu.matmul %138, %25, %cst_111 {dimension_numbers = #tpu.dot_dimension_numbers<[1], [0], [0], [1], [0, 0, 1, 1], [], []>} : vector<64x32xbf16>, vector<32x64xbf16>, vector<64x64xf32> -> vector<64x64xf32>
    %c320 = arith.constant 320 : index
    %c0_112 = arith.constant 0 : index
    %142 = vector.load %arg11[%c320, %c0_112] : memref<448x32xbf16, #tpu.memory_space<vmem>>, vector<64x32xbf16>
    %c320_113 = arith.constant 320 : index
    %c0_114 = arith.constant 0 : index
    %143 = vector.load %arg12[%c320_113, %c0_114] : memref<448x32xbf16, #tpu.memory_space<vmem>>, vector<64x32xbf16>
    %cst_115 = arith.constant dense<0.000000e+00> : vector<64x64xf32>
    %144 = tpu.matmul %142, %29, %cst_115 {dimension_numbers = #tpu.dot_dimension_numbers<[1], [0], [0], [1], [0, 0, 1, 1], [], []>} : vector<64x32xbf16>, vector<32x64xbf16>, vector<64x64xf32> -> vector<64x64xf32>
    %cst_116 = arith.constant dense<0.000000e+00> : vector<64x64xf32>
    %145 = tpu.matmul %142, %27, %cst_116 {dimension_numbers = #tpu.dot_dimension_numbers<[1], [0], [0], [1], [0, 0, 1, 1], [], []>} : vector<64x32xbf16>, vector<32x64xbf16>, vector<64x64xf32> -> vector<64x64xf32>
    %cst_117 = arith.constant dense<0.000000e+00> : vector<64x64xf32>
    %146 = tpu.matmul %143, %29, %cst_117 {dimension_numbers = #tpu.dot_dimension_numbers<[1], [0], [0], [1], [0, 0, 1, 1], [], []>} : vector<64x32xbf16>, vector<32x64xbf16>, vector<64x64xf32> -> vector<64x64xf32>
    %147 = arith.addf %139, %140 : vector<64x64xf32>
    %148 = arith.addf %147, %144 : vector<64x64xf32>
    %149 = arith.addf %141, %145 : vector<64x64xf32>
    %150 = arith.addf %149, %146 : vector<64x64xf32>
    %151 = arith.maximumf %148, %150 : vector<64x64xf32>
    %152 = vector.broadcast %30 : vector<1x64xf32> to vector<64x64xf32>
    %153 = arith.addf %151, %152 : vector<64x64xf32>
    %cst_118 = arith.constant 0.000000e+00 : f32
    %154 = vector.broadcast %cst_118 : f32 to vector<64x64xf32>
    %155 = arith.maximumf %153, %154 : vector<64x64xf32>
    %156 = arith.truncf %155 : vector<64x64xf32> to vector<64x64xbf16>
    %c320_119 = arith.constant 320 : index
    %c0_120 = arith.constant 0 : index
    %157 = vector.load %arg6[%c320_119, %c0_120] : memref<512x256xbf16, #tpu.memory_space<vmem>>, vector<64x256xbf16>
    %cst_121 = arith.constant dense<0.000000e+00> : vector<64x256xf32>
    %158 = tpu.matmul %156, %157, %cst_121 {dimension_numbers = #tpu.dot_dimension_numbers<[1], [0], [0], [1], [0, 0, 1, 1], [], []>} : vector<64x64xbf16>, vector<64x256xbf16>, vector<64x256xf32> -> vector<64x256xf32>
    %159 = arith.addf %136, %158 : vector<64x256xf32>
    %c320_122 = arith.constant 320 : index
    %c0_123 = arith.constant 0 : index
    %160 = vector.load %arg11[%c320_122, %c0_123] : memref<448x32xbf16, #tpu.memory_space<vmem>>, vector<64x32xbf16>
    %c320_124 = arith.constant 320 : index
    %c0_125 = arith.constant 0 : index
    %161 = vector.load %arg12[%c320_124, %c0_125] : memref<448x32xbf16, #tpu.memory_space<vmem>>, vector<64x32xbf16>
    %cst_126 = arith.constant dense<0.000000e+00> : vector<64x64xf32>
    %162 = tpu.matmul %160, %25, %cst_126 {dimension_numbers = #tpu.dot_dimension_numbers<[1], [0], [0], [1], [0, 0, 1, 1], [], []>} : vector<64x32xbf16>, vector<32x64xbf16>, vector<64x64xf32> -> vector<64x64xf32>
    %cst_127 = arith.constant dense<0.000000e+00> : vector<64x64xf32>
    %163 = tpu.matmul %161, %27, %cst_127 {dimension_numbers = #tpu.dot_dimension_numbers<[1], [0], [0], [1], [0, 0, 1, 1], [], []>} : vector<64x32xbf16>, vector<32x64xbf16>, vector<64x64xf32> -> vector<64x64xf32>
    %cst_128 = arith.constant dense<0.000000e+00> : vector<64x64xf32>
    %164 = tpu.matmul %161, %25, %cst_128 {dimension_numbers = #tpu.dot_dimension_numbers<[1], [0], [0], [1], [0, 0, 1, 1], [], []>} : vector<64x32xbf16>, vector<32x64xbf16>, vector<64x64xf32> -> vector<64x64xf32>
    %c384 = arith.constant 384 : index
    %c0_129 = arith.constant 0 : index
    %165 = vector.load %arg11[%c384, %c0_129] : memref<448x32xbf16, #tpu.memory_space<vmem>>, vector<64x32xbf16>
    %c384_130 = arith.constant 384 : index
    %c0_131 = arith.constant 0 : index
    %166 = vector.load %arg12[%c384_130, %c0_131] : memref<448x32xbf16, #tpu.memory_space<vmem>>, vector<64x32xbf16>
    %cst_132 = arith.constant dense<0.000000e+00> : vector<64x64xf32>
    %167 = tpu.matmul %165, %29, %cst_132 {dimension_numbers = #tpu.dot_dimension_numbers<[1], [0], [0], [1], [0, 0, 1, 1], [], []>} : vector<64x32xbf16>, vector<32x64xbf16>, vector<64x64xf32> -> vector<64x64xf32>
    %cst_133 = arith.constant dense<0.000000e+00> : vector<64x64xf32>
    %168 = tpu.matmul %165, %27, %cst_133 {dimension_numbers = #tpu.dot_dimension_numbers<[1], [0], [0], [1], [0, 0, 1, 1], [], []>} : vector<64x32xbf16>, vector<32x64xbf16>, vector<64x64xf32> -> vector<64x64xf32>
    %cst_134 = arith.constant dense<0.000000e+00> : vector<64x64xf32>
    %169 = tpu.matmul %166, %29, %cst_134 {dimension_numbers = #tpu.dot_dimension_numbers<[1], [0], [0], [1], [0, 0, 1, 1], [], []>} : vector<64x32xbf16>, vector<32x64xbf16>, vector<64x64xf32> -> vector<64x64xf32>
    %170 = arith.addf %162, %163 : vector<64x64xf32>
    %171 = arith.addf %170, %167 : vector<64x64xf32>
    %172 = arith.addf %164, %168 : vector<64x64xf32>
    %173 = arith.addf %172, %169 : vector<64x64xf32>
    %174 = arith.maximumf %171, %173 : vector<64x64xf32>
    %175 = vector.broadcast %30 : vector<1x64xf32> to vector<64x64xf32>
    %176 = arith.addf %174, %175 : vector<64x64xf32>
    %cst_135 = arith.constant 0.000000e+00 : f32
    %177 = vector.broadcast %cst_135 : f32 to vector<64x64xf32>
    %178 = arith.maximumf %176, %177 : vector<64x64xf32>
    %179 = arith.truncf %178 : vector<64x64xf32> to vector<64x64xbf16>
    %c384_136 = arith.constant 384 : index
    %c0_137 = arith.constant 0 : index
    %180 = vector.load %arg6[%c384_136, %c0_137] : memref<512x256xbf16, #tpu.memory_space<vmem>>, vector<64x256xbf16>
    %cst_138 = arith.constant dense<0.000000e+00> : vector<64x256xf32>
    %181 = tpu.matmul %179, %180, %cst_138 {dimension_numbers = #tpu.dot_dimension_numbers<[1], [0], [0], [1], [0, 0, 1, 1], [], []>} : vector<64x64xbf16>, vector<64x256xbf16>, vector<64x256xf32> -> vector<64x256xf32>
    %182 = arith.addf %159, %181 : vector<64x256xf32>
    %c384_139 = arith.constant 384 : index
    %c0_140 = arith.constant 0 : index
    %183 = vector.load %arg11[%c384_139, %c0_140] : memref<448x32xbf16, #tpu.memory_space<vmem>>, vector<64x32xbf16>
    %c384_141 = arith.constant 384 : index
    %c0_142 = arith.constant 0 : index
    %184 = vector.load %arg12[%c384_141, %c0_142] : memref<448x32xbf16, #tpu.memory_space<vmem>>, vector<64x32xbf16>
    %cst_143 = arith.constant dense<0.000000e+00> : vector<64x64xf32>
    %185 = tpu.matmul %183, %25, %cst_143 {dimension_numbers = #tpu.dot_dimension_numbers<[1], [0], [0], [1], [0, 0, 1, 1], [], []>} : vector<64x32xbf16>, vector<32x64xbf16>, vector<64x64xf32> -> vector<64x64xf32>
    %cst_144 = arith.constant dense<0.000000e+00> : vector<64x64xf32>
    %186 = tpu.matmul %184, %27, %cst_144 {dimension_numbers = #tpu.dot_dimension_numbers<[1], [0], [0], [1], [0, 0, 1, 1], [], []>} : vector<64x32xbf16>, vector<32x64xbf16>, vector<64x64xf32> -> vector<64x64xf32>
    %cst_145 = arith.constant dense<0.000000e+00> : vector<64x64xf32>
    %187 = tpu.matmul %184, %25, %cst_145 {dimension_numbers = #tpu.dot_dimension_numbers<[1], [0], [0], [1], [0, 0, 1, 1], [], []>} : vector<64x32xbf16>, vector<32x64xbf16>, vector<64x64xf32> -> vector<64x64xf32>
    %188 = arith.addf %185, %186 : vector<64x64xf32>
    %189 = arith.maximumf %188, %187 : vector<64x64xf32>
    %190 = vector.broadcast %30 : vector<1x64xf32> to vector<64x64xf32>
    %191 = arith.addf %189, %190 : vector<64x64xf32>
    %cst_146 = arith.constant 0.000000e+00 : f32
    %192 = vector.broadcast %cst_146 : f32 to vector<64x64xf32>
    %193 = arith.maximumf %191, %192 : vector<64x64xf32>
    %194 = arith.truncf %193 : vector<64x64xf32> to vector<64x64xbf16>
    %c448_147 = arith.constant 448 : index
    %c0_148 = arith.constant 0 : index
    %195 = vector.load %arg6[%c448_147, %c0_148] : memref<512x256xbf16, #tpu.memory_space<vmem>>, vector<64x256xbf16>
    %cst_149 = arith.constant dense<0.000000e+00> : vector<64x256xf32>
    %196 = tpu.matmul %194, %195, %cst_149 {dimension_numbers = #tpu.dot_dimension_numbers<[1], [0], [0], [1], [0, 0, 1, 1], [], []>} : vector<64x64xbf16>, vector<64x256xbf16>, vector<64x256xf32> -> vector<64x256xf32>
    %197 = arith.addf %182, %196 : vector<64x256xf32>
    %c0_150 = arith.constant 0 : index
    %c0_151 = arith.constant 0 : index
    %198 = vector.load %arg7[%c0_150, %c0_151] : memref<1x256xf32, #tpu.memory_space<vmem>>, vector<1x256xf32>
    %199 = vector.broadcast %198 : vector<1x256xf32> to vector<64x256xf32>
    %200 = arith.addf %197, %199 : vector<64x256xf32>
    %cst_152 = arith.constant 0.000000e+00 : f32
    %201 = vector.broadcast %cst_152 : f32 to vector<64x256xf32>
    %202 = arith.maximumf %200, %201 : vector<64x256xf32>
    %203 = arith.truncf %202 : vector<64x256xf32> to vector<64x256xbf16>
    %c0_153 = arith.constant 0 : index
    %c0_154 = arith.constant 0 : index
    %204 = vector.load %arg8[%c0_153, %c0_154] : memref<256x128xbf16, #tpu.memory_space<vmem>>, vector<256x128xbf16>
    %cst_155 = arith.constant dense<0.000000e+00> : vector<64x128xf32>
    %205 = tpu.matmul %203, %204, %cst_155 {dimension_numbers = #tpu.dot_dimension_numbers<[1], [0], [0], [1], [0, 0, 1, 1], [], []>} : vector<64x256xbf16>, vector<256x128xbf16>, vector<64x128xf32> -> vector<64x128xf32>
    %c0_156 = arith.constant 0 : index
    %c0_157 = arith.constant 0 : index
    %206 = vector.load %arg9[%c0_156, %c0_157] : memref<1x128xf32, #tpu.memory_space<vmem>>, vector<1x128xf32>
    %207 = vector.broadcast %206 : vector<1x128xf32> to vector<64x128xf32>
    %208 = arith.addf %205, %207 : vector<64x128xf32>
    %c0_158 = arith.constant 0 : index
    %c0_159 = arith.constant 0 : index
    %209 = vector.load %arg10[%c0_158, %c0_159] : memref<64x128xf32, #tpu.memory_space<vmem>>, vector<64x128xf32>
    tpu.vector_store %arg10[%c0_158, %c0_159], %208 {strides = array<i32>} : memref<64x128xf32, #tpu.memory_space<vmem>>, vector<64x128xf32>,
    return
  }
  func.func @transform_0(%arg0: i32) -> (i32, i32) {
    %c0_i32 = arith.constant 0 : i32
    %c0_i32_0 = arith.constant 0 : i32
    return %arg0, %c0_i32 : i32, i32
  }
  func.func @transform_1(%arg0: i32) -> (i32, i32) {
    %c0_i32 = arith.constant 0 : i32
    %c0_i32_0 = arith.constant 0 : i32
    %c0_i32_1 = arith.constant 0 : i32
    return %c0_i32, %c0_i32_0 : i32, i32
  }
  func.func @transform_2(%arg0: i32) -> (i32, i32) {
    %c0_i32 = arith.constant 0 : i32
    %c0_i32_0 = arith.constant 0 : i32
    %c0_i32_1 = arith.constant 0 : i32
    return %c0_i32, %c0_i32_0 : i32, i32
  }
  func.func @transform_3(%arg0: i32) -> (i32, i32, i32) {
    %c0_i32 = arith.constant 0 : i32
    %c0_i32_0 = arith.constant 0 : i32
    %c0_i32_1 = arith.constant 0 : i32
    %c0_i32_2 = arith.constant 0 : i32
    return %c0_i32, %c0_i32_0, %c0_i32_1 : i32, i32, i32
  }
  func.func @transform_4(%arg0: i32) -> (i32, i32) {
    %c0_i32 = arith.constant 0 : i32
    %c0_i32_0 = arith.constant 0 : i32
    %c0_i32_1 = arith.constant 0 : i32
    return %c0_i32, %c0_i32_0 : i32, i32
  }
  func.func @transform_5(%arg0: i32) -> (i32, i32) {
    %c0_i32 = arith.constant 0 : i32
    %c0_i32_0 = arith.constant 0 : i32
    %c0_i32_1 = arith.constant 0 : i32
    return %c0_i32, %c0_i32_0 : i32, i32
  }
  func.func @transform_6(%arg0: i32) -> (i32, i32) {
    %c0_i32 = arith.constant 0 : i32
    %c0_i32_0 = arith.constant 0 : i32
    %c0_i32_1 = arith.constant 0 : i32
    return %c0_i32, %c0_i32_0 : i32, i32
  }
  func.func @transform_7(%arg0: i32) -> (i32, i32) {
    %c0_i32 = arith.constant 0 : i32
    %c0_i32_0 = arith.constant 0 : i32
    %c0_i32_1 = arith.constant 0 : i32
    return %c0_i32, %c0_i32_0 : i32, i32
  }
  func.func @transform_8(%arg0: i32) -> (i32, i32) {
    %c0_i32 = arith.constant 0 : i32
    %c0_i32_0 = arith.constant 0 : i32
    %c0_i32_1 = arith.constant 0 : i32
    return %c0_i32, %c0_i32_0 : i32, i32
  }
  func.func @transform_9(%arg0: i32) -> (i32, i32) {
    %c0_i32 = arith.constant 0 : i32
    %c0_i32_0 = arith.constant 0 : i32
    return %arg0, %c0_i32 : i32, i32
  }
}

</mosaic_0001>

<bundles_post_ra>
// kernel: tpu_custom_call.1
= control target key start
LH: loop header
LB: loop body
LE: loop exit
PB: predicated region body
PF: predicated region fallthrough
CT: control target
= control target key end

     0   :  { %14 = vsyncpa [#allocation5], 0  ;;  %s13709_s0 = inlined_call_operand.vmem [shape: bf16[3584,84], index: 0, kind: input, shape index: {}]   ;;  %s13710_s1 = inlined_call_operand.vmem [shape: bf16[84,32], index: 1, kind: input, shape index: {}]   ;;  %s13711_s2 = inlined_call_operand.vmem [shape: f32[1,32], index: 2, kind: input, shape index: {}]   ;;  %s13712_s3 = inlined_call_operand.vmem [shape: bf16[3,32,64], index: 3, kind: input, shape index: {}]   ;;  %s13713_s4 = inlined_call_operand.vmem [shape: f32[1,64], index: 4, kind: input, shape index: {}]   ;;  %s13714_s5 = inlined_call_operand.vmem [shape: bf16[512,256], index: 5, kind: input, shape index: {}]   ;;  %s13715_s6 = inlined_call_operand.vmem [shape: f32[1,256], index: 6, kind: input, shape index: {}]   ;;  %s13716_s7 = inlined_call_operand.vmem [shape: bf16[256,128], index: 7, kind: input, shape index: {}]   ;;  %s13717_s8 = inlined_call_operand.vmem [shape: f32[1,128], index: 8, kind: input, shape index: {}]   ;;  %s13718_s9 = inlined_call_operand.hbm [shape: f32[128,128], index: 9, kind: output, shape index: {}]  }
   0x1   :  { %16 = vsyncpa [#allocation5 + $0x1], 0  ;;  %s11141_s30 = smov 0   ;;  %s11143_s10 = smov 0  }
   0x2   :  { %s11145_s11 = smov 0   ;;  %s11147_s12 = smov 0  }
   0x3 LB: > { %s11162_s13 = sadd.s32 4294967295, %s11085_s12   ;;  %s8601_s14 = sadd.s32 4294967294, %s11085_s12   ;;  %s11085_s12 = sphi %s11147_s12, %s13909_s12   ;;  %s11081_s11 = sphi %s11145_s11, %s13908_s11   ;;  %s11077_s10 = sphi %s11143_s10, %s13907_s10   ;;  %s11073_s30 = sphi %s11141_s30, %s13906_s30  }
   0x4   : > { %s11166_s15 = sadd.s32 1, %s11085_s12   ;;  %s223_s16 = sadd.s32 1, %s11081_s11 }
   0x5   : > { %s220_s17 = ssub.s32 %s11085_s12, %s11166_s15  ;;  %p233_p0 = scmp.ne.s32.totalorder %s11081_s11, %s11077_s10 }
   0x6   : > { %p221_p1 = scmp.eq.s32.totalorder %s220_s17, 0  ;;  %p234_p2 = scmp.eq.s32.totalorder %s11162_s13, 1 }
   0x7   : > { %p239_p3 = scmp.ne.s32.totalorder %s11077_s10, %s11073_s30  ;;  %p240_p4 = scmp.eq.s32.totalorder %s8601_s14, 1 }
   0x8   : > { %s11177_s18 = scalar_select %p221_p1, %s11081_s11, %s223_s16  }
   0x9   : > { %p11179_p5 = por %p234_p2, %p233_p0  ;;  %p11183_p6 = por %p240_p4, %p239_p3 }
   0xa   : > { %p8604_p7 = scmp.ge.s32.totalorder %s11085_s12, 1  ;;  %p291_p8 = scmp.lt.s32.totalorder %s11085_s12, 3 }
   0xc   : > { %p292_p9 = pnand %p8604_p7, %p291_p8 }
   0xe   : > { %295 = sbr.rel (%p292_p9) target bundleno = 2744 (0xab8), region = 56 }
  0x13   : > { %v11192_v0 = vld [vmem:[%s13710_s1 + $0x28] ss:$0 sps:$4 sm:$0x33]   ;;  %vm661_vm0 = vcmask 1041408   ;;  %v11197_v1 = vld [vmem:[%s13710_s1 + $0x20] sm:$0xff]   ;;  %s327_s25 = smul.u32 224, %s11162_s13 }
  0x14   : > { %10636 = vmatprep.subr.msk.bf16.mxu0 %vm661_vm0, %v11192_v0  ;;  %10637 = vmatprep.subr.msk.bf16.mxu1 %vm661_vm0, %v11192_v0  ;;  %v11206_v2 = vsel %vm661_vm0, %v11192_v0, 0  ;;  %v11215_v3 = vld [vmem:[%s13710_s1 + $0x18] sm:$0xff]   ;;  %v11220_v4 = vld [vmem:[%s13710_s1 + $0x10] sm:$0xff]   ;;  %vm576_vm1 = vcmask 687104   ;;  %v11240_v7 = vld [vmem:[%s13710_s1 + $0x8] sm:$0xff]   ;;  %vm1857_vm2 = vcmask 257024  }
  0x15   : > { %9849 = vmatpush3.bf16.msra.mxu0 %v11206_v2  ;;  %9917 = vmatpush3.bf16.msra.mxu1 %v11206_v2  ;;  %p328_p10 = scmp.lt.s32.totalorder %s327_s25, 447  ;;  %v11251_v8 = vld [vmem:[%s13710_s1] sm:$0xff]   ;;  %v11390_v61 = vld [vmem:[%s13712_s3 + $0x28] sm:$0xff]   ;;  %vm3499_vm3 = vcmask 261120   ;;  %vm4367_vm4 = vcmask 523264   ;;  %s324_s26 = sand.u32 1, %s11077_s10  }
  0x16   : > { %9850 = vmatprep.subr.bf16.mxu0 %v11197_v1  ;;  %9918 = vmatprep.subr.bf16.mxu1 %v11197_v1  ;;  %s8605_s27 = sshll.u32 %s324_s26, 6  ;;  %s9419_s16 = sshll.u32 %s11162_s13, 10 }
  0x17   : > { %s13911_s25 = smov (!%p328_p10, %s327_s25), 447  ;;  %s13662_s24 = scalar_lea.hbm %s13718_s9, %s9419_s16 }
  0x18   : > { %s8606_s14 = sshll.u32 %s13911_s25, 2  ;;  %s11088_s25 = smov [#allocation4]  }
  0x19   : > { %9851 = vmatpush3.bf16.msra.mxu0 %v11197_v1  ;;  %9919 = vmatpush3.bf16.msra.mxu1 %v11197_v1  ;;  %s11229_s21 = scalar_lea.vmem %s13709_s0, %s8606_s14  ;;  %s13648_s14 = scalar_lea.vmem [#allocation4], %s8605_s27 }
  0x1a   : > { %9852 = vmatprep.subr.bf16.mxu0 %v11215_v3  ;;  %9920 = vmatprep.subr.bf16.mxu1 %v11215_v3  ;;  %v10689_v5 = vld [vmem:[%s11229_s21] sm:$0xff]   ;;  %v10691_v9 = vld [vmem:[%s11229_s21 + $0x8] sm:$0xff]   ;;  %v10693_v11 = vld [vmem:[%s11229_s21 + $0x10] sm:$0xff]   ;;  %s8539_s17 = sshll.u32 %s13648_s14, 4  ;;  %s11029_s27 = sshll.u32 %s11088_s25, 4  ;;  %s13664_s17 = int_to_ptr.vmem [resolvable:$true] %s8539_s17  ;;  %s11030_s27 = int_to_ptr.vmem [resolvable:$false] %s11029_s27 }
  0x1b   : > { %v10690_v6 = vld [vmem:[%s11229_s21 + $0xe0] sm:$0xff]   ;;  %9860 = vmatprep.mubr.msk.bf16.mxu0 %vm576_vm1, %v10689_v5  ;;  %v10692_v10 = vld [vmem:[%s11229_s21 + $0xe8] sm:$0xff]   ;;  %v10694_v12 = vld [vmem:[%s11229_s21 + $0xf0] sm:$0xff]   ;;  %s11025_s13 = scalar_lea.vmem %s13664_s17, 1024  ;;  %s11031_s28 = scalar_lea.vmem %s11030_s27, 2048 }
  0x1c   : > { %9928 = vmatprep.mubr.msk.bf16.mxu1 %vm576_vm1, %v10690_v6  ;;  %v10695_v13 = vld [vmem:[%s11229_s21 + $0x18] sm:$0xff]   ;;  %v10697_v15 = vld [vmem:[%s11229_s21 + $0x20] sm:$0xff]   ;;  %v10699_v17 = vld [vmem:[%s11229_s21 + $0x28] sm:$0xff]   ;;  %p11026_p11 = scmp.ne.s32.totalorder %s13664_s17, %s11025_s13  ;;  %p11032_p0 = scmp.lt.s32.totalorder %s13664_s17, %s11030_s27 }
  0x1d   : > { %9853 = vmatpush3.bf16.msra.mxu0 %v11215_v3  ;;  %9921 = vmatpush3.bf16.msra.mxu1 %v11215_v3  ;;  %v10696_v14 = vld [vmem:[%s11229_s21 + $0xf8] sm:$0xff]   ;;  %v10698_v16 = vld [vmem:[%s11229_s21 + $0x100] sm:$0xff]   ;;  %v10700_v18 = vld [vmem:[%s11229_s21 + $0x108] sm:$0xff]   ;;  %p11033_p1 = scmp.lt.s32.totalorder %s11031_s28, %s11025_s13 }
  0x1e   : > { %9854 = vmatprep.subr.bf16.mxu0 %v11220_v4  ;;  %9922 = vmatprep.subr.bf16.mxu1 %v11220_v4  ;;  %v10701_v19 = vld [vmem:[%s11229_s21 + $0x30] sm:$0xff]   ;;  %v10703_v21 = vld [vmem:[%s11229_s21 + $0x38] sm:$0xff]   ;;  %v10705_v23 = vld [vmem:[%s11229_s21 + $0x40] sm:$0xff]   ;;  %p11027_p12 = pnand %p11026_p11, %p11179_p5 }
  0x1f   : > { %v10702_v20 = vld [vmem:[%s11229_s21 + $0x110] sm:$0xff]   ;;  %v10704_v22 = vld [vmem:[%s11229_s21 + $0x118] sm:$0xff]   ;;  %v10706_v24 = vld [vmem:[%s11229_s21 + $0x120] sm:$0xff]   ;;  %p11034_p2 = por %p11033_p1, %p11032_p0 }
  0x20   : > { %v10707_v25 = vld [vmem:[%s11229_s21 + $0x48] sm:$0xff]   ;;  %v10709_v27 = vld [vmem:[%s11229_s21 + $0x50] sm:$0xff]   ;;  %v10711_v29 = vld [vmem:[%s11229_s21 + $0x58] sm:$0xff]   ;;  %p11028_p13 = pneg %p11027_p12 }
  0x21   : > { %9855 = vmatpush3.bf16.msra.mxu0 %v11220_v4  ;;  %9923 = vmatpush3.bf16.msra.mxu1 %v11220_v4  ;;  %v10708_v26 = vld [vmem:[%s11229_s21 + $0x128] sm:$0xff]   ;;  %v10710_v28 = vld [vmem:[%s11229_s21 + $0x130] sm:$0xff]   ;;  %v10712_v30 = vld [vmem:[%s11229_s21 + $0x138] sm:$0xff]  }
  0x22   : > { %9856 = vmatprep.subr.bf16.mxu0 %v11240_v7  ;;  %9924 = vmatprep.subr.bf16.mxu1 %v11240_v7  ;;  %v10713_v31 = vld [vmem:[%s11229_s21 + $0x60] sm:$0xff]   ;;  %v10715_v33 = vld [vmem:[%s11229_s21 + $0x68] sm:$0xff]   ;;  %v10717_v35 = vld [vmem:[%s11229_s21 + $0x70] sm:$0xff]   ;;  %p11035_p3 = pnand %p11034_p2, %p11028_p13 }
  0x23   : > { %v10714_v32 = vld [vmem:[%s11229_s21 + $0x140] sm:$0xff]   ;;  %v10716_v34 = vld [vmem:[%s11229_s21 + $0x148] sm:$0xff]   ;;  %v10718_v36 = vld [vmem:[%s11229_s21 + $0x150] sm:$0xff]  }
  0x24   : > { %v10719_v37 = vld [vmem:[%s11229_s21 + $0x78] sm:$0xff]   ;;  %v10721_v39 = vld [vmem:[%s11229_s21 + $0x80] sm:$0xff]   ;;  %v10723_v41 = vld [vmem:[%s11229_s21 + $0x88] sm:$0xff]  }
  0x25   : > { %9857 = vmatpush3.bf16.msra.mxu0 %v11240_v7  ;;  %9925 = vmatpush3.bf16.msra.mxu1 %v11240_v7  ;;  %v10720_v38 = vld [vmem:[%s11229_s21 + $0x158] sm:$0xff]   ;;  %v10722_v40 = vld [vmem:[%s11229_s21 + $0x160] sm:$0xff]   ;;  %v10724_v42 = vld [vmem:[%s11229_s21 + $0x168] sm:$0xff]  }
  0x26   : > { %9858 = vmatprep.subr.bf16.mxu0 %v11251_v8  ;;  %9926 = vmatprep.subr.bf16.mxu1 %v11251_v8  ;;  %v10725_v43 = vld [vmem:[%s11229_s21 + $0x90] sm:$0xff]   ;;  %v10727_v45 = vld [vmem:[%s11229_s21 + $0x98] sm:$0xff]   ;;  %v10729_v47 = vld [vmem:[%s11229_s21 + $0xa0] sm:$0xff]  }
  0x27   : > { %v10726_v44 = vld [vmem:[%s11229_s21 + $0x170] sm:$0xff]   ;;  %v10728_v46 = vld [vmem:[%s11229_s21 + $0x178] sm:$0xff]   ;;  %v10730_v48 = vld [vmem:[%s11229_s21 + $0x180] sm:$0xff]  }
  0x28   : > { %v10731_v49 = vld [vmem:[%s11229_s21 + $0xa8] sm:$0xff]   ;;  %v10733_v51 = vld [vmem:[%s11229_s21 + $0xb0] sm:$0xff]   ;;  %v10735_v53 = vld [vmem:[%s11229_s21 + $0xb8] sm:$0xff]  }
  0x29   : > { %9859 = vmatpush3.bf16.msra.mxu0 %v11251_v8  ;;  %9927 = vmatpush3.bf16.msra.mxu1 %v11251_v8  ;;  %v10732_v50 = vld [vmem:[%s11229_s21 + $0x188] sm:$0xff]   ;;  %v10734_v52 = vld [vmem:[%s11229_s21 + $0x190] sm:$0xff]   ;;  %v10736_v54 = vld [vmem:[%s11229_s21 + $0x198] sm:$0xff]  }
  0x2a   : > { %10638 = vmatprep.subr.msk.bf16.mxu0 %vm661_vm0, %v11192_v0  ;;  %10640 = vmatprep.subr.msk.bf16.mxu1 %vm661_vm0, %v11192_v0  ;;  %v10737_v55 = vld [vmem:[%s11229_s21 + $0xc0] sm:$0xff]   ;;  %v10739_v57 = vld [vmem:[%s11229_s21 + $0xc8] sm:$0xff]   ;;  %v10741_v59 = vld [vmem:[%s11229_s21 + $0xd0] sm:$0xff]  }
  0x2b   : > { %v10738_v56 = vld [vmem:[%s11229_s21 + $0x1a0] sm:$0xff]   ;;  %v10740_v58 = vld [vmem:[%s11229_s21 + $0x1a8] sm:$0xff]   ;;  %v10742_v60 = vld [vmem:[%s11229_s21 + $0x1b0] sm:$0xff]  }
  0x2c   : > { %9861 = vmatmul.mubr.msk.bf16.vlgmr.msra.gmra.mxu0 %vm576_vm1, %v10691_v9  ;;  %9929 = vmatmul.mubr.msk.bf16.vlgmr.msra.gmra.mxu1 %vm576_vm1, %v10692_v10  ;;  %v10743_v62 = vld [vmem:[%s11229_s21 + $0xd8] sm:$0xff]   ;;  %v10748_v5 = vld [vmem:[%s11229_s21 + $0x2b0] sm:$0xff]   ;;  %v10746_v6 = vld [vmem:[%s11229_s21 + $0x1c8] sm:$0xff]  }
  0x2d   : > { %9985 = vmatpush3.bf16.msra.mxu0 %v11206_v2  ;;  %9864 = vmatprep.mubr.msk.bf16.mxu0 %vm576_vm1, %v10693_v11  ;;  %v10744_v63 = vld [vmem:[%s11229_s21 + $0x1b8] sm:$0xff]   ;;  %v10747_v10 = vld [vmem:[%s11229_s21 + $0x1d0] sm:$0xff]   ;;  %v10752_v11 = vld [vmem:[%s11229_s21 + $0x2c0] sm:$0xff]  }
  0x2e   : > { %9932 = vmatprep.mubr.msk.bf16.mxu1 %vm576_vm1, %v10694_v12  ;;  %9986 = vmatprep.subr.bf16.mxu0 %v11197_v1  ;;  %v10750_v9 = vld [vmem:[%s11229_s21 + $0x2b8] sm:$0xff]  }
  0x2f   : > { %10630 = vmatpush3.bf16.msra.mxu1 %v11206_v2  ;;  %v10749_v12 = vld [vmem:[%s11229_s21 + $0x1d8] sm:$0xff]  }
  0x30   : > { %10625 = vmatprep.subr.bf16.mxu1 %v11197_v1 }
  0x31   : > { %9987 = vmatpush3.bf16.msra.mxu0 %v11197_v1 }
  0x32   : > { %9988 = vmatprep.subr.bf16.mxu0 %v11215_v3 }
  0x33   : > { %10631 = vmatpush3.bf16.msra.mxu1 %v11197_v1 }
  0x34   : > { %9865 = vmatmul.mubr.msk.bf16.gmra.mxu0 %vm576_vm1, %v10695_v13  ;;  %9933 = vmatmul.mubr.msk.bf16.gmra.mxu1 %vm576_vm1, %v10696_v14  ;;  %v10754_v13 = vld [vmem:[%s11229_s21 + $0x2c8] sm:$0xff]   ;;  %v11420_v14 = vld [vmem:[%s13712_s3 + $0x20] sm:$0xff]  }
  0x35   : > { %9868 = vmatprep.mubr.msk.bf16.mxu0 %vm576_vm1, %v10697_v15  ;;  %9936 = vmatprep.mubr.msk.bf16.mxu1 %vm576_vm1, %v10698_v16  ;;  %v10751_v15 = vld [vmem:[%s11229_s21 + $0x1e0] sm:$0xff]   ;;  %v10756_v16 = vld [vmem:[%s11229_s21 + $0x2d0] sm:$0xff]  }
  0x36   : > { %9989 = vmatpush3.bf16.msra.mxu0 %v11215_v3  ;;  %10626 = vmatprep.subr.bf16.mxu1 %v11215_v3 }
  0x37   : > { %9990 = vmatprep.subr.bf16.mxu0 %v11220_v4  ;;  %10632 = vmatpush3.bf16.msra.mxu1 %v11215_v3 }
  0x38   : > { %10627 = vmatprep.subr.bf16.mxu1 %v11220_v4 }
  0x3a   : > { %9991 = vmatpush3.bf16.msra.mxu0 %v11220_v4 }
  0x3b   : > { %9992 = vmatprep.subr.bf16.mxu0 %v11240_v7  ;;  %10633 = vmatpush3.bf16.msra.mxu1 %v11220_v4 }
  0x3c   : > { %9869 = vmatmul.mubr.msk.bf16.gmra.mxu0 %vm576_vm1, %v10699_v17  ;;  %9937 = vmatmul.mubr.msk.bf16.gmra.mxu1 %vm576_vm1, %v10700_v18  ;;  %v10753_v17 = vld [vmem:[%s11229_s21 + $0x1e8] sm:$0xff]   ;;  %v10755_v18 = vld [vmem:[%s11229_s21 + $0x1f0] sm:$0xff]  }
  0x3d   : > { %9872 = vmatprep.mubr.msk.bf16.mxu0 %vm576_vm1, %v10701_v19  ;;  %9940 = vmatprep.mubr.msk.bf16.mxu1 %vm576_vm1, %v10702_v20  ;;  %v10760_v19 = vld [vmem:[%s11229_s21 + $0x2e0] sm:$0xff]   ;;  %v10975_v20 = vld [vmem:[%s13710_s1 + $0x10] sm:$0xff]  }
  0x3e   : > { %9993 = vmatpush3.bf16.msra.mxu0 %v11240_v7  ;;  %10628 = vmatprep.subr.bf16.mxu1 %v11240_v7 }
  0x3f   : > { %9994 = vmatprep.subr.bf16.mxu0 %v11251_v8  ;;  %10634 = vmatpush3.bf16.msra.mxu1 %v11240_v7 }
  0x40   : > { %10629 = vmatprep.subr.bf16.mxu1 %v11251_v8 }
  0x42   : > { %9995 = vmatpush3.bf16.msra.mxu0 %v11251_v8 }
  0x43   : > { %10639 = vmatprep.subr.msk.bf16.mxu0 %vm661_vm0, %v11192_v0  ;;  %10635 = vmatpush3.bf16.msra.mxu1 %v11251_v8  ;;  %v10745_v0 = vld [vmem:[%s11229_s21 + $0x1c0] sm:$0xff]  }
  0x44   : > { %9873 = vmatmul.mubr.msk.bf16.gmra.mxu0 %vm576_vm1, %v10703_v21  ;;  %9941 = vmatmul.mubr.msk.bf16.gmra.mxu1 %vm576_vm1, %v10704_v22  ;;  %v10759_v21 = vld [vmem:[%s11229_s21 + $0x200] sm:$0xff]   ;;  %v10764_v22 = vld [vmem:[%s11229_s21 + $0x2f0] sm:$0xff]  }
  0x45   : > { %9876 = vmatprep.mubr.msk.bf16.mxu0 %vm576_vm1, %v10705_v23  ;;  %9944 = vmatprep.mubr.msk.bf16.mxu1 %vm576_vm1, %v10706_v24  ;;  %v10766_v23 = vld [vmem:[%s11229_s21 + $0x2f8] sm:$0xff]   ;;  %v10763_v24 = vld [vmem:[%s11229_s21 + $0x210] sm:$0xff]  }
  0x46   : > { %10132 = vmatprep.subr.bf16.mxu1 %v11390_v61 }
  0x4c   : > { %9877 = vmatmul.mubr.msk.bf16.gmra.mxu0 %vm576_vm1, %v10707_v25  ;;  %9945 = vmatmul.mubr.msk.bf16.gmra.mxu1 %vm576_vm1, %v10708_v26  ;;  %v10768_v25 = vld [vmem:[%s11229_s21 + $0x300] sm:$0xff]   ;;  %v10770_v26 = vld [vmem:[%s11229_s21 + $0x308] sm:$0xff]  }
  0x4d   : > { %9880 = vmatprep.mubr.msk.bf16.mxu0 %vm576_vm1, %v10709_v27  ;;  %9948 = vmatprep.mubr.msk.bf16.mxu1 %vm576_vm1, %v10710_v28  ;;  %v10767_v27 = vld [vmem:[%s11229_s21 + $0x220] sm:$0xff]   ;;  %v10772_v28 = vld [vmem:[%s11229_s21 + $0x310] sm:$0xff]  }
  0x54   : > { %9881 = vmatmul.mubr.msk.bf16.gmra.mxu0 %vm576_vm1, %v10711_v29  ;;  %9949 = vmatmul.mubr.msk.bf16.gmra.mxu1 %vm576_vm1, %v10712_v30  ;;  %v10769_v29 = vld [vmem:[%s11229_s21 + $0x228] sm:$0xff]   ;;  %v10774_v30 = vld [vmem:[%s11229_s21 + $0x318] sm:$0xff]  }
  0x55   : > { %9884 = vmatprep.mubr.msk.bf16.mxu0 %vm576_vm1, %v10713_v31  ;;  %9952 = vmatprep.mubr.msk.bf16.mxu1 %vm576_vm1, %v10714_v32  ;;  %v10771_v31 = vld [vmem:[%s11229_s21 + $0x230] sm:$0xff]   ;;  %v10776_v32 = vld [vmem:[%s11229_s21 + $0x320] sm:$0xff]  }
  0x5c   : > { %9885 = vmatmul.mubr.msk.bf16.gmra.mxu0 %vm576_vm1, %v10715_v33  ;;  %9953 = vmatmul.mubr.msk.bf16.gmra.mxu1 %vm576_vm1, %v10716_v34  ;;  %v10773_v33 = vld [vmem:[%s11229_s21 + $0x238] sm:$0xff]   ;;  %v10778_v34 = vld [vmem:[%s11229_s21 + $0x328] sm:$0xff]  }
  0x5d   : > { %9888 = vmatprep.mubr.msk.bf16.mxu0 %vm576_vm1, %v10717_v35  ;;  %9956 = vmatprep.mubr.msk.bf16.mxu1 %vm576_vm1, %v10718_v36  ;;  %v10775_v35 = vld [vmem:[%s11229_s21 + $0x240] sm:$0xff]   ;;  %v10780_v36 = vld [vmem:[%s11229_s21 + $0x330] sm:$0xff]  }
  0x64   : > { %9889 = vmatmul.mubr.msk.bf16.gmra.mxu0 %vm576_vm1, %v10719_v37  ;;  %9957 = vmatmul.mubr.msk.bf16.gmra.mxu1 %vm576_vm1, %v10720_v38  ;;  %v10777_v37 = vld [vmem:[%s11229_s21 + $0x248] sm:$0xff]   ;;  %v10782_v38 = vld [vmem:[%s11229_s21 + $0x338] sm:$0xff]  }
  0x65   : > { %9892 = vmatprep.mubr.msk.bf16.mxu0 %vm576_vm1, %v10721_v39  ;;  %9960 = vmatprep.mubr.msk.bf16.mxu1 %vm576_vm1, %v10722_v40  ;;  %v10779_v39 = vld [vmem:[%s11229_s21 + $0x250] sm:$0xff]   ;;  %v10784_v40 = vld [vmem:[%s11229_s21 + $0x340] sm:$0xff]  }
  0x6c   : > { %9893 = vmatmul.mubr.msk.bf16.gmra.mxu0 %vm576_vm1, %v10723_v41  ;;  %9961 = vmatmul.mubr.msk.bf16.gmra.mxu1 %vm576_vm1, %v10724_v42  ;;  %v10781_v41 = vld [vmem:[%s11229_s21 + $0x258] sm:$0xff]   ;;  %v10786_v42 = vld [vmem:[%s11229_s21 + $0x348] sm:$0xff]  }
  0x6d   : > { %9896 = vmatprep.mubr.msk.bf16.mxu0 %vm576_vm1, %v10725_v43  ;;  %9964 = vmatprep.mubr.msk.bf16.mxu1 %vm576_vm1, %v10726_v44  ;;  %v10783_v43 = vld [vmem:[%s11229_s21 + $0x260] sm:$0xff]   ;;  %v10788_v44 = vld [vmem:[%s11229_s21 + $0x350] sm:$0xff]  }
  0x74   : > { %9897 = vmatmul.mubr.msk.bf16.gmra.mxu0 %vm576_vm1, %v10727_v45  ;;  %9965 = vmatmul.mubr.msk.bf16.gmra.mxu1 %vm576_vm1, %v10728_v46  ;;  %v10785_v45 = vld [vmem:[%s11229_s21 + $0x268] sm:$0xff]   ;;  %v10790_v46 = vld [vmem:[%s11229_s21 + $0x358] sm:$0xff]  }
  0x75   : > { %9900 = vmatprep.mubr.msk.bf16.mxu0 %vm576_vm1, %v10729_v47  ;;  %9968 = vmatprep.mubr.msk.bf16.mxu1 %vm576_vm1, %v10730_v48  ;;  %v10787_v47 = vld [vmem:[%s11229_s21 + $0x270] sm:$0xff]   ;;  %v10792_v48 = vld [vmem:[%s11229_s21 + $0x360] sm:$0xff]  }
  0x7c   : > { %9901 = vmatmul.mubr.msk.bf16.gmra.mxu0 %vm576_vm1, %v10731_v49  ;;  %9969 = vmatmul.mubr.msk.bf16.gmra.mxu1 %vm576_vm1, %v10732_v50  ;;  %v11520_v50 = vld [vmem:[%s13711_s2] ss:$0 sm:$0xff] }
  0x7d   : > { %9904 = vmatprep.mubr.msk.bf16.mxu0 %vm576_vm1, %v10733_v51  ;;  %9972 = vmatprep.mubr.msk.bf16.mxu1 %vm576_vm1, %v10734_v52 }
  0x84   : > { %9905 = vmatmul.mubr.msk.bf16.gmra.mxu0 %vm576_vm1, %v10735_v53  ;;  %9973 = vmatmul.mubr.msk.bf16.gmra.mxu1 %vm576_vm1, %v10736_v54 }
  0x85   : > { %9908 = vmatprep.mubr.msk.bf16.mxu0 %vm576_vm1, %v10737_v55  ;;  %9976 = vmatprep.mubr.msk.bf16.mxu1 %vm576_vm1, %v10738_v56 }
  0x8c   : > { %9909 = vmatmul.mubr.msk.bf16.gmra.mxu0 %vm576_vm1, %v10739_v57  ;;  %9977 = vmatmul.mubr.msk.bf16.gmra.mxu1 %vm576_vm1, %v10740_v58 }
  0x8d   : > { %9912 = vmatprep.mubr.msk.bf16.mxu0 %vm576_vm1, %v10741_v59  ;;  %9980 = vmatprep.mubr.msk.bf16.mxu1 %vm576_vm1, %v10742_v60  ;;  %v10789_v59 = vld [vmem:[%s11229_s21 + $0x278] sm:$0xff]   ;;  %v10794_v60 = vld [vmem:[%s11229_s21 + $0x368] sm:$0xff]  }
  0x94   : > { %9913 = vmatmul.mubr.msk.bf16.gmra.mxu0 %vm576_vm1, %v10743_v62  ;;  %9981 = vmatmul.mubr.msk.bf16.gmra.mxu1 %vm576_vm1, %v10744_v63 }
  0x95   : > { %9996 = vmatprep.mubr.msk.bf16.mxu0 %vm576_vm1, %v10745_v0  ;;  %10068 = vmatprep.mubr.msk.bf16.mxu1 %vm576_vm1, %v10748_v5  ;;  %v10791_v5 = vld [vmem:[%s11229_s21 + $0x280] sm:$0xff]  }
  0x9c   : > { %9997 = vmatmul.mubr.msk.bf16.vlgmr.msra.gmra.mxu0 %vm576_vm1, %v10746_v6  ;;  %10069 = vmatmul.mubr.msk.bf16.vlgmr.msra.gmra.mxu1 %vm576_vm1, %v10750_v9  ;;  %v10796_v6 = vld [vmem:[%s11229_s21 + $0x370] sm:$0xff]  }
  0x9d   : > { %10053 = vmatpush3.bf16.msra.mxu0 %v11206_v2  ;;  %10000 = vmatprep.mubr.msk.bf16.mxu0 %vm576_vm1, %v10747_v10  ;;  %v11431_v2 = vld [vmem:[%s13712_s3 + $0x18] sm:$0xff]  }
  0x9e   : > { %10072 = vmatprep.mubr.msk.bf16.mxu1 %vm576_vm1, %v10752_v11  ;;  %10054 = vmatprep.subr.bf16.mxu0 %v11197_v1 }
  0x9f   : > { %10133 = vmatpush3.bf16.msra.mxu1 %v11390_v61 }
  0xa0   : > { %10134 = vmatprep.subr.bf16.mxu1 %v11420_v14 }
  0xa1   : > { %10055 = vmatpush3.bf16.msra.mxu0 %v11197_v1  ;;  %v10758_v1 = vld [vmem:[%s11229_s21 + $0x2d8] sm:$0xff]  }
  0xa2   : > { %10056 = vmatprep.subr.bf16.mxu0 %v11215_v3 }
  0xa3   : > { %10135 = vmatpush3.bf16.msra.mxu1 %v11420_v14 }
  0xa4   : > { %10001 = vmatmul.mubr.msk.bf16.gmra.mxu0 %vm576_vm1, %v10749_v12  ;;  %10073 = vmatmul.mubr.msk.bf16.gmra.mxu1 %vm576_vm1, %v10754_v13 }
  0xa5   : > { %10004 = vmatprep.mubr.msk.bf16.mxu0 %vm576_vm1, %v10751_v15  ;;  %10076 = vmatprep.mubr.msk.bf16.mxu1 %vm576_vm1, %v10756_v16 }
  0xa6   : > { %10057 = vmatpush3.bf16.msra.mxu0 %v11215_v3  ;;  %10156 = vmatprep.subr.bf16.mxu1 %v11431_v2  ;;  %v10757_v3 = vld [vmem:[%s11229_s21 + $0x1f8] sm:$0xff]  }
  0xa7   : > { %10058 = vmatprep.subr.bf16.mxu0 %v11220_v4  ;;  %v10762_v4 = vld [vmem:[%s11229_s21 + $0x2e8] sm:$0xff]  }
  0xaa   : > { %10059 = vmatpush3.bf16.msra.mxu0 %v10975_v20 }
  0xab   : > { %10060 = vmatprep.subr.bf16.mxu0 %v11240_v7 }
  0xac   : > { %10005 = vmatmul.mubr.msk.bf16.gmra.mxu0 %vm576_vm1, %v10753_v17  ;;  %10077 = vmatmul.mubr.msk.bf16.gmra.mxu1 %vm576_vm1, %v10758_v1 }
  0xad   : > { %10008 = vmatprep.mubr.msk.bf16.mxu0 %vm576_vm1, %v10755_v18  ;;  %10080 = vmatprep.mubr.msk.bf16.mxu1 %vm576_vm1, %v10760_v19 }
  0xae   : > { %10061 = vmatpush3.bf16.msra.mxu0 %v11240_v7  ;;  %v10761_v7 = vld [vmem:[%s11229_s21 + $0x208] sm:$0xff]  }
  0xaf   : > { %10062 = vmatprep.subr.bf16.mxu0 %v11251_v8 }
  0xb2   : > { %10063 = vmatpush3.bf16.msra.mxu0 %v11251_v8  ;;  %v10765_v8 = vld [vmem:[%s11229_s21 + $0x218] sm:$0xff]  }
  0xb3   : > { %10120 = vmatprep.subr.bf16.mxu0 %v11390_v61 }
  0xb4   : > { %10009 = vmatmul.mubr.msk.bf16.gmra.mxu0 %vm576_vm1, %v10757_v3  ;;  %10081 = vmatmul.mubr.msk.bf16.gmra.mxu1 %vm576_vm1, %v10762_v4 }
  0xb5   : > { %10012 = vmatprep.mubr.msk.bf16.mxu0 %vm576_vm1, %v10759_v21  ;;  %10084 = vmatprep.mubr.msk.bf16.mxu1 %vm576_vm1, %v10764_v22 }
  0xbc   : > { %10013 = vmatmul.mubr.msk.bf16.gmra.mxu0 %vm576_vm1, %v10761_v7  ;;  %10085 = vmatmul.mubr.msk.bf16.gmra.mxu1 %vm576_vm1, %v10766_v23 }
  0xbd   : > { %10016 = vmatprep.mubr.msk.bf16.mxu0 %vm576_vm1, %v10763_v24  ;;  %10088 = vmatprep.mubr.msk.bf16.mxu1 %vm576_vm1, %v10768_v25 }
  0xc4   : > { %10017 = vmatmul.mubr.msk.bf16.gmra.mxu0 %vm576_vm1, %v10765_v8  ;;  %10089 = vmatmul.mubr.msk.bf16.gmra.mxu1 %vm576_vm1, %v10770_v26  ;;  %v10793_v8 = vld [vmem:[%s11229_s21 + $0x288] sm:$0xff]   ;;  %v10798_v26 = vld [vmem:[%s11229_s21 + $0x378] sm:$0xff]  }
  0xc5   : > { %10020 = vmatprep.mubr.msk.bf16.mxu0 %vm576_vm1, %v10767_v27  ;;  %10092 = vmatprep.mubr.msk.bf16.mxu1 %vm576_vm1, %v10772_v28 }
  0xcc   : > { %10021 = vmatmul.mubr.msk.bf16.gmra.mxu0 %vm576_vm1, %v10769_v29  ;;  %10093 = vmatmul.mubr.msk.bf16.gmra.mxu1 %vm576_vm1, %v10774_v30 }
  0xcd   : > { %10024 = vmatprep.mubr.msk.bf16.mxu0 %vm576_vm1, %v10771_v31  ;;  %10096 = vmatprep.mubr.msk.bf16.mxu1 %vm576_vm1, %v10776_v32  ;;  %v10795_v31 = vld [vmem:[%s11229_s21 + $0x290] sm:$0xff]  }
  0xd4   : > { %10025 = vmatmul.mubr.msk.bf16.gmra.mxu0 %vm576_vm1, %v10773_v33  ;;  %10097 = vmatmul.mubr.msk.bf16.gmra.mxu1 %vm576_vm1, %v10778_v34 }
  0xd5   : > { %10028 = vmatprep.mubr.msk.bf16.mxu0 %vm576_vm1, %v10775_v35  ;;  %10100 = vmatprep.mubr.msk.bf16.mxu1 %vm576_vm1, %v10780_v36 }
  0xdc   : > { %10029 = vmatmul.mubr.msk.bf16.gmra.mxu0 %vm576_vm1, %v10777_v37  ;;  %10101 = vmatmul.mubr.msk.bf16.gmra.mxu1 %vm576_vm1, %v10782_v38 }
  0xdd   : > { %10032 = vmatprep.mubr.msk.bf16.mxu0 %vm576_vm1, %v10779_v39  ;;  %10104 = vmatprep.mubr.msk.bf16.mxu1 %vm576_vm1, %v10784_v40 }
  0xe4   : > { %10033 = vmatmul.mubr.msk.bf16.gmra.mxu0 %vm576_vm1, %v10781_v41  ;;  %10105 = vmatmul.mubr.msk.bf16.gmra.mxu1 %vm576_vm1, %v10786_v42 }
  0xe5   : > { %10036 = vmatprep.mubr.msk.bf16.mxu0 %vm576_vm1, %v10783_v43  ;;  %10108 = vmatprep.mubr.msk.bf16.mxu1 %vm576_vm1, %v10788_v44 }
  0xec   : > { %v9862_v49 = vpop.f32.mrf.mxu0  ;;  %v9930_v51 = vpop.f32.mrf.mxu1  ;;  %10037 = vmatmul.mubr.msk.bf16.gmra.mxu0 %vm576_vm1, %v10785_v45  ;;  %10109 = vmatmul.mubr.msk.bf16.gmra.mxu1 %vm576_vm1, %v10790_v46 }
  0xed   : > { %v1461_v52 = vmax.f32 %v9862_v49, %v9930_v51  ;;  %10040 = vmatprep.mubr.msk.bf16.mxu0 %vm576_vm1, %v10787_v47  ;;  %10112 = vmatprep.mubr.msk.bf16.mxu1 %vm576_vm1, %v10792_v48 }
  0xee   : > { %v699_v53 = vpop.f32.mrf.mxu0  ;;  %v1236_v54 = vpop.f32.mrf.mxu1 }
  0xef   : > { %v1523_v55 = vadd.f32 %v11520_v50, %v1461_v52  ;;  %v1459_v56 = vmax.f32 %v699_v53, %v1236_v54  ;;  %v10797_v53 = vld [vmem:[%s11229_s21 + $0x298] sm:$0xff]  }
  0xf0   : > { %v9863_v57 = vpop.f32.mrf.mxu0  ;;  %v9931_v58 = vpop.f32.mrf.mxu1 }
  0xf1   : > { %v1579_v62 = vmax.f32 %v1523_v55, 0.0  ;;  %v1521_v63 = vadd.f32 %v11520_v50, %v1459_v56  ;;  %v1462_v0 = vmax.f32 %v9863_v57, %v9931_v58  ;;  %v10799_v58 = vld [vmem:[%s11229_s21 + $0x2a0] sm:$0xff]  }
  0xf2   : > { %v702_v9 = vpop.f32.mrf.mxu0  ;;  %v1239_v10 = vpop.f32.mrf.mxu1 }
  0xf3   : > { %v9309_v11 = vpack.c.bf16 %v1579_v62, %v1579_v62  ;;  %v1577_v12 = vmax.f32 %v1521_v63, 0.0  ;;  %v1524_v13 = vadd.f32 %v11520_v50, %v1462_v0  ;;  %v1460_v15 = vmax.f32 %v702_v9, %v1239_v10 }
  0xf4   : > { %v9866_v16 = vpop.f32.mrf.mxu0  ;;  %v9934_v17 = vpop.f32.mrf.mxu1  ;;  %10041 = vmatmul.mubr.msk.bf16.gmra.mxu0 %vm576_vm1, %v10789_v59  ;;  %10113 = vmatmul.mubr.msk.bf16.gmra.mxu1 %vm576_vm1, %v10794_v60 }
  0xf5   : > { %1860 = vst.msk [vmem:[#allocation2 + $0x8] sm:$0xf] %vm1857_vm2, %v9309_v11  ;;  %v9307_v1 = vpack.c.bf16 %v1577_v12, %v1577_v12  ;;  %v1580_v18 = vmax.f32 %v1524_v13, 0.0  ;;  %v1522_v19 = vadd.f32 %v11520_v50, %v1460_v15  ;;  %v1465_v20 = vmax.f32 %v9866_v16, %v9934_v17  ;;  %10044 = vmatprep.mubr.msk.bf16.mxu0 %vm576_vm1, %v10791_v5 }
  0xf6   : > { %10116 = vmatprep.mubr.msk.bf16.mxu1 %vm576_vm1, %v10796_v6  ;;  %v715_v3 = vpop.f32.mrf.mxu0  ;;  %v1252_v4 = vpop.f32.mrf.mxu1 }
  0xf7   : > { %1858 = vst.msk [vmem:[#allocation2] sm:$0xf] %vm1857_vm2, %v9307_v1  ;;  %v9310_v21 = vpack.c.bf16 %v1580_v18, %v1580_v18  ;;  %v1578_v22 = vmax.f32 %v1522_v19, 0.0  ;;  %v1527_v7 = vadd.f32 %v11520_v50, %v1465_v20  ;;  %v1463_v23 = vmax.f32 %v715_v3, %v1252_v4  ;;  %v10800_v4 = vld [vmem:[%s11229_s21 + $0x2a8] sm:$0xff]   ;;  %s13669_s21 = scalar_lea.sflag [#allocation5], %s324_s26 }
  0xf8   : > { %v9867_v24 = vpop.f32.mrf.mxu0  ;;  %v9935_v25 = vpop.f32.mrf.mxu1 }
  0xf9   : > { %1861 = vst.msk [vmem:[#allocation2 + $0xc] sm:$0xf] %vm1857_vm2, %v9310_v21  ;;  %v9308_v27 = vpack.c.bf16 %v1578_v22, %v1578_v22  ;;  %v1583_v28 = vmax.f32 %v1527_v7, 0.0  ;;  %v1525_v29 = vadd.f32 %v11520_v50, %v1463_v23  ;;  %v1466_v30 = vmax.f32 %v9867_v24, %v9935_v25 }
  0xfa   : > { %v718_v32 = vpop.f32.mrf.mxu0  ;;  %v1255_v33 = vpop.f32.mrf.mxu1 }
  0xfb   : > { %1859 = vst.msk [vmem:[#allocation2 + $0x4] sm:$0xf] %vm1857_vm2, %v9308_v27  ;;  %v9313_v34 = vpack.c.bf16 %v1583_v28, %v1583_v28  ;;  %v1581_v35 = vmax.f32 %v1525_v29, 0.0  ;;  %v1528_v36 = vadd.f32 %v11520_v50, %v1466_v30  ;;  %v1464_v37 = vmax.f32 %v718_v32, %v1255_v33 }
  0xfc   : > { %v9870_v38 = vpop.f32.mrf.mxu0  ;;  %v9938_v39 = vpop.f32.mrf.mxu1  ;;  %10045 = vmatmul.mubr.msk.bf16.gmra.mxu0 %vm576_vm1, %v10793_v8  ;;  %10117 = vmatmul.mubr.msk.bf16.gmra.mxu1 %vm576_vm1, %v10798_v26 }
  0xfd   : > { %1864 = vst.msk [vmem:[#allocation2 + $0x18] sm:$0xf] %vm1857_vm2, %v9313_v34  ;;  %v9311_v40 = vpack.c.bf16 %v1581_v35, %v1581_v35  ;;  %v1584_v41 = vmax.f32 %v1528_v36, 0.0  ;;  %v1526_v42 = vadd.f32 %v11520_v50, %v1464_v37  ;;  %v1469_v43 = vmax.f32 %v9870_v38, %v9938_v39  ;;  %10048 = vmatprep.mubr.msk.bf16.mxu0 %vm576_vm1, %v10795_v31 }
  0xfe   : > { %v731_v44 = vpop.f32.mrf.mxu0  ;;  %v1268_v45 = vpop.f32.mrf.mxu1 }
  0xff   : > { %1862 = vst.msk [vmem:[#allocation2 + $0x10] sm:$0xf] %vm1857_vm2, %v9311_v40  ;;  %v9314_v46 = vpack.c.bf16 %v1584_v41, %v1584_v41  ;;  %v1582_v47 = vmax.f32 %v1526_v42, 0.0  ;;  %v1531_v48 = vadd.f32 %v11520_v50, %v1469_v43  ;;  %v1467_v49 = vmax.f32 %v731_v44, %v1268_v45 }
 0x100   : > { %v9871_v51 = vpop.f32.mrf.mxu0  ;;  %v9939_v52 = vpop.f32.mrf.mxu1 }
 0x101   : > { %1865 = vst.msk [vmem:[#allocation2 + $0x1c] sm:$0xf] %vm1857_vm2, %v9314_v46  ;;  %v9312_v54 = vpack.c.bf16 %v1582_v47, %v1582_v47  ;;  %v1587_v55 = vmax.f32 %v1531_v48, 0.0  ;;  %v1529_v56 = vadd.f32 %v11520_v50, %v1467_v49  ;;  %v1470_v57 = vmax.f32 %v9871_v51, %v9939_v52  ;;  %v11586_v51 = vld [vmem:[#allocation2 + $0x8] sm:$0xff]   ;;  %v10808_v52 = vld [vmem:[%s13712_s3 + $0x10] sm:$0xff]  }
 0x102   : > { %v734_v59 = vpop.f32.mrf.mxu0  ;;  %v1271_v60 = vpop.f32.mrf.mxu1  ;;  %v11572_v29 = vld [vmem:[#allocation2] sm:$0xff]  }
 0x103   : > { %1863 = vst.msk [vmem:[#allocation2 + $0x14] sm:$0xf] %vm1857_vm2, %v9312_v54  ;;  %v9317_v62 = vpack.c.bf16 %v1587_v55, %v1587_v55  ;;  %v1585_v63 = vmax.f32 %v1529_v56, 0.0  ;;  %v1532_v0 = vadd.f32 %v11520_v50, %v1470_v57  ;;  %v1468_v5 = vmax.f32 %v734_v59, %v1271_v60 }
 0x104   : > { %v9874_v6 = vpop.f32.mrf.mxu0  ;;  %v9942_v9 = vpop.f32.mrf.mxu1  ;;  %10049 = vmatmul.mubr.msk.bf16.gmra.mxu0 %vm576_vm1, %v10797_v53 }
 0x105   : > { %1868 = vst.msk [vmem:[#allocation2 + $0x28] sm:$0xf] %vm1857_vm2, %v9317_v62  ;;  %v9315_v10 = vpack.c.bf16 %v1585_v63, %v1585_v63  ;;  %v1588_v11 = vmax.f32 %v1532_v0, 0.0  ;;  %v1530_v12 = vadd.f32 %v11520_v50, %v1468_v5  ;;  %v1473_v13 = vmax.f32 %v9874_v6, %v9942_v9  ;;  %10064 = vmatprep.mubr.msk.bf16.mxu0 %vm576_vm1, %v10799_v58 }
 0x106   : > { %v747_v15 = vpop.f32.mrf.mxu0  ;;  %v1284_v16 = vpop.f32.mrf.mxu1 }
 0x107   : > { %1866 = vst.msk [vmem:[#allocation2 + $0x20] sm:$0xf] %vm1857_vm2, %v9315_v10  ;;  %v9318_v17 = vpack.c.bf16 %v1588_v11, %v1588_v11  ;;  %v1586_v1 = vmax.f32 %v1530_v12, 0.0  ;;  %v1535_v18 = vadd.f32 %v11520_v50, %v1473_v13  ;;  %v1471_v19 = vmax.f32 %v747_v15, %v1284_v16 }
 0x108   : > { %v9875_v20 = vpop.f32.mrf.mxu0  ;;  %v9943_v3 = vpop.f32.mrf.mxu1 }
 0x109   : > { %1869 = vst.msk [vmem:[#allocation2 + $0x2c] sm:$0xf] %vm1857_vm2, %v9318_v17  ;;  %v9316_v21 = vpack.c.bf16 %v1586_v1, %v1586_v1  ;;  %v1591_v22 = vmax.f32 %v1535_v18, 0.0  ;;  %v1533_v7 = vadd.f32 %v11520_v50, %v1471_v19  ;;  %v1474_v23 = vmax.f32 %v9875_v20, %v9943_v3  ;;  %v11607_v20 = vld [vmem:[#allocation2 + $0x18] sm:$0xff]  }
 0x10a   : > { %v750_v24 = vpop.f32.mrf.mxu0  ;;  %v1287_v25 = vpop.f32.mrf.mxu1  ;;  %v11594_v57 = vld [vmem:[#allocation2 + $0x10] sm:$0xff]  }
 0x10b   : > { %1867 = vst.msk [vmem:[#allocation2 + $0x24] sm:$0xf] %vm1857_vm2, %v9316_v21  ;;  %v9321_v8 = vpack.c.bf16 %v1591_v22, %v1591_v22  ;;  %v1589_v26 = vmax.f32 %v1533_v7, 0.0  ;;  %v1536_v27 = vadd.f32 %v11520_v50, %v1474_v23  ;;  %v1472_v28 = vmax.f32 %v750_v24, %v1287_v25 }
 0x10c   : > { %v9878_v30 = vpop.f32.mrf.mxu0  ;;  %v9946_v31 = vpop.f32.mrf.mxu1  ;;  %10065 = vmatmul.mubr.msk.bf16.vlgmr.msra.gmra.mxu0 %vm576_vm1, %v10800_v4 }
 0x10d   : > { %1872 = vst.msk [vmem:[#allocation2 + $0x38] sm:$0xf] %vm1857_vm2, %v9321_v8  ;;  %v9319_v32 = vpack.c.bf16 %v1589_v26, %v1589_v26  ;;  %v1592_v33 = vmax.f32 %v1536_v27, 0.0  ;;  %v1534_v34 = vadd.f32 %v11520_v50, %v1472_v28  ;;  %v1477_v35 = vmax.f32 %v9878_v30, %v9946_v31  ;;  %10121 = vmatpush3.bf16.msra.mxu0 %v11390_v61 }
 0x10e   : > { %10124 = vmatprep.mubr.msk.bf16.mxu0 %vm3499_vm3, %v11572_v29  ;;  %v763_v36 = vpop.f32.mrf.mxu0  ;;  %v1300_v37 = vpop.f32.mrf.mxu1  ;;  %10122 = vmatprep.subr.bf16.mxu0 %v11420_v14 }
 0x10f   : > { %1870 = vst.msk [vmem:[#allocation2 + $0x30] sm:$0xf] %vm1857_vm2, %v9319_v32  ;;  %v9322_v38 = vpack.c.bf16 %v1592_v33, %v1592_v33  ;;  %v1590_v39 = vmax.f32 %v1534_v34, 0.0  ;;  %v1539_v40 = vadd.f32 %v11520_v50, %v1477_v35  ;;  %v1475_v41 = vmax.f32 %v763_v36, %v1300_v37 }
 0x110   : > { %v9879_v42 = vpop.f32.mrf.mxu0  ;;  %v9947_v43 = vpop.f32.mrf.mxu1 }
 0x111   : > { %1873 = vst.msk [vmem:[#allocation2 + $0x3c] sm:$0xf] %vm1857_vm2, %v9322_v38  ;;  %v9320_v44 = vpack.c.bf16 %v1590_v39, %v1590_v39  ;;  %v1595_v45 = vmax.f32 %v1539_v40, 0.0  ;;  %v1537_v46 = vadd.f32 %v11520_v50, %v1475_v41  ;;  %v1478_v47 = vmax.f32 %v9879_v42, %v9947_v43  ;;  %10123 = vmatpush3.bf16.msra.mxu0 %v11420_v14 }
 0x112   : > { %v766_v48 = vpop.f32.mrf.mxu0  ;;  %v1303_v49 = vpop.f32.mrf.mxu1  ;;  %10144 = vmatprep.subr.bf16.mxu0 %v11431_v2 }
 0x113   : > { %1871 = vst.msk [vmem:[#allocation2 + $0x34] sm:$0xf] %vm1857_vm2, %v9320_v44  ;;  %v9325_v53 = vpack.c.bf16 %v1595_v45, %v1595_v45  ;;  %v1593_v54 = vmax.f32 %v1537_v46, 0.0  ;;  %v1540_v55 = vadd.f32 %v11520_v50, %v1478_v47  ;;  %v1476_v56 = vmax.f32 %v766_v48, %v1303_v49 }
 0x114   : > { %v9882_v58 = vpop.f32.mrf.mxu0  ;;  %v9950_v59 = vpop.f32.mrf.mxu1  ;;  %10125 = vmatmul.mubr.msk.bf16.vlgmr.msra.gmra.mxu0 %vm3499_vm3, %v11586_v51 }
 0x115   : > { %1876 = vst.msk [vmem:[#allocation2 + $0x48] sm:$0xf] %vm1857_vm2, %v9325_v53  ;;  %v9323_v60 = vpack.c.bf16 %v1593_v54, %v1593_v54  ;;  %v1596_v62 = vmax.f32 %v1540_v55, 0.0  ;;  %v1538_v63 = vadd.f32 %v11520_v50, %v1476_v56  ;;  %v1481_v0 = vmax.f32 %v9882_v58, %v9950_v59  ;;  %10128 = vmatprep.mubr.msk.bf16.mxu0 %vm3499_vm3, %v11594_v57 }
 0x116   : > { %10145 = vmatpush3.bf16.msra.mxu0 %v11431_v2  ;;  %v779_v5 = vpop.f32.mrf.mxu0  ;;  %v1316_v6 = vpop.f32.mrf.mxu1 }
 0x117   : > { %10146 = vmatprep.subr.bf16.mxu0 %v10808_v52  ;;  %1874 = vst.msk [vmem:[#allocation2 + $0x40] sm:$0xf] %vm1857_vm2, %v9323_v60  ;;  %v9326_v9 = vpack.c.bf16 %v1596_v62, %v1596_v62  ;;  %v1594_v10 = vmax.f32 %v1538_v63, 0.0  ;;  %v1543_v11 = vadd.f32 %v11520_v50, %v1481_v0  ;;  %v1479_v12 = vmax.f32 %v779_v5, %v1316_v6 }
 0x118   : > { %v9883_v13 = vpop.f32.mrf.mxu0  ;;  %v9951_v15 = vpop.f32.mrf.mxu1 }
 0x119   : > { %1877 = vst.msk [vmem:[#allocation2 + $0x4c] sm:$0xf] %vm1857_vm2, %v9326_v9  ;;  %v9324_v16 = vpack.c.bf16 %v1594_v10, %v1594_v10  ;;  %v1599_v17 = vmax.f32 %v1543_v11, 0.0  ;;  %v1541_v1 = vadd.f32 %v11520_v50, %v1479_v12  ;;  %v1482_v18 = vmax.f32 %v9883_v13, %v9951_v15  ;;  %v10809_v13 = vld [vmem:[#allocation2 + $0x20] sm:$0xff]  }
 0x11a   : > { %10147 = vmatpush3.bf16.msra.mxu0 %v10808_v52  ;;  %v782_v2 = vpop.f32.mrf.mxu0  ;;  %v1319_v19 = vpop.f32.mrf.mxu1 }
 0x11b   : > { %10168 = vmatprep.subr.bf16.mxu0 %v11390_v61  ;;  %1875 = vst.msk [vmem:[#allocation2 + $0x44] sm:$0xf] %vm1857_vm2, %v9324_v16  ;;  %v9329_v3 = vpack.c.bf16 %v1599_v17, %v1599_v17  ;;  %v1597_v4 = vmax.f32 %v1541_v1, 0.0  ;;  %v1544_v21 = vadd.f32 %v11520_v50, %v1482_v18  ;;  %v1480_v22 = vmax.f32 %v782_v2, %v1319_v19 }
 0x11c   : > { %v9886_v7 = vpop.f32.mrf.mxu0  ;;  %v9954_v23 = vpop.f32.mrf.mxu1  ;;  %10129 = vmatmul.mubr.msk.bf16.gmra.mxu0 %vm3499_vm3, %v11607_v20 }
 0x11d   : > { %1880 = vst.msk [vmem:[#allocation2 + $0x58] sm:$0xf] %vm1857_vm2, %v9329_v3  ;;  %v9327_v24 = vpack.c.bf16 %v1597_v4, %v1597_v4  ;;  %v1600_v25 = vmax.f32 %v1544_v21, 0.0  ;;  %v1542_v8 = vadd.f32 %v11520_v50, %v1480_v22  ;;  %v1485_v26 = vmax.f32 %v9886_v7, %v9954_v23  ;;  %10148 = vmatprep.mubr.msk.bf16.mxu0 %vm3499_vm3, %v11572_v29 }
 0x11e   : > { %v795_v27 = vpop.f32.mrf.mxu0  ;;  %v1332_v28 = vpop.f32.mrf.mxu1 }
 0x11f   : > { %1878 = vst.msk [vmem:[#allocation2 + $0x50] sm:$0xf] %vm1857_vm2, %v9327_v24  ;;  %v9330_v30 = vpack.c.bf16 %v1600_v25, %v1600_v25  ;;  %v1598_v31 = vmax.f32 %v1542_v8, 0.0  ;;  %v1547_v32 = vadd.f32 %v11520_v50, %v1485_v26  ;;  %v1483_v33 = vmax.f32 %v795_v27, %v1332_v28  ;;  %v10810_v28 = vld [vmem:[#allocation2 + $0x28] sm:$0xff]  }
 0x120   : > { %v9887_v34 = vpop.f32.mrf.mxu0  ;;  %v9955_v35 = vpop.f32.mrf.mxu1 }
 0x121   : > { %1881 = vst.msk [vmem:[#allocation2 + $0x5c] sm:$0xf] %vm1857_vm2, %v9330_v30  ;;  %v9328_v36 = vpack.c.bf16 %v1598_v31, %v1598_v31  ;;  %v1603_v37 = vmax.f32 %v1547_v32, 0.0  ;;  %v1545_v38 = vadd.f32 %v11520_v50, %v1483_v33  ;;  %v1486_v39 = vmax.f32 %v9887_v34, %v9955_v35  ;;  %v10811_v34 = vld [vmem:[#allocation2 + $0x30] sm:$0xff]  }
 0x122   : > { %v798_v40 = vpop.f32.mrf.mxu0  ;;  %v1335_v29 = vpop.f32.mrf.mxu1 }
 0x123   : > { %1879 = vst.msk [vmem:[#allocation2 + $0x54] sm:$0xf] %vm1857_vm2, %v9328_v36  ;;  %v9333_v41 = vpack.c.bf16 %v1603_v37, %v1603_v37  ;;  %v1601_v42 = vmax.f32 %v1545_v38, 0.0  ;;  %v1548_v43 = vadd.f32 %v11520_v50, %v1486_v39  ;;  %v1484_v44 = vmax.f32 %v798_v40, %v1335_v29  ;;  %v10976_v29 = vld [vmem:[%s13712_s3 + $0x28] sm:$0xff]  }
 0x124   : > { %v9890_v45 = vpop.f32.mrf.mxu0  ;;  %v9958_v46 = vpop.f32.mrf.mxu1  ;;  %10149 = vmatmul.mubr.msk.bf16.vlgmr.msra.gmra.mxu0 %vm3499_vm3, %v11586_v51 }
 0x125   : > { %1884 = vst.msk [vmem:[#allocation2 + $0x68] sm:$0xf] %vm1857_vm2, %v9333_v41  ;;  %v9331_v47 = vpack.c.bf16 %v1601_v42, %v1601_v42  ;;  %v1604_v48 = vmax.f32 %v1548_v43, 0.0  ;;  %v1546_v49 = vadd.f32 %v11520_v50, %v1484_v44  ;;  %v1489_v52 = vmax.f32 %v9890_v45, %v9958_v46  ;;  %10152 = vmatprep.mubr.msk.bf16.mxu0 %vm3499_vm3, %v11594_v57 }
 0x126   : > { %10169 = vmatpush3.bf16.msra.mxu0 %v11390_v61  ;;  %v811_v53 = vpop.f32.mrf.mxu0  ;;  %v1348_v54 = vpop.f32.mrf.mxu1 }
 0x127   : > { %10170 = vmatprep.subr.bf16.mxu0 %v11420_v14  ;;  %1882 = vst.msk [vmem:[#allocation2 + $0x60] sm:$0xf] %vm1857_vm2, %v9331_v47  ;;  %v9334_v55 = vpack.c.bf16 %v1604_v48, %v1604_v48  ;;  %v1602_v51 = vmax.f32 %v1546_v49, 0.0  ;;  %v1551_v56 = vadd.f32 %v11520_v50, %v1489_v52  ;;  %v1487_v58 = vmax.f32 %v811_v53, %v1348_v54 }
 0x128   : > { %v9891_v59 = vpop.f32.mrf.mxu0  ;;  %v9959_v60 = vpop.f32.mrf.mxu1 }
 0x129   : > { %1885 = vst.msk [vmem:[#allocation2 + $0x6c] sm:$0xf] %vm1857_vm2, %v9334_v55  ;;  %v9332_v62 = vpack.c.bf16 %v1602_v51, %v1602_v51  ;;  %v1607_v63 = vmax.f32 %v1551_v56, 0.0  ;;  %v1549_v57 = vadd.f32 %v11520_v50, %v1487_v58  ;;  %v1490_v0 = vmax.f32 %v9891_v59, %v9959_v60  ;;  %v10812_v56 = vld [vmem:[#allocation2 + $0x38] sm:$0xff]  }
 0x12a   : > { %10171 = vmatpush3.bf16.msra.mxu0 %v11420_v14  ;;  %v814_v5 = vpop.f32.mrf.mxu0  ;;  %v1351_v6 = vpop.f32.mrf.mxu1 }
 0x12b   : > { %10192 = vmatprep.subr.bf16.mxu0 %v11390_v61  ;;  %1883 = vst.msk [vmem:[#allocation2 + $0x64] sm:$0xf] %vm1857_vm2, %v9332_v62  ;;  %v9337_v9 = vpack.c.bf16 %v1607_v63, %v1607_v63  ;;  %v1605_v10 = vmax.f32 %v1549_v57, 0.0  ;;  %v1552_v11 = vadd.f32 %v11520_v50, %v1490_v0  ;;  %v1488_v12 = vmax.f32 %v814_v5, %v1351_v6 }
 0x12c   : > { %v9894_v15 = vpop.f32.mrf.mxu0  ;;  %v9962_v16 = vpop.f32.mrf.mxu1  ;;  %10153 = vmatmul.mubr.msk.bf16.gmra.mxu0 %vm3499_vm3, %v11607_v20 }
 0x12d   : > { %1888 = vst.msk [vmem:[#allocation2 + $0x78] sm:$0xf] %vm1857_vm2, %v9337_v9  ;;  %v9335_v17 = vpack.c.bf16 %v1605_v10, %v1605_v10  ;;  %v1608_v1 = vmax.f32 %v1552_v11, 0.0  ;;  %v1550_v18 = vadd.f32 %v11520_v50, %v1488_v12  ;;  %v1493_v61 = vmax.f32 %v9894_v15, %v9962_v16  ;;  %10172 = vmatprep.mubr.msk.bf16.mxu0 %vm3499_vm3, %v10809_v13 }
 0x12e   : > { %v827_v2 = vpop.f32.mrf.mxu0  ;;  %v1364_v19 = vpop.f32.mrf.mxu1 }
 0x12f   : > { %1886 = vst.msk [vmem:[#allocation2 + $0x70] sm:$0xf] %vm1857_vm2, %v9335_v17  ;;  %v9338_v3 = vpack.c.bf16 %v1608_v1, %v1608_v1  ;;  %v1606_v4 = vmax.f32 %v1550_v18, 0.0  ;;  %v1555_v21 = vadd.f32 %v11520_v50, %v1493_v61  ;;  %v1491_v22 = vmax.f32 %v827_v2, %v1364_v19 }
 0x130   : > { %v9895_v7 = vpop.f32.mrf.mxu0  ;;  %v9963_v20 = vpop.f32.mrf.mxu1 }
 0x131   : > { %1889 = vst.msk [vmem:[#allocation2 + $0x7c] sm:$0xf] %vm1857_vm2, %v9338_v3  ;;  %v9336_v23 = vpack.c.bf16 %v1606_v4, %v1606_v4  ;;  %v1611_v24 = vmax.f32 %v1555_v21, 0.0  ;;  %v1553_v25 = vadd.f32 %v11520_v50, %v1491_v22  ;;  %v1494_v8 = vmax.f32 %v9895_v7, %v9963_v20 }
 0x132   : > { %v830_v26 = vpop.f32.mrf.mxu0  ;;  %v1367_v27 = vpop.f32.mrf.mxu1 }
 0x133   : > { %1887 = vst.msk [vmem:[#allocation2 + $0x74] sm:$0xf] %vm1857_vm2, %v9336_v23  ;;  %v9341_v30 = vpack.c.bf16 %v1611_v24, %v1611_v24  ;;  %v1609_v31 = vmax.f32 %v1553_v25, 0.0  ;;  %v1556_v32 = vadd.f32 %v11520_v50, %v1494_v8  ;;  %v1492_v33 = vmax.f32 %v830_v26, %v1367_v27 }
 0x134   : > { %v9898_v35 = vpop.f32.mrf.mxu0  ;;  %v9966_v36 = vpop.f32.mrf.mxu1  ;;  %10173 = vmatmul.mubr.msk.bf16.vlgmr.msra.gmra.mxu0 %vm3499_vm3, %v10810_v28 }
 0x135   : > { %1892 = vst.msk [vmem:[#allocation2 + $0x88] sm:$0xf] %vm1857_vm2, %v9341_v30  ;;  %v9339_v37 = vpack.c.bf16 %v1609_v31, %v1609_v31  ;;  %v1612_v38 = vmax.f32 %v1556_v32, 0.0  ;;  %v1554_v39 = vadd.f32 %v11520_v50, %v1492_v33  ;;  %v1497_v40 = vmax.f32 %v9898_v35, %v9966_v36  ;;  %10176 = vmatprep.mubr.msk.bf16.mxu0 %vm3499_vm3, %v10811_v34 }
 0x136   : > { %10193 = vmatpush3.bf16.msra.mxu0 %v10976_v29  ;;  %v843_v41 = vpop.f32.mrf.mxu0  ;;  %v1380_v42 = vpop.f32.mrf.mxu1 }
 0x137   : > { %10194 = vmatprep.subr.bf16.mxu0 %v11420_v14  ;;  %1890 = vst.msk [vmem:[#allocation2 + $0x80] sm:$0xf] %vm1857_vm2, %v9339_v37  ;;  %v9342_v43 = vpack.c.bf16 %v1612_v38, %v1612_v38  ;;  %v1610_v44 = vmax.f32 %v1554_v39, 0.0  ;;  %v1559_v45 = vadd.f32 %v11520_v50, %v1497_v40  ;;  %v1495_v46 = vmax.f32 %v843_v41, %v1380_v42 }
 0x138   : > { %v9899_v47 = vpop.f32.mrf.mxu0  ;;  %v9967_v48 = vpop.f32.mrf.mxu1 }
 0x139   : > { %1893 = vst.msk [vmem:[#allocation2 + $0x8c] sm:$0xf] %vm1857_vm2, %v9342_v43  ;;  %v9340_v49 = vpack.c.bf16 %v1610_v44, %v1610_v44  ;;  %v1615_v52 = vmax.f32 %v1559_v45, 0.0  ;;  %v1557_v53 = vadd.f32 %v11520_v50, %v1495_v46  ;;  %v1498_v54 = vmax.f32 %v9899_v47, %v9967_v48 }
 0x13a   : > { %10195 = vmatpush3.bf16.msra.mxu0 %v11420_v14  ;;  %v846_v55 = vpop.f32.mrf.mxu0  ;;  %v1383_v51 = vpop.f32.mrf.mxu1 }
 0x13b   : > { %1891 = vst.msk [vmem:[#allocation2 + $0x84] sm:$0xf] %vm1857_vm2, %v9340_v49  ;;  %v9345_v58 = vpack.c.bf16 %v1615_v52, %v1615_v52  ;;  %v1613_v59 = vmax.f32 %v1557_v53, 0.0  ;;  %v1560_v60 = vadd.f32 %v11520_v50, %v1498_v54  ;;  %v1496_v62 = vmax.f32 %v846_v55, %v1383_v51 }
 0x13c   : > { %v9902_v63 = vpop.f32.mrf.mxu0  ;;  %v9970_v57 = vpop.f32.mrf.mxu1  ;;  %10177 = vmatmul.mubr.msk.bf16.gmra.mxu0 %vm3499_vm3, %v10812_v56 }
 0x13d   : > { %1896 = vst.msk [vmem:[#allocation2 + $0x98] sm:$0xf] %vm1857_vm2, %v9345_v58  ;;  %v9343_v0 = vpack.c.bf16 %v1613_v59, %v1613_v59  ;;  %v1616_v5 = vmax.f32 %v1560_v60, 0.0  ;;  %v1558_v14 = vadd.f32 %v11520_v50, %v1496_v62  ;;  %v1501_v6 = vmax.f32 %v9902_v63, %v9970_v57 }
 0x13e   : > { %v859_v9 = vpop.f32.mrf.mxu0  ;;  %v1396_v10 = vpop.f32.mrf.mxu1 }
 0x13f   : > { %1894 = vst.msk [vmem:[#allocation2 + $0x90] sm:$0xf] %vm1857_vm2, %v9343_v0  ;;  %v9346_v11 = vpack.c.bf16 %v1616_v5, %v1616_v5  ;;  %v1614_v12 = vmax.f32 %v1558_v14, 0.0  ;;  %v1563_v13 = vadd.f32 %v11520_v50, %v1501_v6  ;;  %v1499_v15 = vmax.f32 %v859_v9, %v1396_v10 }
 0x140   : > { %v9903_v16 = vpop.f32.mrf.mxu0  ;;  %v9971_v17 = vpop.f32.mrf.mxu1 }
 0x141   : > { %1897 = vst.msk [vmem:[#allocation2 + $0x9c] sm:$0xf] %vm1857_vm2, %v9346_v11  ;;  %v9344_v1 = vpack.c.bf16 %v1614_v12, %v1614_v12  ;;  %v1619_v18 = vmax.f32 %v1563_v13, 0.0  ;;  %v1561_v61 = vadd.f32 %v11520_v50, %v1499_v15  ;;  %v1502_v2 = vmax.f32 %v9903_v16, %v9971_v17 }
 0x142   : > { %v862_v19 = vpop.f32.mrf.mxu0  ;;  %v1399_v3 = vpop.f32.mrf.mxu1 }
 0x143   : > { %1895 = vst.msk [vmem:[#allocation2 + $0x94] sm:$0xf] %vm1857_vm2, %v9344_v1  ;;  %v9349_v4 = vpack.c.bf16 %v1619_v18, %v1619_v18  ;;  %v1617_v21 = vmax.f32 %v1561_v61, 0.0  ;;  %v1564_v22 = vadd.f32 %v11520_v50, %v1502_v2  ;;  %v1500_v7 = vmax.f32 %v862_v19, %v1399_v3 }
 0x144   : > { %v9906_v20 = vpop.f32.mrf.mxu0  ;;  %v9974_v23 = vpop.f32.mrf.mxu1 }
 0x145   : > { %1900 = vst.msk [vmem:[#allocation2 + $0xa8] sm:$0xf] %vm1857_vm2, %v9349_v4  ;;  %v9347_v24 = vpack.c.bf16 %v1617_v21, %v1617_v21  ;;  %v1620_v25 = vmax.f32 %v1564_v22, 0.0  ;;  %v1562_v8 = vadd.f32 %v11520_v50, %v1500_v7  ;;  %v1505_v26 = vmax.f32 %v9906_v20, %v9974_v23 }
 0x146   : > { %v875_v27 = vpop.f32.mrf.mxu0  ;;  %v1412_v28 = vpop.f32.mrf.mxu1 }
 0x147   : > { %1898 = vst.msk [vmem:[#allocation2 + $0xa0] sm:$0xf] %vm1857_vm2, %v9347_v24  ;;  %v9350_v30 = vpack.c.bf16 %v1620_v25, %v1620_v25  ;;  %v1618_v31 = vmax.f32 %v1562_v8, 0.0  ;;  %v1567_v32 = vadd.f32 %v11520_v50, %v1505_v26  ;;  %v1503_v33 = vmax.f32 %v875_v27, %v1412_v28 }
 0x148   : > { %v9907_v34 = vpop.f32.mrf.mxu0  ;;  %v9975_v35 = vpop.f32.mrf.mxu1 }
 0x149   : > { %1901 = vst.msk [vmem:[#allocation2 + $0xac] sm:$0xf] %vm1857_vm2, %v9350_v30  ;;  %v9348_v36 = vpack.c.bf16 %v1618_v31, %v1618_v31  ;;  %v1623_v37 = vmax.f32 %v1567_v32, 0.0  ;;  %v1565_v38 = vadd.f32 %v11520_v50, %v1503_v33  ;;  %v1506_v39 = vmax.f32 %v9907_v34, %v9975_v35  ;;  %v11702_v31 = vld [vmem:[%s13712_s3 + $0x8] sm:$0xff]  }
 0x14a   : > { %v878_v40 = vpop.f32.mrf.mxu0  ;;  %v1415_v29 = vpop.f32.mrf.mxu1  ;;  %10216 = vmatprep.subr.bf16.mxu0 %v11702_v31 }
 0x14b   : > { %1899 = vst.msk [vmem:[#allocation2 + $0xa4] sm:$0xf] %vm1857_vm2, %v9348_v36  ;;  %v9353_v41 = vpack.c.bf16 %v1623_v37, %v1623_v37  ;;  %v1621_v42 = vmax.f32 %v1565_v38, 0.0  ;;  %v1568_v43 = vadd.f32 %v11520_v50, %v1506_v39  ;;  %v1504_v44 = vmax.f32 %v878_v40, %v1415_v29 }
 0x14c   : > { %v9910_v45 = vpop.f32.mrf.mxu0  ;;  %v9978_v46 = vpop.f32.mrf.mxu1 }
 0x14d   : > { %1904 = vst.msk [vmem:[#allocation2 + $0xb8] sm:$0xf] %vm1857_vm2, %v9353_v41  ;;  %v9351_v47 = vpack.c.bf16 %v1621_v42, %v1621_v42  ;;  %v1624_v48 = vmax.f32 %v1568_v43, 0.0  ;;  %v1566_v49 = vadd.f32 %v11520_v50, %v1504_v44  ;;  %v1509_v52 = vmax.f32 %v9910_v45, %v9978_v46 }
 0x14e   : > { %v891_v53 = vpop.f32.mrf.mxu0  ;;  %v1428_v54 = vpop.f32.mrf.mxu1 }
 0x14f   : > { %1902 = vst.msk [vmem:[#allocation2 + $0xb0] sm:$0xf] %vm1857_vm2, %v9351_v47  ;;  %v9354_v55 = vpack.c.bf16 %v1624_v48, %v1624_v48  ;;  %v1622_v51 = vmax.f32 %v1566_v49, 0.0  ;;  %v1571_v56 = vadd.f32 %v11520_v50, %v1509_v52  ;;  %v1507_v58 = vmax.f32 %v891_v53, %v1428_v54  ;;  %v11721_v49 = vld [vmem:[%s13711_s2] ss:$0 sm:$0xff] }
 0x150   : > { %v9911_v59 = vpop.f32.mrf.mxu0  ;;  %v9979_v60 = vpop.f32.mrf.mxu1 }
 0x151   : > { %1905 = vst.msk [vmem:[#allocation2 + $0xbc] sm:$0xf] %vm1857_vm2, %v9354_v55  ;;  %v9352_v62 = vpack.c.bf16 %v1622_v51, %v1622_v51  ;;  %v1627_v63 = vmax.f32 %v1571_v56, 0.0  ;;  %v1569_v57 = vadd.f32 %v11520_v50, %v1507_v58  ;;  %v1510_v0 = vmax.f32 %v9911_v59, %v9979_v60 }
 0x152   : > { %v894_v5 = vpop.f32.mrf.mxu0  ;;  %v1431_v14 = vpop.f32.mrf.mxu1 }
 0x153   : > { %1903 = vst.msk [vmem:[#allocation2 + $0xb4] sm:$0xf] %vm1857_vm2, %v9352_v62  ;;  %v9357_v6 = vpack.c.bf16 %v1627_v63, %v1627_v63  ;;  %v1625_v9 = vmax.f32 %v1569_v57, 0.0  ;;  %v1572_v10 = vadd.f32 %v11520_v50, %v1510_v0  ;;  %v1508_v11 = vmax.f32 %v894_v5, %v1431_v14 }
 0x154   : > { %v9914_v12 = vpop.f32.mrf.mxu0  ;;  %v9982_v13 = vpop.f32.mrf.mxu1 }
 0x155   : > { %1908 = vst.msk [vmem:[#allocation2 + $0xc8] sm:$0xf] %vm1857_vm2, %v9357_v6  ;;  %v9355_v15 = vpack.c.bf16 %v1625_v9, %v1625_v9  ;;  %v1628_v16 = vmax.f32 %v1572_v10, 0.0  ;;  %v1570_v17 = vadd.f32 %v11520_v50, %v1508_v11  ;;  %v1513_v1 = vmax.f32 %v9914_v12, %v9982_v13 }
 0x156   : > { %v907_v18 = vpop.f32.mrf.mxu0  ;;  %v1444_v61 = vpop.f32.mrf.mxu1 }
 0x157   : > { %1906 = vst.msk [vmem:[#allocation2 + $0xc0] sm:$0xf] %vm1857_vm2, %v9355_v15  ;;  %v9358_v2 = vpack.c.bf16 %v1628_v16, %v1628_v16  ;;  %v1626_v19 = vmax.f32 %v1570_v17, 0.0  ;;  %v1575_v3 = vadd.f32 %v11520_v50, %v1513_v1  ;;  %v1511_v4 = vmax.f32 %v907_v18, %v1444_v61 }
 0x158   : > { %v9915_v21 = vpop.f32.mrf.mxu0  ;;  %v9983_v22 = vpop.f32.mrf.mxu1 }
 0x159   : > { %1909 = vst.msk [vmem:[#allocation2 + $0xcc] sm:$0xf] %vm1857_vm2, %v9358_v2  ;;  %v9356_v7 = vpack.c.bf16 %v1626_v19, %v1626_v19  ;;  %v1631_v20 = vmax.f32 %v1575_v3, 0.0  ;;  %v1573_v23 = vadd.f32 %v11520_v50, %v1511_v4  ;;  %v1514_v24 = vmax.f32 %v9915_v21, %v9983_v22 }
 0x15a   : > { %v910_v25 = vpop.f32.mrf.mxu0  ;;  %v1447_v8 = vpop.f32.mrf.mxu1 }
 0x15b   : > { %1907 = vst.msk [vmem:[#allocation2 + $0xc4] sm:$0xf] %vm1857_vm2, %v9356_v7  ;;  %v9361_v26 = vpack.c.bf16 %v1631_v20, %v1631_v20  ;;  %v1629_v27 = vmax.f32 %v1573_v23, 0.0  ;;  %v1576_v28 = vadd.f32 %v11520_v50, %v1514_v24  ;;  %v1512_v30 = vmax.f32 %v910_v25, %v1447_v8 }
 0x15c   : > { %v11704_v32 = vpop.f32.mrf.mxu0  ;;  %v10070_v33 = vpop.f32.mrf.mxu1 }
 0x15d   : > { %1912 = vst.msk [vmem:[#allocation2 + $0xd8] sm:$0xf] %vm1857_vm2, %v9361_v26  ;;  %v9359_v34 = vpack.c.bf16 %v1629_v27, %v1629_v27  ;;  %v1632_v35 = vmax.f32 %v1576_v28, 0.0  ;;  %v1574_v36 = vadd.f32 %v11520_v50, %v1512_v30 }
 0x15e   : > { %v11709_v37 = vpop.f32.mrf.mxu0  ;;  %v2781_v38 = vpop.f32.mrf.mxu1 }
 0x15f   : > { %1910 = vst.msk [vmem:[#allocation2 + $0xd0] sm:$0xf] %vm1857_vm2, %v9359_v34  ;;  %v9362_v39 = vpack.c.bf16 %v1632_v35, %v1632_v35  ;;  %v1630_v40 = vmax.f32 %v1574_v36, 0.0 }
 0x160   : > { %v11712_v29 = vpop.f32.mrf.mxu0  ;;  %v10071_v41 = vpop.f32.mrf.mxu1 }
 0x161   : > { %1913 = vst.msk [vmem:[#allocation2 + $0xdc] sm:$0xf] %vm1857_vm2, %v9362_v39  ;;  %v9360_v42 = vpack.c.bf16 %v1630_v40, %v1630_v40 }
 0x162   : > { %v11715_v43 = vpop.f32.mrf.mxu0  ;;  %v2784_v44 = vpop.f32.mrf.mxu1 }
 0x163   : > { %1911 = vst.msk [vmem:[#allocation2 + $0xd4] sm:$0xf] %vm1857_vm2, %v9360_v42 }
 0x164   : > { %v10002_v50 = vpop.f32.mrf.mxu0  ;;  %v10074_v45 = vpop.f32.mrf.mxu1 }
 0x165   : > { %v2994_v46 = vmax.f32 %v10002_v50, %v10070_v33 }
 0x166   : > { %v2244_v47 = vpop.f32.mrf.mxu0  ;;  %v2797_v48 = vpop.f32.mrf.mxu1 }
 0x167   : > { %v3050_v52 = vadd.f32 %v11721_v49, %v2994_v46  ;;  %v2992_v53 = vmax.f32 %v2244_v47, %v2781_v38 }
 0x168   : > { %v10003_v54 = vpop.f32.mrf.mxu0  ;;  %v10075_v55 = vpop.f32.mrf.mxu1 }
 0x169   : > { %v3106_v51 = vmax.f32 %v3050_v52, 0.0  ;;  %v3048_v56 = vadd.f32 %v11721_v49, %v2992_v53  ;;  %v2995_v58 = vmax.f32 %v10003_v54, %v10071_v41 }
 0x16a   : > { %v2247_v59 = vpop.f32.mrf.mxu0  ;;  %v2800_v60 = vpop.f32.mrf.mxu1 }
 0x16b   : > { %v9369_v62 = vpack.c.bf16 %v3106_v51, %v3106_v51  ;;  %v3104_v63 = vmax.f32 %v3048_v56, 0.0  ;;  %v3051_v57 = vadd.f32 %v11721_v49, %v2995_v58  ;;  %v2993_v0 = vmax.f32 %v2247_v59, %v2784_v44 }
 0x16c   : > { %v10006_v5 = vpop.f32.mrf.mxu0  ;;  %v10078_v14 = vpop.f32.mrf.mxu1 }
 0x16d   : > { %3386 = vst.msk [vmem:[#allocation3 + $0x18] sm:$0xf] %vm1857_vm2, %v9369_v62  ;;  %v9367_v6 = vpack.c.bf16 %v3104_v63, %v3104_v63  ;;  %v3107_v9 = vmax.f32 %v3051_v57, 0.0  ;;  %v3049_v10 = vadd.f32 %v11721_v49, %v2993_v0  ;;  %v2998_v11 = vmax.f32 %v10006_v5, %v10074_v45 }
 0x16e   : > { %v2260_v12 = vpop.f32.mrf.mxu0  ;;  %v2813_v13 = vpop.f32.mrf.mxu1 }
 0x16f   : > { %3384 = vst.msk [vmem:[#allocation3 + $0x10] sm:$0xf] %vm1857_vm2, %v9367_v6  ;;  %v9370_v15 = vpack.c.bf16 %v3107_v9, %v3107_v9  ;;  %v3105_v16 = vmax.f32 %v3049_v10, 0.0  ;;  %v3054_v17 = vadd.f32 %v11721_v49, %v2998_v11  ;;  %v2996_v1 = vmax.f32 %v2260_v12, %v2797_v48 }
 0x170   : > { %v10007_v18 = vpop.f32.mrf.mxu0  ;;  %v10079_v61 = vpop.f32.mrf.mxu1 }
 0x171   : > { %3387 = vst.msk [vmem:[#allocation3 + $0x1c] sm:$0xf] %vm1857_vm2, %v9370_v15  ;;  %v9368_v2 = vpack.c.bf16 %v3105_v16, %v3105_v16  ;;  %v3110_v19 = vmax.f32 %v3054_v17, 0.0  ;;  %v3052_v3 = vadd.f32 %v11721_v49, %v2996_v1  ;;  %v2999_v4 = vmax.f32 %v10007_v18, %v10075_v55 }
 0x172   : > { %v2263_v21 = vpop.f32.mrf.mxu0  ;;  %v2816_v22 = vpop.f32.mrf.mxu1 }
 0x173   : > { %3385 = vst.msk [vmem:[#allocation3 + $0x14] sm:$0xf] %vm1857_vm2, %v9368_v2  ;;  %v9373_v7 = vpack.c.bf16 %v3110_v19, %v3110_v19  ;;  %v3108_v20 = vmax.f32 %v3052_v3, 0.0  ;;  %v3055_v23 = vadd.f32 %v11721_v49, %v2999_v4  ;;  %v2997_v24 = vmax.f32 %v2263_v21, %v2800_v60  ;;  %v11753_v3 = vld [vmem:[%s13712_s3] sm:$0xff]  }
 0x174   : > { %v10010_v25 = vpop.f32.mrf.mxu0  ;;  %v10082_v8 = vpop.f32.mrf.mxu1 }
 0x175   : > { %3390 = vst.msk [vmem:[#allocation3 + $0x28] sm:$0xf] %vm1857_vm2, %v9373_v7  ;;  %v9371_v26 = vpack.c.bf16 %v3108_v20, %v3108_v20  ;;  %v3111_v27 = vmax.f32 %v3055_v23, 0.0  ;;  %v3053_v28 = vadd.f32 %v11721_v49, %v2997_v24  ;;  %v3002_v30 = vmax.f32 %v10010_v25, %v10078_v14 }
 0x176   : > { %v2276_v33 = vpop.f32.mrf.mxu0  ;;  %v2829_v34 = vpop.f32.mrf.mxu1 }
 0x177   : > { %3388 = vst.msk [vmem:[#allocation3 + $0x20] sm:$0xf] %vm1857_vm2, %v9371_v26  ;;  %v9374_v35 = vpack.c.bf16 %v3111_v27, %v3111_v27  ;;  %v3109_v36 = vmax.f32 %v3053_v28, 0.0  ;;  %v3058_v38 = vadd.f32 %v11721_v49, %v3002_v30  ;;  %v3000_v39 = vmax.f32 %v2276_v33, %v2813_v13 }
 0x178   : > { %v10011_v40 = vpop.f32.mrf.mxu0  ;;  %v10083_v41 = vpop.f32.mrf.mxu1 }
 0x179   : > { %3391 = vst.msk [vmem:[#allocation3 + $0x2c] sm:$0xf] %vm1857_vm2, %v9374_v35  ;;  %v9372_v42 = vpack.c.bf16 %v3109_v36, %v3109_v36  ;;  %v3114_v44 = vmax.f32 %v3058_v38, 0.0  ;;  %v3056_v50 = vadd.f32 %v11721_v49, %v3000_v39  ;;  %v3003_v45 = vmax.f32 %v10011_v40, %v10079_v61 }
 0x17a   : > { %v2279_v46 = vpop.f32.mrf.mxu0  ;;  %v2832_v47 = vpop.f32.mrf.mxu1 }
 0x17b   : > { %3389 = vst.msk [vmem:[#allocation3 + $0x24] sm:$0xf] %vm1857_vm2, %v9372_v42  ;;  %v9377_v48 = vpack.c.bf16 %v3114_v44, %v3114_v44  ;;  %v3112_v52 = vmax.f32 %v3056_v50, 0.0  ;;  %v3059_v53 = vadd.f32 %v11721_v49, %v3003_v45  ;;  %v3001_v54 = vmax.f32 %v2279_v46, %v2816_v22 }
 0x17c   : > { %v10014_v55 = vpop.f32.mrf.mxu0  ;;  %v10086_v51 = vpop.f32.mrf.mxu1 }
 0x17d   : > { %3394 = vst.msk [vmem:[#allocation3 + $0x38] sm:$0xf] %vm1857_vm2, %v9377_v48  ;;  %v9375_v56 = vpack.c.bf16 %v3112_v52, %v3112_v52  ;;  %v3115_v58 = vmax.f32 %v3059_v53, 0.0  ;;  %v3057_v59 = vadd.f32 %v11721_v49, %v3001_v54  ;;  %v3006_v60 = vmax.f32 %v10014_v55, %v10082_v8 }
 0x17e   : > { %v2292_v62 = vpop.f32.mrf.mxu0  ;;  %v2845_v63 = vpop.f32.mrf.mxu1 }
 0x17f   : > { %3392 = vst.msk [vmem:[#allocation3 + $0x30] sm:$0xf] %vm1857_vm2, %v9375_v56  ;;  %v9378_v57 = vpack.c.bf16 %v3115_v58, %v3115_v58  ;;  %v3113_v0 = vmax.f32 %v3057_v59, 0.0  ;;  %v3062_v5 = vadd.f32 %v11721_v49, %v3006_v60  ;;  %v3004_v14 = vmax.f32 %v2292_v62, %v2829_v34 }
 0x180   : > { %v10015_v6 = vpop.f32.mrf.mxu0  ;;  %v10087_v9 = vpop.f32.mrf.mxu1  ;;  %v10814_v19 = vld [vmem:[#allocation3 + $0x28] sm:$0xff]  }
 0x181   : > { %3395 = vst.msk [vmem:[#allocation3 + $0x3c] sm:$0xf] %vm1857_vm2, %v9378_v57  ;;  %v9376_v10 = vpack.c.bf16 %v3113_v0, %v3113_v0  ;;  %v3118_v11 = vmax.f32 %v3062_v5, 0.0  ;;  %v3060_v12 = vadd.f32 %v11721_v49, %v3004_v14  ;;  %v3007_v13 = vmax.f32 %v10015_v6, %v10083_v41 }
 0x182   : > { %v2295_v15 = vpop.f32.mrf.mxu0  ;;  %v10813_v16 = vld [vmem:[#allocation3 + $0x20] sm:$0xff]   ;;  %v2848_v17 = vpop.f32.mrf.mxu1 }
 0x183   : > { %3393 = vst.msk [vmem:[#allocation3 + $0x34] sm:$0xf] %vm1857_vm2, %v9376_v10  ;;  %v9381_v1 = vpack.c.bf16 %v3118_v11, %v3118_v11  ;;  %v3116_v18 = vmax.f32 %v3060_v12, 0.0  ;;  %v3063_v61 = vadd.f32 %v11721_v49, %v3007_v13  ;;  %v3005_v2 = vmax.f32 %v2295_v15, %v2832_v47  ;;  %10196 = vmatprep.mubr.msk.bf16.mxu0 %vm3499_vm3, %v10813_v16 }
 0x184   : > { %v10018_v4 = vpop.f32.mrf.mxu0  ;;  %v10090_v21 = vpop.f32.mrf.mxu1  ;;  %10197 = vmatmul.mubr.msk.bf16.vlgmr.msra.gmra.mxu0 %vm3499_vm3, %v10814_v19 }
 0x185   : > { %3398 = vst.msk [vmem:[#allocation3 + $0x48] sm:$0xf] %vm1857_vm2, %v9381_v1  ;;  %v9379_v22 = vpack.c.bf16 %v3116_v18, %v3116_v18  ;;  %v3119_v7 = vmax.f32 %v3063_v61, 0.0  ;;  %v3061_v20 = vadd.f32 %v11721_v49, %v3005_v2  ;;  %v3010_v23 = vmax.f32 %v10018_v4, %v10086_v51  ;;  %10217 = vmatpush3.bf16.msra.mxu0 %v11702_v31 }
 0x186   : > { %v2308_v24 = vpop.f32.mrf.mxu0  ;;  %v2861_v25 = vpop.f32.mrf.mxu1  ;;  %10218 = vmatprep.subr.bf16.mxu0 %v11753_v3 }
 0x187   : > { %3396 = vst.msk [vmem:[#allocation3 + $0x40] sm:$0xf] %vm1857_vm2, %v9379_v22  ;;  %v9382_v8 = vpack.c.bf16 %v3119_v7, %v3119_v7  ;;  %v3117_v26 = vmax.f32 %v3061_v20, 0.0  ;;  %v3066_v27 = vadd.f32 %v11721_v49, %v3010_v23  ;;  %v3008_v28 = vmax.f32 %v2308_v24, %v2845_v63 }
 0x188   : > { %v10019_v30 = vpop.f32.mrf.mxu0  ;;  %v10091_v33 = vpop.f32.mrf.mxu1  ;;  %v10816_v46 = vld [vmem:[#allocation3 + $0x38] sm:$0xff]  }
 0x189   : > { %3399 = vst.msk [vmem:[#allocation3 + $0x4c] sm:$0xf] %vm1857_vm2, %v9382_v8  ;;  %v9380_v34 = vpack.c.bf16 %v3117_v26, %v3117_v26  ;;  %v3122_v35 = vmax.f32 %v3066_v27, 0.0  ;;  %v3064_v36 = vadd.f32 %v11721_v49, %v3008_v28  ;;  %v3011_v38 = vmax.f32 %v10019_v30, %v10087_v9  ;;  %10219 = vmatpush3.bf16.msra.mxu0 %v11753_v3 }
 0x18a   : > { %v2311_v39 = vpop.f32.mrf.mxu0  ;;  %v10815_v40 = vld [vmem:[#allocation3 + $0x30] sm:$0xff]   ;;  %v2864_v41 = vpop.f32.mrf.mxu1 }
 0x18b   : > { %3397 = vst.msk [vmem:[#allocation3 + $0x44] sm:$0xf] %vm1857_vm2, %v9380_v34  ;;  %v9385_v42 = vpack.c.bf16 %v3122_v35, %v3122_v35  ;;  %v3120_v44 = vmax.f32 %v3064_v36, 0.0  ;;  %v3067_v50 = vadd.f32 %v11721_v49, %v3011_v38  ;;  %v3009_v45 = vmax.f32 %v2311_v39, %v2848_v17  ;;  %10200 = vmatprep.mubr.msk.bf16.mxu0 %vm3499_vm3, %v10815_v40 }
 0x18c   : > { %v10022_v47 = vpop.f32.mrf.mxu0  ;;  %v10094_v48 = vpop.f32.mrf.mxu1  ;;  %10201 = vmatmul.mubr.msk.bf16.gmra.mxu0 %vm3499_vm3, %v10816_v46 }
 0x18d   : > { %3402 = vst.msk [vmem:[#allocation3 + $0x58] sm:$0xf] %vm1857_vm2, %v9385_v42  ;;  %v9383_v52 = vpack.c.bf16 %v3120_v44, %v3120_v44  ;;  %v3123_v53 = vmax.f32 %v3067_v50, 0.0  ;;  %v3065_v54 = vadd.f32 %v11721_v49, %v3009_v45  ;;  %v3014_v55 = vmax.f32 %v10022_v47, %v10090_v21 }
 0x18e   : > { %v2324_v51 = vpop.f32.mrf.mxu0  ;;  %v2877_v56 = vpop.f32.mrf.mxu1 }
 0x18f   : > { %3400 = vst.msk [vmem:[#allocation3 + $0x50] sm:$0xf] %vm1857_vm2, %v9383_v52  ;;  %v9386_v58 = vpack.c.bf16 %v3123_v53, %v3123_v53  ;;  %v3121_v59 = vmax.f32 %v3065_v54, 0.0  ;;  %v3070_v60 = vadd.f32 %v11721_v49, %v3014_v55  ;;  %v3012_v62 = vmax.f32 %v2324_v51, %v2861_v25 }
 0x190   : > { %v10023_v63 = vpop.f32.mrf.mxu0  ;;  %v10095_v57 = vpop.f32.mrf.mxu1 }
 0x191   : > { %3403 = vst.msk [vmem:[#allocation3 + $0x5c] sm:$0xf] %vm1857_vm2, %v9386_v58  ;;  %v9384_v0 = vpack.c.bf16 %v3121_v59, %v3121_v59  ;;  %v3126_v5 = vmax.f32 %v3070_v60, 0.0  ;;  %v3068_v14 = vadd.f32 %v11721_v49, %v3012_v62  ;;  %v3015_v6 = vmax.f32 %v10023_v63, %v10091_v33 }
 0x192   : > { %v2327_v9 = vpop.f32.mrf.mxu0  ;;  %v2880_v10 = vpop.f32.mrf.mxu1 }
 0x193   : > { %3401 = vst.msk [vmem:[#allocation3 + $0x54] sm:$0xf] %vm1857_vm2, %v9384_v0  ;;  %v9389_v11 = vpack.c.bf16 %v3126_v5, %v3126_v5  ;;  %v3124_v12 = vmax.f32 %v3068_v14, 0.0  ;;  %v3071_v13 = vadd.f32 %v11721_v49, %v3015_v6  ;;  %v3013_v15 = vmax.f32 %v2327_v9, %v2864_v41 }
 0x194   : > { %v10026_v16 = vpop.f32.mrf.mxu0  ;;  %v10098_v17 = vpop.f32.mrf.mxu1 }
 0x195   : > { %3406 = vst.msk [vmem:[#allocation3 + $0x68] sm:$0xf] %vm1857_vm2, %v9389_v11  ;;  %v9387_v1 = vpack.c.bf16 %v3124_v12, %v3124_v12  ;;  %v3127_v18 = vmax.f32 %v3071_v13, 0.0  ;;  %v3069_v61 = vadd.f32 %v11721_v49, %v3013_v15  ;;  %v3018_v2 = vmax.f32 %v10026_v16, %v10094_v48 }
 0x196   : > { %v2340_v19 = vpop.f32.mrf.mxu0  ;;  %v2893_v4 = vpop.f32.mrf.mxu1 }
 0x197   : > { %3404 = vst.msk [vmem:[#allocation3 + $0x60] sm:$0xf] %vm1857_vm2, %v9387_v1  ;;  %v9390_v21 = vpack.c.bf16 %v3127_v18, %v3127_v18  ;;  %v3125_v22 = vmax.f32 %v3069_v61, 0.0  ;;  %v3074_v7 = vadd.f32 %v11721_v49, %v3018_v2  ;;  %v3016_v20 = vmax.f32 %v2340_v19, %v2877_v56 }
 0x198   : > { %v10027_v23 = vpop.f32.mrf.mxu0  ;;  %v10099_v24 = vpop.f32.mrf.mxu1 }
 0x199   : > { %3407 = vst.msk [vmem:[#allocation3 + $0x6c] sm:$0xf] %vm1857_vm2, %v9390_v21  ;;  %v9388_v25 = vpack.c.bf16 %v3125_v22, %v3125_v22  ;;  %v3130_v8 = vmax.f32 %v3074_v7, 0.0  ;;  %v3072_v26 = vadd.f32 %v11721_v49, %v3016_v20  ;;  %v3019_v27 = vmax.f32 %v10027_v23, %v10095_v57 }
 0x19a   : > { %v2343_v28 = vpop.f32.mrf.mxu0  ;;  %v2896_v30 = vpop.f32.mrf.mxu1 }
 0x19b   : > { %3405 = vst.msk [vmem:[#allocation3 + $0x64] sm:$0xf] %vm1857_vm2, %v9388_v25  ;;  %v9393_v33 = vpack.c.bf16 %v3130_v8, %v3130_v8  ;;  %v3128_v34 = vmax.f32 %v3072_v26, 0.0  ;;  %v3075_v35 = vadd.f32 %v11721_v49, %v3019_v27  ;;  %v3017_v36 = vmax.f32 %v2343_v28, %v2880_v10 }
 0x19c   : > { %v10030_v38 = vpop.f32.mrf.mxu0  ;;  %v10102_v39 = vpop.f32.mrf.mxu1 }
 0x19d   : > { %3410 = vst.msk [vmem:[#allocation3 + $0x78] sm:$0xf] %vm1857_vm2, %v9393_v33  ;;  %v9391_v40 = vpack.c.bf16 %v3128_v34, %v3128_v34  ;;  %v3131_v41 = vmax.f32 %v3075_v35, 0.0  ;;  %v3073_v42 = vadd.f32 %v11721_v49, %v3017_v36  ;;  %v3022_v44 = vmax.f32 %v10030_v38, %v10098_v17 }
 0x19e   : > { %v2356_v50 = vpop.f32.mrf.mxu0  ;;  %v2909_v45 = vpop.f32.mrf.mxu1 }
 0x19f   : > { %3408 = vst.msk [vmem:[#allocation3 + $0x70] sm:$0xf] %vm1857_vm2, %v9391_v40  ;;  %v9394_v46 = vpack.c.bf16 %v3131_v41, %v3131_v41  ;;  %v3129_v47 = vmax.f32 %v3073_v42, 0.0  ;;  %v3078_v48 = vadd.f32 %v11721_v49, %v3022_v44  ;;  %v3020_v52 = vmax.f32 %v2356_v50, %v2893_v4 }
 0x1a0   : > { %v10031_v53 = vpop.f32.mrf.mxu0  ;;  %v10103_v54 = vpop.f32.mrf.mxu1 }
 0x1a1   : > { %3411 = vst.msk [vmem:[#allocation3 + $0x7c] sm:$0xf] %vm1857_vm2, %v9394_v46  ;;  %v9392_v55 = vpack.c.bf16 %v3129_v47, %v3129_v47  ;;  %v3134_v51 = vmax.f32 %v3078_v48, 0.0  ;;  %v3076_v56 = vadd.f32 %v11721_v49, %v3020_v52  ;;  %v3023_v58 = vmax.f32 %v10031_v53, %v10099_v24 }
 0x1a2   : > { %v2359_v59 = vpop.f32.mrf.mxu0  ;;  %v2912_v60 = vpop.f32.mrf.mxu1 }
 0x1a3   : > { %3409 = vst.msk [vmem:[#allocation3 + $0x74] sm:$0xf] %vm1857_vm2, %v9392_v55  ;;  %v9397_v62 = vpack.c.bf16 %v3134_v51, %v3134_v51  ;;  %v3132_v63 = vmax.f32 %v3076_v56, 0.0  ;;  %v3079_v57 = vadd.f32 %v11721_v49, %v3023_v58  ;;  %v3021_v0 = vmax.f32 %v2359_v59, %v2896_v30 }
 0x1a4   : > { %v10034_v5 = vpop.f32.mrf.mxu0  ;;  %v10106_v14 = vpop.f32.mrf.mxu1 }
 0x1a5   : > { %3414 = vst.msk [vmem:[#allocation3 + $0x88] sm:$0xf] %vm1857_vm2, %v9397_v62  ;;  %v9395_v6 = vpack.c.bf16 %v3132_v63, %v3132_v63  ;;  %v3135_v9 = vmax.f32 %v3079_v57, 0.0  ;;  %v3077_v10 = vadd.f32 %v11721_v49, %v3021_v0  ;;  %v3026_v11 = vmax.f32 %v10034_v5, %v10102_v39 }
 0x1a6   : > { %v2372_v12 = vpop.f32.mrf.mxu0  ;;  %v2925_v13 = vpop.f32.mrf.mxu1 }
 0x1a7   : > { %3412 = vst.msk [vmem:[#allocation3 + $0x80] sm:$0xf] %vm1857_vm2, %v9395_v6  ;;  %v9398_v15 = vpack.c.bf16 %v3135_v9, %v3135_v9  ;;  %v3133_v16 = vmax.f32 %v3077_v10, 0.0  ;;  %v3082_v17 = vadd.f32 %v11721_v49, %v3026_v11  ;;  %v3024_v1 = vmax.f32 %v2372_v12, %v2909_v45 }
 0x1a8   : > { %v10035_v18 = vpop.f32.mrf.mxu0  ;;  %v10107_v61 = vpop.f32.mrf.mxu1 }
 0x1a9   : > { %3415 = vst.msk [vmem:[#allocation3 + $0x8c] sm:$0xf] %vm1857_vm2, %v9398_v15  ;;  %v9396_v2 = vpack.c.bf16 %v3133_v16, %v3133_v16  ;;  %v3138_v19 = vmax.f32 %v3082_v17, 0.0  ;;  %v3080_v4 = vadd.f32 %v11721_v49, %v3024_v1  ;;  %v3027_v21 = vmax.f32 %v10035_v18, %v10103_v54 }
 0x1aa   : > { %v2375_v22 = vpop.f32.mrf.mxu0  ;;  %v2928_v7 = vpop.f32.mrf.mxu1 }
 0x1ab   : > { %3413 = vst.msk [vmem:[#allocation3 + $0x84] sm:$0xf] %vm1857_vm2, %v9396_v2  ;;  %v9401_v20 = vpack.c.bf16 %v3138_v19, %v3138_v19  ;;  %v3136_v23 = vmax.f32 %v3080_v4, 0.0  ;;  %v3083_v24 = vadd.f32 %v11721_v49, %v3027_v21  ;;  %v3025_v25 = vmax.f32 %v2375_v22, %v2912_v60 }
 0x1ac   : > { %v10038_v8 = vpop.f32.mrf.mxu0  ;;  %v10110_v26 = vpop.f32.mrf.mxu1 }
 0x1ad   : > { %3418 = vst.msk [vmem:[#allocation3 + $0x98] sm:$0xf] %vm1857_vm2, %v9401_v20  ;;  %v9399_v27 = vpack.c.bf16 %v3136_v23, %v3136_v23  ;;  %v3139_v28 = vmax.f32 %v3083_v24, 0.0  ;;  %v3081_v30 = vadd.f32 %v11721_v49, %v3025_v25  ;;  %v3030_v33 = vmax.f32 %v10038_v8, %v10106_v14 }
 0x1ae   : > { %v2388_v34 = vpop.f32.mrf.mxu0  ;;  %v2941_v35 = vpop.f32.mrf.mxu1 }
 0x1af   : > { %3416 = vst.msk [vmem:[#allocation3 + $0x90] sm:$0xf] %vm1857_vm2, %v9399_v27  ;;  %v9402_v36 = vpack.c.bf16 %v3139_v28, %v3139_v28  ;;  %v3137_v38 = vmax.f32 %v3081_v30, 0.0  ;;  %v3086_v39 = vadd.f32 %v11721_v49, %v3030_v33  ;;  %v3028_v40 = vmax.f32 %v2388_v34, %v2925_v13 }
 0x1b0   : > { %v10039_v41 = vpop.f32.mrf.mxu0  ;;  %v10111_v42 = vpop.f32.mrf.mxu1 }
 0x1b1   : > { %3419 = vst.msk [vmem:[#allocation3 + $0x9c] sm:$0xf] %vm1857_vm2, %v9402_v36  ;;  %v9400_v44 = vpack.c.bf16 %v3137_v38, %v3137_v38  ;;  %v3142_v50 = vmax.f32 %v3086_v39, 0.0  ;;  %v3084_v45 = vadd.f32 %v11721_v49, %v3028_v40  ;;  %v3031_v46 = vmax.f32 %v10039_v41, %v10107_v61 }
 0x1b2   : > { %v2391_v47 = vpop.f32.mrf.mxu0  ;;  %v2944_v48 = vpop.f32.mrf.mxu1 }
 0x1b3   : > { %3417 = vst.msk [vmem:[#allocation3 + $0x94] sm:$0xf] %vm1857_vm2, %v9400_v44  ;;  %v9405_v52 = vpack.c.bf16 %v3142_v50, %v3142_v50  ;;  %v3140_v53 = vmax.f32 %v3084_v45, 0.0  ;;  %v3087_v54 = vadd.f32 %v11721_v49, %v3031_v46  ;;  %v3029_v55 = vmax.f32 %v2391_v47, %v2928_v7 }
 0x1b4   : > { %v10042_v51 = vpop.f32.mrf.mxu0  ;;  %v10114_v56 = vpop.f32.mrf.mxu1 }
 0x1b5   : > { %3422 = vst.msk [vmem:[#allocation3 + $0xa8] sm:$0xf] %vm1857_vm2, %v9405_v52  ;;  %v9403_v58 = vpack.c.bf16 %v3140_v53, %v3140_v53  ;;  %v3143_v59 = vmax.f32 %v3087_v54, 0.0  ;;  %v3085_v60 = vadd.f32 %v11721_v49, %v3029_v55  ;;  %v3034_v62 = vmax.f32 %v10042_v51, %v10110_v26 }
 0x1b6   : > { %v2404_v63 = vpop.f32.mrf.mxu0  ;;  %v2957_v57 = vpop.f32.mrf.mxu1 }
 0x1b7   : > { %3420 = vst.msk [vmem:[#allocation3 + $0xa0] sm:$0xf] %vm1857_vm2, %v9403_v58  ;;  %v9406_v0 = vpack.c.bf16 %v3143_v59, %v3143_v59  ;;  %v3141_v5 = vmax.f32 %v3085_v60, 0.0  ;;  %v3090_v14 = vadd.f32 %v11721_v49, %v3034_v62  ;;  %v3032_v6 = vmax.f32 %v2404_v63, %v2941_v35 }
 0x1b8   : > { %v10043_v9 = vpop.f32.mrf.mxu0  ;;  %v10115_v10 = vpop.f32.mrf.mxu1 }
 0x1b9   : > { %3423 = vst.msk [vmem:[#allocation3 + $0xac] sm:$0xf] %vm1857_vm2, %v9406_v0  ;;  %v9404_v11 = vpack.c.bf16 %v3141_v5, %v3141_v5  ;;  %v3146_v12 = vmax.f32 %v3090_v14, 0.0  ;;  %v3088_v13 = vadd.f32 %v11721_v49, %v3032_v6  ;;  %v3035_v15 = vmax.f32 %v10043_v9, %v10111_v42 }
 0x1ba   : > { %v2407_v16 = vpop.f32.mrf.mxu0  ;;  %v2960_v17 = vpop.f32.mrf.mxu1 }
 0x1bb   : > { %3421 = vst.msk [vmem:[#allocation3 + $0xa4] sm:$0xf] %vm1857_vm2, %v9404_v11  ;;  %v9409_v1 = vpack.c.bf16 %v3146_v12, %v3146_v12  ;;  %v3144_v18 = vmax.f32 %v3088_v13, 0.0  ;;  %v3091_v61 = vadd.f32 %v11721_v49, %v3035_v15  ;;  %v3033_v2 = vmax.f32 %v2407_v16, %v2944_v48 }
 0x1bc   : > { %v10046_v19 = vpop.f32.mrf.mxu0  ;;  %v10118_v4 = vpop.f32.mrf.mxu1 }
 0x1bd   : > { %3426 = vst.msk [vmem:[#allocation3 + $0xb8] sm:$0xf] %vm1857_vm2, %v9409_v1  ;;  %v9407_v21 = vpack.c.bf16 %v3144_v18, %v3144_v18  ;;  %v3147_v22 = vmax.f32 %v3091_v61, 0.0  ;;  %v3089_v7 = vadd.f32 %v11721_v49, %v3033_v2  ;;  %v3038_v20 = vmax.f32 %v10046_v19, %v10114_v56 }
 0x1be   : > { %v2420_v23 = vpop.f32.mrf.mxu0  ;;  %v2973_v28 = vpop.f32.mrf.mxu1 }
 0x1bf   : > { %3424 = vst.msk [vmem:[#allocation3 + $0xb0] sm:$0xf] %vm1857_vm2, %v9407_v21  ;;  %v9410_v24 = vpack.c.bf16 %v3147_v22, %v3147_v22  ;;  %v3145_v25 = vmax.f32 %v3089_v7, 0.0  ;;  %v3094_v8 = vadd.f32 %v11721_v49, %v3038_v20  ;;  %v3036_v26 = vmax.f32 %v2420_v23, %v2957_v57 }
 0x1c0   : > { %v10047_v27 = vpop.f32.mrf.mxu0  ;;  %v10119_v44 = vpop.f32.mrf.mxu1 }
 0x1c1   : > { %3427 = vst.msk [vmem:[#allocation3 + $0xbc] sm:$0xf] %vm1857_vm2, %v9410_v24  ;;  %v9408_v30 = vpack.c.bf16 %v3145_v25, %v3145_v25  ;;  %v3150_v33 = vmax.f32 %v3094_v8, 0.0  ;;  %v3092_v34 = vadd.f32 %v11721_v49, %v3036_v26  ;;  %v3039_v35 = vmax.f32 %v10047_v27, %v10115_v10 }
 0x1c2   : > { %v2423_v36 = vpop.f32.mrf.mxu0  ;;  %v2976_v56 = vpop.f32.mrf.mxu1 }
 0x1c3   : > { %3425 = vst.msk [vmem:[#allocation3 + $0xb4] sm:$0xf] %vm1857_vm2, %v9408_v30  ;;  %v9413_v38 = vpack.c.bf16 %v3150_v33, %v3150_v33  ;;  %v3148_v39 = vmax.f32 %v3092_v34, 0.0  ;;  %v3095_v40 = vadd.f32 %v11721_v49, %v3039_v35  ;;  %v3037_v41 = vmax.f32 %v2423_v36, %v2960_v17  ;;  %v10822_v30 = vld [vmem:[#allocation3 + $0x18] sm:$0xff]   ;;  %v11881_v33 = vld [vmem:[#allocation2 + $0x20] sm:$0xff]   ;;  %v11885_v34 = vld [vmem:[#allocation2 + $0x28] sm:$0xff]  }
 0x1c4   : > { %v10050_v42 = vpop.f32.mrf.mxu0  ;;  %v11889_v35 = vld [vmem:[#allocation2 + $0x30] sm:$0xff]   ;;  %v11896_v36 = vld [vmem:[#allocation2 + $0x38] sm:$0xff]  }
 0x1c5   : > { %3430 = vst.msk [vmem:[#allocation3 + $0xc8] sm:$0xf] %vm1857_vm2, %v9413_v38  ;;  %v9411_v50 = vpack.c.bf16 %v3148_v39, %v3148_v39  ;;  %v3151_v45 = vmax.f32 %v3095_v40, 0.0  ;;  %v3093_v46 = vadd.f32 %v11721_v49, %v3037_v41  ;;  %v3042_v47 = vmax.f32 %v10050_v42, %v10118_v4  ;;  %v10984_v38 = vld [vmem:[#allocation2] sm:$0xff]   ;;  %v10985_v39 = vld [vmem:[#allocation2 + $0x8] sm:$0xff]   ;;  %v10986_v40 = vld [vmem:[#allocation2 + $0x10] sm:$0xff]  }
 0x1c6   : > { %v2436_v48 = vpop.f32.mrf.mxu0  ;;  %v10987_v41 = vld [vmem:[#allocation2 + $0x18] sm:$0xff]   ;;  %v10828_v42 = vld [vmem:[%s13714_s5 + $0x24] ss:$8 sps:$4 sm:$0xff]  }
 0x1c7   : > { %3428 = vst.msk [vmem:[#allocation3 + $0xc0] sm:$0xf] %vm1857_vm2, %v9411_v50  ;;  %v9414_v52 = vpack.c.bf16 %v3151_v45, %v3151_v45  ;;  %v3149_v53 = vmax.f32 %v3093_v46, 0.0  ;;  %v3098_v54 = vadd.f32 %v11721_v49, %v3042_v47  ;;  %v3040_v55 = vmax.f32 %v2436_v48, %v2973_v28  ;;  %v11866_v28 = vld [vmem:[%s13712_s3 + $0x10] sm:$0xff]   ;;  %v10834_v46 = vld [vmem:[%s13714_s5 + $0x4] ss:$8 sps:$4 sm:$0xff]  }
 0x1c8   : > { %v10051_v51 = vpop.f32.mrf.mxu0  ;;  %v10831_v50 = vld [vmem:[%s13714_s5 + $0x14] ss:$8 sps:$4 sm:$0xff]   ;;  %v10829_v45 = vld [vmem:[%s13714_s5 + $0x10] ss:$8 sps:$4 sm:$0xff]   ;;  %v10832_v47 = vld [vmem:[%s13714_s5] ss:$8 sps:$4 sm:$0xff]  }
 0x1c9   : > { %3431 = vst.msk [vmem:[#allocation3 + $0xcc] sm:$0xf] %vm1857_vm2, %v9414_v52  ;;  %v9412_v58 = vpack.c.bf16 %v3149_v53, %v3149_v53  ;;  %v3154_v59 = vmax.f32 %v3098_v54, 0.0  ;;  %v3096_v60 = vadd.f32 %v11721_v49, %v3040_v55  ;;  %v3043_v62 = vmax.f32 %v10051_v51, %v10119_v44  ;;  %v10826_v44 = vld [vmem:[%s13714_s5 + $0x20] ss:$8 sps:$4 sm:$0xff]  }
 0x1ca   : > { %v2439_v63 = vpop.f32.mrf.mxu0  ;;  %v11931_v48 = vld [vmem:[%s13712_s3 + $0x28] sm:$0xff]   ;;  %v13719_v52 = vmov 0  }
 0x1cb   : > { %3429 = vst.msk [vmem:[#allocation3 + $0xc4] sm:$0xf] %vm1857_vm2, %v9412_v58  ;;  %v9417_v57 = vpack.c.bf16 %v3154_v59, %v3154_v59  ;;  %v3152_v0 = vmax.f32 %v3096_v60, 0.0  ;;  %v3099_v5 = vadd.f32 %v11721_v49, %v3043_v62  ;;  %v3041_v14 = vmax.f32 %v2439_v63, %v2976_v56  ;;  %v10840_v56 = vld [vmem:[%s13714_s5 + $0x74] ss:$8 sps:$4 sm:$0xff]  }
 0x1cc   : > { %v10066_v6 = vpop.f32.mrf.mxu0  ;;  %v10838_v58 = vld [vmem:[%s13714_s5 + $0x70] ss:$8 sps:$4 sm:$0xff]   ;;  %v10843_v60 = vld [vmem:[%s13714_s5 + $0x64] ss:$8 sps:$4 sm:$0xff]   ;;  %v10841_v62 = vld [vmem:[%s13714_s5 + $0x60] ss:$8 sps:$4 sm:$0xff]  }
 0x1cd   : > { %3434 = vst.msk [vmem:[#allocation3 + $0xd8] sm:$0xf] %vm1857_vm2, %v9417_v57  ;;  %v9415_v9 = vpack.c.bf16 %v3152_v0, %v3152_v0  ;;  %v3155_v10 = vmax.f32 %v3099_v5, 0.0  ;;  %v3097_v11 = vadd.f32 %v11721_v49, %v3041_v14  ;;  %v2990_v12 = vmax.f32 %v11704_v32, %v10066_v6  ;;  %v10848_v57 = vld [vmem:[%s13714_s5 + $0x54] ss:$8 sps:$4 sm:$0xff]  }
 0x1ce   : > { %v2765_v13 = vpop.f32.mrf.mxu0  ;;  %v10846_v0 = vld [vmem:[%s13714_s5 + $0x50] ss:$8 sps:$4 sm:$0xff]   ;;  %v10851_v14 = vld [vmem:[%s13714_s5 + $0x44] ss:$8 sps:$4 sm:$0xff]   ;;  %v10849_v6 = vld [vmem:[%s13714_s5 + $0x40] ss:$8 sps:$4 sm:$0xff]  }
 0x1cf   : > { %3432 = vst.msk [vmem:[#allocation3 + $0xd0] sm:$0xf] %vm1857_vm2, %v9415_v9  ;;  %v9418_v15 = vpack.c.bf16 %v3155_v10, %v3155_v10  ;;  %v3153_v16 = vmax.f32 %v3097_v11, 0.0  ;;  %v3046_v17 = vadd.f32 %v11721_v49, %v2990_v12  ;;  %v2988_v1 = vmax.f32 %v11709_v37, %v2765_v13 }
 0x1d0   : > { %v10067_v18 = vpop.f32.mrf.mxu0 }
 0x1d1   : > { %3435 = vst.msk [vmem:[#allocation3 + $0xdc] sm:$0xf] %vm1857_vm2, %v9418_v15  ;;  %v9416_v61 = vpack.c.bf16 %v3153_v16, %v3153_v16  ;;  %v3102_v2 = vmax.f32 %v3046_v17, 0.0  ;;  %v3044_v19 = vadd.f32 %v11721_v49, %v2988_v1  ;;  %v2991_v4 = vmax.f32 %v11712_v29, %v10067_v18 }
 0x1d2   : > { %v2768_v21 = vpop.f32.mrf.mxu0 }
 0x1d3   : > { %3433 = vst.msk [vmem:[#allocation3 + $0xd4] sm:$0xf] %vm1857_vm2, %v9416_v61  ;;  %v9365_v32 = vpack.c.bf16 %v3102_v2, %v3102_v2  ;;  %v3100_v22 = vmax.f32 %v3044_v19, 0.0  ;;  %v3047_v7 = vadd.f32 %v11721_v49, %v2991_v4  ;;  %v2989_v20 = vmax.f32 %v11715_v43, %v2768_v21  ;;  %v10821_v43 = vld [vmem:[#allocation3 + $0x10] sm:$0xff]  }
 0x1d4   : > { %v11936_v53 = vpop.f32.mrf.mxu0 }
 0x1d5   : > { %3382 = vst.msk [vmem:[#allocation3 + $0x8] sm:$0xf] %vm1857_vm2, %v9365_v32  ;;  %v9363_v37 = vpack.c.bf16 %v3100_v22, %v3100_v22  ;;  %v3103_v23 = vmax.f32 %v3047_v7, 0.0  ;;  %v3045_v24 = vadd.f32 %v11721_v49, %v2989_v20  ;;  %v11859_v49 = vld [vmem:[%s13712_s3 + $0x18] sm:$0xff]  }
 0x1d6   : > { %v3546_v54 = vpop.f32.mrf.mxu0 }
 0x1d7   : > { %3380 = vst.msk [vmem:[#allocation3] sm:$0xf] %vm1857_vm2, %v9363_v37  ;;  %v9366_v25 = vpack.c.bf16 %v3103_v23, %v3103_v23  ;;  %v3101_v8 = vmax.f32 %v3045_v24, 0.0 }
 0x1d8   : > { %v11938_v55 = vpop.f32.mrf.mxu0 }
 0x1d9   : > { %3383 = vst.msk [vmem:[#allocation3 + $0xc] sm:$0xf] %vm1857_vm2, %v9366_v25  ;;  %v9364_v29 = vpack.c.bf16 %v3101_v8, %v3101_v8 }
 0x1da   : > { %v3549_v51 = vpop.f32.mrf.mxu0 }
 0x1db   : > { %3381 = vst.msk [vmem:[#allocation3 + $0x4] sm:$0xf] %vm1857_vm2, %v9364_v29 }
 0x1dc   : > { %v11946_v59 = vpop.f32.mrf.mxu0 }
 0x1de   : > { %v11954_v63 = vpop.f32.mrf.mxu0 }
 0x1e0   : > { %v10820_v27 = vld [vmem:[#allocation3 + $0x8] sm:$0xff]   ;;  %v11962_v5 = vpop.f32.mrf.mxu0 }
 0x1e2   : > { %v10819_v26 = vld [vmem:[#allocation3] sm:$0xff]   ;;  %v11970_v9 = vpop.f32.mrf.mxu0 }
 0x1e3   : > { %10136 = vmatprep.mubr.msk.bf16.mxu1 %vm3499_vm3, %v10819_v26  ;;  %10220 = vmatprep.mubr.msk.bf16.mxu0 %vm3499_vm3, %v10819_v26 }
 0x1e4   : > { %10137 = vmatmul.mubr.msk.bf16.vlgmr.msra.gmra.mxu1 %vm3499_vm3, %v10820_v27  ;;  %10221 = vmatmul.mubr.msk.bf16.vlgmr.msra.gmra.mxu0 %vm3499_vm3, %v10820_v27  ;;  %v10150_v10 = vpop.f32.mrf.mxu0 }
 0x1e5   : > { %10140 = vmatprep.mubr.msk.bf16.mxu1 %vm3499_vm3, %v10821_v43  ;;  %10157 = vmatpush3.bf16.msra.mxu1 %v11859_v49 }
 0x1e6   : > { %10224 = vmatprep.mubr.msk.bf16.mxu0 %vm3499_vm3, %v10821_v43  ;;  %10158 = vmatprep.subr.bf16.mxu1 %v11866_v28  ;;  %v3720_v11 = vpop.f32.mrf.mxu0 }
 0x1e8   : > { %v10151_v12 = vpop.f32.mrf.mxu0 }
 0x1e9   : > { %10159 = vmatpush3.bf16.msra.mxu1 %v11866_v28 }
 0x1ea   : > { %10180 = vmatprep.subr.bf16.mxu1 %v11859_v49  ;;  %v3723_v13 = vpop.f32.mrf.mxu0 }
 0x1ec   : > { %10141 = vmatmul.mubr.msk.bf16.gmra.mxu1 %vm3499_vm3, %v10822_v30  ;;  %10225 = vmatmul.mubr.msk.bf16.gmra.mxu0 %vm3499_vm3, %v10822_v30  ;;  %v11973_v15 = vpop.f32.mrf.mxu0 }
 0x1ed   : > { %10160 = vmatprep.mubr.msk.bf16.mxu1 %vm3499_vm3, %v10819_v26  ;;  %4537 = vmatprep.mubr.bf16.mxu0 %v13719_v52 }
 0x1ee   : > { %v3736_v16 = vpop.f32.mrf.mxu0 }
 0x1f0   : > { %v10155_v17 = vpop.f32.mrf.mxu0 }
 0x1f2   : > { %v3739_v1 = vpop.f32.mrf.mxu0 }
 0x1f4   : > { %10161 = vmatmul.mubr.msk.bf16.vlgmr.msra.gmra.mxu1 %vm3499_vm3, %v10820_v27  ;;  %v11975_v18 = vpop.f32.mrf.mxu0 }
 0x1f5   : > { %10164 = vmatprep.mubr.msk.bf16.mxu1 %vm3499_vm3, %v10821_v43  ;;  %10181 = vmatpush3.bf16.msra.mxu1 %v11859_v49  ;;  %v11998_v43 = vld [vmem:[%s13713_s4] ss:$0 sm:$0xff] }
 0x1f6   : > { %10182 = vmatprep.subr.bf16.mxu1 %v11866_v28  ;;  %v11977_v61 = vpop.f32.mrf.mxu0 }
 0x1f8   : > { %v11979_v2 = vpop.f32.mrf.mxu0 }
 0x1f9   : > { %10183 = vmatpush3.bf16.msra.mxu1 %v11866_v28 }
 0x1fa   : > { %10204 = vmatprep.subr.bf16.mxu1 %v11702_v31  ;;  %v11981_v19 = vpop.f32.mrf.mxu0 }
 0x1fc   : > { %10165 = vmatmul.mubr.msk.bf16.gmra.mxu1 %vm3499_vm3, %v10822_v30  ;;  %v11983_v4 = vpop.f32.mrf.mxu0 }
 0x1fd   : > { %10184 = vmatprep.mubr.msk.bf16.mxu1 %vm3499_vm3, %v11881_v33 }
 0x1fe   : > { %v11985_v21 = vpop.f32.mrf.mxu0 }
 0x200   : > { %v11987_v32 = vpop.f32.mrf.mxu0 }
 0x202   : > { %v11989_v7 = vpop.f32.mrf.mxu0 }
 0x204   : > { %10185 = vmatmul.mubr.msk.bf16.vlgmr.msra.gmra.mxu1 %vm3499_vm3, %v11885_v34 }
 0x205   : > { %10188 = vmatprep.mubr.msk.bf16.mxu1 %vm3499_vm3, %v11889_v35  ;;  %10205 = vmatpush3.bf16.msra.mxu1 %v11702_v31  ;;  %v10825_v31 = vld [vmem:[%s13714_s5 + $0x34] ss:$8 sps:$4 sm:$0xff]  }
 0x206   : > { %10206 = vmatprep.subr.bf16.mxu1 %v11753_v3  ;;  %4513 = vmatprep.subr.bf16.mxu0 %v10825_v31 }
 0x209   : > { %10207 = vmatpush3.bf16.msra.mxu1 %v11753_v3  ;;  %v10823_v3 = vld [vmem:[%s13714_s5 + $0x30] ss:$8 sps:$4 sm:$0xff]  }
 0x20a   : > { %4514 = vmatpush1.bf16.msra.mxu0 %v10823_v3  ;;  %4388 = vmatprep.subr.bf16.mxu1 %v10840_v56 }
 0x20b   : > { %4515 = vmatprep.subr.bf16.mxu0 %v10828_v42 }
 0x20c   : > { %10189 = vmatmul.mubr.msk.bf16.gmra.mxu1 %vm3499_vm3, %v11896_v36 }
 0x20d   : > { %10208 = vmatprep.mubr.msk.bf16.mxu1 %vm3499_vm3, %v10984_v38 }
 0x20e   : > { %4516 = vmatpush1.bf16.msra.mxu0 %v10826_v44 }
 0x20f   : > { %4517 = vmatprep.subr.bf16.mxu0 %v10831_v50 }
 0x212   : > { %4518 = vmatpush1.bf16.msra.mxu0 %v10829_v45 }
 0x213   : > { %4519 = vmatprep.subr.bf16.mxu0 %v10834_v46 }
 0x214   : > { %10209 = vmatmul.mubr.msk.bf16.vlgmr.msra.gmra.mxu1 %vm3499_vm3, %v10985_v39 }
 0x215   : > { %10212 = vmatprep.mubr.msk.bf16.mxu1 %vm3499_vm3, %v10986_v40  ;;  %4389 = vmatpush1.bf16.msra.mxu1 %v10838_v58 }
 0x216   : > { %4520 = vmatpush1.bf16.msra.mxu0 %v10832_v47  ;;  %4390 = vmatprep.subr.bf16.mxu1 %v10843_v60 }
 0x217   : > { %10240 = vmatprep.subr.bf16.mxu0 %v11931_v48 }
 0x219   : > { %4391 = vmatpush1.bf16.msra.mxu1 %v10841_v62 }
 0x21a   : > { %4392 = vmatprep.subr.bf16.mxu1 %v10848_v57 }
 0x21c   : > { %10213 = vmatmul.mubr.msk.bf16.gmra.mxu1 %vm3499_vm3, %v10987_v41 }
 0x21d   : > { %4412 = vmatprep.mubr.bf16.mxu1 %v13719_v52  ;;  %4393 = vmatpush1.bf16.msra.mxu1 %v10846_v0 }
 0x21e   : > { %4394 = vmatprep.subr.bf16.mxu1 %v10851_v14 }
 0x221   : > { %4395 = vmatpush1.bf16.msra.mxu1 %v10849_v6  ;;  %v12023_v6 = vld [vmem:[%s13712_s3 + $0x20] sm:$0xff]  }
 0x222   : > { %10228 = vmatprep.subr.bf16.mxu1 %v11859_v49 }
 0x244   : > { %v11991_v37 = vpop.f32.mrf.mxu0 }
 0x246   : > { %v11993_v29 = vpop.f32.mrf.mxu0 }
 0x248   : > { %v12001_v31 = vpop.f32.mrf.mxu0 }
 0x2a4   : > { %v10138_v22 = vpop.f32.mrf.mxu1 }
 0x2a5   : > { %v3729_v38 = vadd.f32 %v10150_v10, %v10138_v22 }
 0x2a6   : > { %v3643_v20 = vpop.f32.mrf.mxu1 }
 0x2a7   : > { %v3721_v23 = vadd.f32 %v3720_v11, %v3643_v20  ;;  %v3753_v50 = vmax.f32 %v11936_v53, %v3729_v38 }
 0x2a8   : > { %v10139_v24 = vpop.f32.mrf.mxu1 }
 0x2a9   : > { %v3751_v25 = vmax.f32 %v3546_v54, %v3721_v23  ;;  %v3732_v26 = vadd.f32 %v10151_v12, %v10139_v24  ;;  %v12006_v54 = vpop.f32.mrf.mxu0  ;;  %v3767_v62 = vadd.f32 %v11998_v43, %v3753_v50 }
 0x2aa   : > { %v3646_v8 = vpop.f32.mrf.mxu1 }
 0x2ab   : > { %v3724_v27 = vadd.f32 %v3723_v13, %v3646_v8  ;;  %v3765_v39 = vadd.f32 %v11998_v43, %v3751_v25  ;;  %v3754_v3 = vmax.f32 %v11938_v55, %v3732_v26  ;;  %v12017_v53 = vpop.f32.mrf.mxu0  ;;  %v3775_v11 = vmax.f32 %v3767_v62, 0.0 }
 0x2ac   : > { %v10142_v30 = vpop.f32.mrf.mxu1 }
 0x2ad   : > { %v3752_v40 = vmax.f32 %v3549_v51, %v3724_v27  ;;  %v3773_v45 = vmax.f32 %v3765_v39, 0.0  ;;  %v3768_v56 = vadd.f32 %v11998_v43, %v3754_v3  ;;  %v3745_v23 = vadd.f32 %v11973_v15, %v10142_v30 }
 0x2ae   : > { %v3659_v41 = vpop.f32.mrf.mxu1 }
 0x2af   : > { %v3766_v42 = vadd.f32 %v11998_v43, %v3752_v40  ;;  %v3737_v55 = vadd.f32 %v3736_v16, %v3659_v41  ;;  %v3776_v0 = vmax.f32 %v3768_v56, 0.0  ;;  %v12032_v16 = vpop.f32.mrf.mxu0  ;;  %v3757_v27 = vmax.f32 %v11946_v59, %v3745_v23 }
 0x2b0   : > { %v10143_v44 = vpop.f32.mrf.mxu1 }
 0x2b1   : > { %v3774_v46 = vmax.f32 %v3766_v42, 0.0  ;;  %v3755_v12 = vmax.f32 %v11954_v63, %v3737_v55  ;;  %v12044_v25 = vpop.f32.mrf.mxu0  ;;  %v3771_v42 = vadd.f32 %v11998_v43, %v3757_v27 }
 0x2b2   : > { %v3662_v47 = vpop.f32.mrf.mxu1 }
 0x2b3   : > { %v3781_v58 = vpack.c.bf16 %v3774_v46, %v3773_v45  ;;  %v3740_v51 = vadd.f32 %v3739_v1, %v3662_v47  ;;  %v3782_v1 = vpack.c.bf16 %v3776_v0, %v3775_v11  ;;  %v3769_v24 = vadd.f32 %v11998_v43, %v3755_v12  ;;  %v12052_v15 = vpop.f32.mrf.mxu0  ;;  %v12067_v11 = vld [vmem:[#allocation2 + $0x48] sm:$0xff]  }
 0x2b4   : > { %v12009_v60 = vpop.f32.mrf.mxu1  ;;  %v3779_v45 = vmax.f32 %v3771_v42, 0.0 }
 0x2b5   : > { %9037 = vmatmul.mubr.msk.bf16.vlgmr.msra.gmra.mxu0 %vm4367_vm4, %v3781_v58  ;;  %v3756_v14 = vmax.f32 %v11970_v9, %v3740_v51  ;;  %v3748_v9 = vadd.f32 %v10155_v17, %v10143_v44  ;;  %v3777_v38 = vmax.f32 %v3769_v24, 0.0  ;;  %v10222_v3 = vpop.f32.mrf.mxu0  ;;  %v12060_v58 = vld [vmem:[#allocation2 + $0x40] sm:$0xff]  }
 0x2b6   : > { %v12013_v57 = vpop.f32.mrf.mxu1  ;;  %4547 = vmatprep.mubr.bf16.mxu0 %v13719_v52  ;;  %10241 = vmatpush3.bf16.msra.mxu0 %v11931_v48 }
 0x2b7   : > { %10242 = vmatprep.subr.bf16.mxu0 %v12023_v6  ;;  %v3770_v22 = vadd.f32 %v11998_v43, %v3756_v14  ;;  %v3758_v17 = vmax.f32 %v11962_v5, %v3748_v9  ;;  %v4252_v59 = vpop.f32.mrf.mxu0 }
 0x2b8   : > { %v12026_v10 = vpop.f32.mrf.mxu1 }
 0x2b9   : > { %v3778_v8 = vmax.f32 %v3770_v22, 0.0  ;;  %v3772_v30 = vadd.f32 %v11998_v43, %v3758_v17  ;;  %v10223_v51 = vpop.f32.mrf.mxu0 }
 0x2ba   : > { %v12029_v13 = vpop.f32.mrf.mxu1  ;;  %10243 = vmatpush3.bf16.msra.mxu0 %v12023_v6 }
 0x2bb   : > { %10264 = vmatprep.subr.bf16.mxu0 %v11931_v48  ;;  %v3783_v40 = vpack.c.bf16 %v3778_v8, %v3777_v38  ;;  %v3780_v44 = vmax.f32 %v3772_v30, 0.0  ;;  %v4255_v0 = vpop.f32.mrf.mxu0 }
 0x2bc   : > { %v12036_v20 = vpop.f32.mrf.mxu1 }
 0x2bd   : > { %9038 = vmatmul.mubr.msk.bf16.gmra.mxu0 %vm4367_vm4, %v3782_v1  ;;  %v3784_v47 = vpack.c.bf16 %v3780_v44, %v3779_v45  ;;  %v12069_v1 = vld [vmem:[#allocation2 + $0x50] sm:$0xff]   ;;  %v12071_v9 = vpop.f32.mrf.mxu0  ;;  %v12086_v45 = vld [vmem:[#allocation2 + $0x58] sm:$0xff]  }
 0x2be   : > { %v12041_v63 = vpop.f32.mrf.mxu1  ;;  %4557 = vmatprep.mubr.bf16.mxu0 %v13719_v52  ;;  %13731 = vst [vmem:[#allocation7_spill] sm:$0xff] %v12086_v45 }
 0x2bf   : > { %v4268_v8 = vpop.f32.mrf.mxu0 }
 0x2c0   : > { %v12047_v26 = vpop.f32.mrf.mxu1 }
 0x2c2   : > { %v12050_v39 = vpop.f32.mrf.mxu1 }
 0x2c4   : > { %v10186_v41 = vpop.f32.mrf.mxu1 }
 0x2c5   : > { %9039 = vmatmul.mubr.msk.bf16.gmra.mxu0 %vm4367_vm4, %v3783_v40 }
 0x2c6   : > { %v4005_v5 = vpop.f32.mrf.mxu1  ;;  %4567 = vmatprep.mubr.bf16.mxu0 %v13719_v52 }
 0x2c7   : > { %v4253_v22 = vadd.f32 %v4252_v59, %v4005_v5 }
 0x2c8   : > { %v10187_v50 = vpop.f32.mrf.mxu1 }
 0x2c9   : > { %v4283_v27 = vadd.f32 %v4253_v22, %v11993_v29  ;;  %v4264_v5 = vadd.f32 %v10223_v51, %v10187_v50  ;;  %v12091_v29 = vld [vmem:[%s13712_s3 + $0x8] sm:$0xff]  }
 0x2ca   : > { %v4008_v46 = vpop.f32.mrf.mxu1 }
 0x2cb   : > { %v4256_v38 = vadd.f32 %v4255_v0, %v4008_v46  ;;  %v10227_v46 = vpop.f32.mrf.mxu0  ;;  %v4286_v0 = vadd.f32 %v12001_v31, %v4264_v5  ;;  %v12109_v31 = vld [vmem:[#allocation3 + $0x48] sm:$0xff]  }
 0x2cc   : > { %v12058_v56 = vpop.f32.mrf.mxu1 }
 0x2cd   : > { %9040 = vmatmul.mubr.msk.bf16.gmra.mxu0 %vm4367_vm4, %v3784_v47  ;;  %v4261_v47 = vadd.f32 %v10222_v3, %v10186_v41  ;;  %v4284_v50 = vadd.f32 %v4256_v38, %v12006_v54  ;;  %v4271_v54 = vpop.f32.mrf.mxu0 }
 0x2ce   : > { %v4021_v62 = vpop.f32.mrf.mxu1  ;;  %10244 = vmatprep.mubr.msk.bf16.mxu0 %vm3499_vm3, %v12060_v58 }
 0x2cf   : > { %v4269_v5 = vadd.f32 %v4268_v8, %v4021_v62  ;;  %v12128_v62 = vld [vmem:[%s13712_s3] sm:$0xff]  }
 0x2d0   : > { %v12065_v55 = vpop.f32.mrf.mxu1 }
 0x2d2   : > { %v4024_v14 = vpop.f32.mrf.mxu1 }
 0x2d4   : > { %v10210_v12 = vpop.f32.mrf.mxu1 }
 0x2d5   : > { %10245 = vmatmul.mubr.msk.bf16.vlgmr.msra.gmra.mxu0 %vm3499_vm3, %v12067_v11  ;;  %v4188_v44 = vadd.f32 %v10210_v12, %v12009_v60 }
 0x2d6   : > { %v4179_v23 = vpop.f32.mrf.mxu1  ;;  %10248 = vmatprep.mubr.msk.bf16.mxu0 %vm3499_vm3, %v12069_v1  ;;  %10265 = vmatpush3.bf16.msra.mxu0 %v11931_v48 }
 0x2d7   : > { %v4180_v24 = vadd.f32 %v4179_v23, %v12013_v57  ;;  %10266 = vmatprep.subr.bf16.mxu0 %v12023_v6  ;;  %v4212_v12 = vadd.f32 %v11975_v18, %v4188_v44 }
 0x2d8   : > { %v10211_v17 = vpop.f32.mrf.mxu1 }
 0x2d9   : > { %v4210_v30 = vadd.f32 %v4180_v24, %v11977_v61  ;;  %v4191_v40 = vadd.f32 %v10211_v17, %v12026_v10  ;;  %v12094_v10 = vld [vmem:[#allocation3 + $0x40] sm:$0xff]   ;;  %v4272_v24 = vadd.f32 %v4271_v54, %v4024_v14  ;;  %v10993_v54 = vld [vmem:[#allocation3 + $0x28] sm:$0xff]  }
 0x2da   : > { %v4182_v42 = vpop.f32.mrf.mxu1  ;;  %10267 = vmatpush3.bf16.msra.mxu0 %v12023_v6 }
 0x2db   : > { %v4291_v59 = vmax.f32 %v4210_v30, %v4283_v27  ;;  %v4183_v57 = vadd.f32 %v4182_v42, %v12029_v13  ;;  %10288 = vmatprep.subr.bf16.mxu0 %v12091_v29  ;;  %v4213_v60 = vadd.f32 %v11979_v2, %v4191_v40  ;;  %v4285_v2 = vadd.f32 %v11991_v37, %v4261_v47  ;;  %v12112_v42 = vld [vmem:[#allocation3 + $0x50] sm:$0xff]  }
 0x2dc   : > { %v10214_v61 = vpop.f32.mrf.mxu1 }
 0x2dd   : > { %v4211_v13 = vadd.f32 %v4183_v57, %v11981_v19  ;;  %10249 = vmatmul.mubr.msk.bf16.gmra.mxu0 %vm3499_vm3, %v12086_v45  ;;  %v4299_v22 = vadd.f32 %v11998_v43, %v4291_v59  ;;  %v4294_v23 = vmax.f32 %v4213_v60, %v4286_v0  ;;  %v4293_v27 = vmax.f32 %v4212_v12, %v4285_v2 }
 0x2de   : > { %v4195_v51 = vpop.f32.mrf.mxu1  ;;  %10268 = vmatprep.mubr.msk.bf16.mxu0 %vm3499_vm3, %v12094_v10 }
 0x2df   : > { %v4292_v41 = vmax.f32 %v4211_v13, %v4284_v50  ;;  %v4307_v38 = vmax.f32 %v4299_v22, 0.0  ;;  %v4196_v40 = vadd.f32 %v4195_v51, %v12041_v63  ;;  %v4302_v44 = vadd.f32 %v11998_v43, %v4294_v23  ;;  %v12139_v13 = vld [vmem:[#allocation3 + $0x58] sm:$0xff]  }
 0x2e0   : > { %v10215_v3 = vpop.f32.mrf.mxu1  ;;  %v4288_v63 = vadd.f32 %v4272_v24, %v12052_v15  ;;  %v4204_v50 = vadd.f32 %v10214_v61, %v12036_v20  ;;  %v10992_v20 = vld [vmem:[#allocation3 + $0x20] sm:$0xff]  }
 0x2e1   : > { %v4300_v19 = vadd.f32 %v11998_v43, %v4292_v41  ;;  %v4214_v59 = vadd.f32 %v4196_v40, %v11985_v21  ;;  %v4310_v15 = vmax.f32 %v4302_v44, 0.0  ;;  %v4207_v8 = vadd.f32 %v10215_v3, %v12047_v26  ;;  %v12184_v24 = vld [vmem:[#allocation2 + $0x60] sm:$0xff]   ;;  %v12297_v40 = vld [vmem:[#allocation3 + $0x88] sm:$0xff]  }
 0x2e2   : > { %v4198_v17 = vpop.f32.mrf.mxu1  ;;  %v4280_v21 = vadd.f32 %v10227_v46, %v12065_v55  ;;  %v4216_v61 = vadd.f32 %v11983_v4, %v4204_v50  ;;  %v10892_v44 = vld [vmem:[%s13714_s5 + $0xa4] ss:$8 sps:$4 sm:$0xff]  }
 0x2e3   : > { %v4308_v30 = vmax.f32 %v4300_v19, 0.0  ;;  %v4199_v18 = vadd.f32 %v4198_v17, %v12050_v39  ;;  %v4301_v39 = vadd.f32 %v11998_v43, %v4293_v27  ;;  %v4217_v51 = vadd.f32 %v11987_v32, %v4207_v8  ;;  %v10995_v19 = vld [vmem:[#allocation3 + $0x38] sm:$0xff]   ;;  %v12195_v17 = vld [vmem:[#allocation2 + $0x68] sm:$0xff]   ;;  %v12197_v27 = vld [vmem:[#allocation2 + $0x70] sm:$0xff]  }
 0x2e4   : > { %v4290_v55 = vadd.f32 %v12044_v25, %v4280_v21  ;;  %v10994_v25 = vld [vmem:[#allocation3 + $0x30] sm:$0xff]   ;;  %13732 = vst [vmem:[#allocation8_spill] sm:$0xff] %v12195_v17  ;;  %13733 = vst [vmem:[#allocation9_spill] sm:$0xff] %v12197_v27 }
 0x2e5   : > { %v4315_v37 = vpack.c.bf16 %v4308_v30, %v4307_v38  ;;  %10269 = vmatmul.mubr.msk.bf16.vlgmr.msra.gmra.mxu0 %vm3499_vm3, %v12109_v31  ;;  %v4215_v14 = vadd.f32 %v4199_v18, %v11989_v7  ;;  %v4287_v7 = vadd.f32 %v4269_v5, %v12032_v16  ;;  %v4309_v47 = vmax.f32 %v4301_v39, 0.0  ;;  %v12215_v38 = vld [vmem:[#allocation3 + $0x60] sm:$0xff]   ;;  %v10888_v18 = vld [vmem:[%s13714_s5 + $0xb4] ss:$8 sps:$4 sm:$0xff]  }
 0x2e6   : > { %10272 = vmatprep.mubr.msk.bf16.mxu0 %vm3499_vm3, %v12112_v42  ;;  %10289 = vmatpush3.bf16.msra.mxu0 %v12091_v29  ;;  %v4277_v16 = vadd.f32 %v12071_v9, %v12058_v56  ;;  %v4298_v9 = vmax.f32 %v4217_v51, %v4290_v55  ;;  %v12291_v30 = vld [vmem:[#allocation3 + $0x80] sm:$0xff]   ;;  %v12314_v5 = vld [vmem:[#allocation3 + $0x98] sm:$0xff]  }
 0x2e7   : > { %9025 = vmatmul.mubr.msk.bf16.vlgmr.msra.gmra.mxu1 %vm4367_vm4, %v4315_v37  ;;  %10290 = vmatprep.subr.bf16.mxu0 %v12128_v62  ;;  %v4296_v57 = vmax.f32 %v4215_v14, %v4288_v63  ;;  %v4295_v60 = vmax.f32 %v4214_v59, %v4287_v7  ;;  %v4316_v26 = vpack.c.bf16 %v4310_v15, %v4309_v47  ;;  %v10890_v37 = vld [vmem:[%s13714_s5 + $0xa0] ss:$8 sps:$4 sm:$0xff]   ;;  %v10895_v14 = vld [vmem:[%s13714_s5 + $0x94] ss:$8 sps:$4 sm:$0xff]   ;;  %v10893_v63 = vld [vmem:[%s13714_s5 + $0x90] ss:$8 sps:$4 sm:$0xff]  }
 0x2e8   : > { %10229 = vmatpush3.bf16.msra.mxu1 %v11859_v49  ;;  %4422 = vmatprep.mubr.bf16.mxu1 %v13719_v52  ;;  %v4289_v32 = vadd.f32 %v12017_v53, %v4277_v16  ;;  %v4306_v41 = vadd.f32 %v11998_v43, %v4298_v9  ;;  %v10898_v59 = vld [vmem:[%s13714_s5 + $0x84] ss:$8 sps:$4 sm:$0xff]   ;;  %v10896_v7 = vld [vmem:[%s13714_s5 + $0x80] ss:$8 sps:$4 sm:$0xff]   ;;  %v10873_v9 = vld [vmem:[#allocation2 + $0xb0] sm:$0xff]  }
 0x2e9   : > { %10230 = vmatprep.subr.bf16.mxu1 %v11866_v28  ;;  %v4304_v0 = vadd.f32 %v11998_v43, %v4296_v57  ;;  %v4303_v56 = vadd.f32 %v11998_v43, %v4295_v60 }
 0x2ea   : > { %10291 = vmatpush3.bf16.msra.mxu0 %v12128_v62  ;;  %v4297_v12 = vmax.f32 %v4216_v61, %v4289_v32  ;;  %v4314_v53 = vmax.f32 %v4306_v41, 0.0  ;;  %v10872_v32 = vld [vmem:[#allocation2 + $0xa8] sm:$0xff]  }
 0x2eb   : > { %10300 = vmatprep.subr.bf16.mxu0 %v11859_v49  ;;  %v4312_v46 = vmax.f32 %v4304_v0, 0.0  ;;  %v4311_v22 = vmax.f32 %v4303_v56, 0.0  ;;  %v10871_v0 = vld [vmem:[#allocation2 + $0xa0] sm:$0xff]  }
 0x2ec   : > { %10231 = vmatpush3.bf16.msra.mxu1 %v11866_v28  ;;  %v4305_v4 = vadd.f32 %v11998_v43, %v4297_v12 }
 0x2ed   : > { %10273 = vmatmul.mubr.msk.bf16.gmra.mxu0 %vm3499_vm3, %v12139_v13  ;;  %10252 = vmatprep.subr.bf16.mxu1 %v11859_v49  ;;  %v4317_v3 = vpack.c.bf16 %v4312_v46, %v4311_v22 }
 0x2ee   : > { %10292 = vmatprep.mubr.msk.bf16.mxu0 %vm3499_vm3, %v10992_v20  ;;  %v4313_v2 = vmax.f32 %v4305_v4, 0.0 }
 0x2ef   : > { %9026 = vmatmul.mubr.msk.bf16.gmra.mxu1 %vm4367_vm4, %v4316_v26 }
 0x2f0   : > { %4432 = vmatprep.mubr.bf16.mxu1 %v13719_v52  ;;  %v4318_v23 = vpack.c.bf16 %v4314_v53, %v4313_v2 }
 0x2f5   : > { %10293 = vmatmul.mubr.msk.bf16.vlgmr.msra.gmra.mxu0 %vm3499_vm3, %v10993_v54 }
 0x2f6   : > { %10296 = vmatprep.mubr.msk.bf16.mxu0 %vm3499_vm3, %v10994_v25  ;;  %10301 = vmatpush3.bf16.msra.mxu0 %v11859_v49 }
 0x2f7   : > { %9027 = vmatmul.mubr.msk.bf16.gmra.mxu1 %vm4367_vm4, %v4317_v3  ;;  %10302 = vmatprep.subr.bf16.mxu0 %v11866_v28  ;;  %v10874_v3 = vld [vmem:[#allocation2 + $0xb8] sm:$0xff]  }
 0x2f8   : > { %4442 = vmatprep.mubr.bf16.mxu1 %v13719_v52 }
 0x2fa   : > { %10303 = vmatpush3.bf16.msra.mxu0 %v11866_v28 }
 0x2fb   : > { %10312 = vmatprep.subr.bf16.mxu0 %v11931_v48 }
 0x2fd   : > { %10297 = vmatmul.mubr.msk.bf16.gmra.mxu0 %vm3499_vm3, %v10995_v19 }
 0x2fe   : > { %10304 = vmatprep.mubr.msk.bf16.mxu0 %vm3499_vm3, %v12094_v10 }
 0x2ff   : > { %9028 = vmatmul.mubr.msk.bf16.gmra.mxu1 %vm4367_vm4, %v4318_v23  ;;  %v12422_v23 = vld [vmem:[#allocation3 + $0xa8] sm:$0xff]  }
 0x300   : > { %10232 = vmatprep.mubr.msk.bf16.mxu1 %vm3499_vm3, %v10992_v20 }
 0x305   : > { %10305 = vmatmul.mubr.msk.bf16.vlgmr.msra.gmra.mxu0 %vm3499_vm3, %v12109_v31 }
 0x306   : > { %10308 = vmatprep.mubr.msk.bf16.mxu0 %vm3499_vm3, %v12112_v42  ;;  %10313 = vmatpush3.bf16.msra.mxu0 %v11931_v48 }
 0x307   : > { %10233 = vmatmul.mubr.msk.bf16.vlgmr.msra.gmra.mxu1 %vm3499_vm3, %v10993_v54  ;;  %10314 = vmatprep.subr.bf16.mxu0 %v12023_v6  ;;  %v12409_v54 = vld [vmem:[#allocation3 + $0xa0] sm:$0xff]  }
 0x308   : > { %10236 = vmatprep.mubr.msk.bf16.mxu1 %vm3499_vm3, %v10994_v25  ;;  %10253 = vmatpush3.bf16.msra.mxu1 %v11859_v49 }
 0x309   : > { %10254 = vmatprep.subr.bf16.mxu1 %v11866_v28 }
 0x30a   : > { %10315 = vmatpush3.bf16.msra.mxu0 %v12023_v6 }
 0x30b   : > { %10336 = vmatprep.subr.bf16.mxu0 %v11931_v48 }
 0x30c   : > { %10255 = vmatpush3.bf16.msra.mxu1 %v11866_v28 }
 0x30d   : > { %10309 = vmatmul.mubr.msk.bf16.gmra.mxu0 %vm3499_vm3, %v12139_v13  ;;  %10276 = vmatprep.subr.bf16.mxu1 %v12091_v29 }
 0x30e   : > { %10316 = vmatprep.mubr.msk.bf16.mxu0 %vm3499_vm3, %v12184_v24 }
 0x30f   : > { %10237 = vmatmul.mubr.msk.bf16.gmra.mxu1 %vm3499_vm3, %v10995_v19  ;;  %v12424_v19 = vld [vmem:[#allocation3 + $0xb0] sm:$0xff]  }
 0x310   : > { %10256 = vmatprep.mubr.msk.bf16.mxu1 %vm3499_vm3, %v12060_v58  ;;  %v12212_v58 = vld [vmem:[#allocation2 + $0x78] sm:$0xff]  }
 0x311   : > { %13734 = vst [vmem:[#allocation10_spill] sm:$0xff] %v12212_v58 }
 0x315   : > { %10317 = vmatmul.mubr.msk.bf16.vlgmr.msra.gmra.mxu0 %vm3499_vm3, %v12195_v17 }
 0x316   : > { %10320 = vmatprep.mubr.msk.bf16.mxu0 %vm3499_vm3, %v12197_v27  ;;  %10337 = vmatpush3.bf16.msra.mxu0 %v11931_v48 }
 0x317   : > { %10257 = vmatmul.mubr.msk.bf16.vlgmr.msra.gmra.mxu1 %vm3499_vm3, %v12067_v11  ;;  %10338 = vmatprep.subr.bf16.mxu0 %v12023_v6  ;;  %v12226_v11 = vld [vmem:[#allocation3 + $0x68] sm:$0xff]  }
 0x318   : > { %10260 = vmatprep.mubr.msk.bf16.mxu1 %vm3499_vm3, %v12069_v1  ;;  %10277 = vmatpush3.bf16.msra.mxu1 %v12091_v29  ;;  %v12228_v1 = vld [vmem:[#allocation3 + $0x70] sm:$0xff]  }
 0x319   : > { %10278 = vmatprep.subr.bf16.mxu1 %v12128_v62 }
 0x31a   : > { %10339 = vmatpush3.bf16.msra.mxu0 %v12023_v6 }
 0x31b   : > { %10360 = vmatprep.subr.bf16.mxu0 %v12091_v29 }
 0x31c   : > { %10279 = vmatpush3.bf16.msra.mxu1 %v12128_v62 }
 0x31d   : > { %10321 = vmatmul.mubr.msk.bf16.gmra.mxu0 %vm3499_vm3, %v12212_v58  ;;  %5160 = vmatprep.subr.bf16.mxu1 %v10888_v18 }
 0x31e   : > { %10340 = vmatprep.mubr.msk.bf16.mxu0 %vm3499_vm3, %v12215_v38 }
 0x31f   : > { %10261 = vmatmul.mubr.msk.bf16.gmra.mxu1 %vm3499_vm3, %v12086_v45 }
 0x320   : > { %10280 = vmatprep.mubr.msk.bf16.mxu1 %vm3499_vm3, %v11881_v33  ;;  %v12241_v33 = vld [vmem:[#allocation3 + $0x78] sm:$0xff]  }
 0x325   : > { %10341 = vmatmul.mubr.msk.bf16.vlgmr.msra.gmra.mxu0 %vm3499_vm3, %v12226_v11 }
 0x326   : > { %10344 = vmatprep.mubr.msk.bf16.mxu0 %vm3499_vm3, %v12228_v1  ;;  %10361 = vmatpush3.bf16.msra.mxu0 %v12091_v29 }
 0x327   : > { %10281 = vmatmul.mubr.msk.bf16.vlgmr.msra.gmra.mxu1 %vm3499_vm3, %v11885_v34  ;;  %10362 = vmatprep.subr.bf16.mxu0 %v12128_v62  ;;  %v12271_v34 = vld [vmem:[#allocation2 + $0x80] sm:$0xff]  }
 0x328   : > { %10284 = vmatprep.mubr.msk.bf16.mxu1 %vm3499_vm3, %v11889_v35  ;;  %13735 = vst [vmem:[#allocation11_spill] sm:$0xff] %v12271_v34  ;;  %v12277_v35 = vld [vmem:[#allocation2 + $0x88] sm:$0xff]  }
 0x329   : > { %13736 = vst [vmem:[#allocation12_spill] sm:$0xff] %v12277_v35 }
 0x32a   : > { %10363 = vmatpush3.bf16.msra.mxu0 %v12128_v62 }
 0x32b   : > { %10372 = vmatprep.subr.bf16.mxu0 %v11859_v49 }
 0x32d   : > { %10345 = vmatmul.mubr.msk.bf16.gmra.mxu0 %vm3499_vm3, %v12241_v33 }
 0x32e   : > { %10364 = vmatprep.mubr.msk.bf16.mxu0 %vm3499_vm3, %v12094_v10  ;;  %v12288_v10 = vld [vmem:[#allocation2 + $0x98] sm:$0xff]  }
 0x32f   : > { %10285 = vmatmul.mubr.msk.bf16.gmra.mxu1 %vm3499_vm3, %v11896_v36  ;;  %v12279_v36 = vld [vmem:[#allocation2 + $0x90] sm:$0xff]   ;;  %13738 = vst [vmem:[#allocation14_spill] sm:$0xff] %v12288_v10 }
 0x330   : > { %5184 = vmatprep.mubr.bf16.mxu1 %v13719_v52  ;;  %13737 = vst [vmem:[#allocation13_spill] sm:$0xff] %v12279_v36 }
 0x335   : > { %10365 = vmatmul.mubr.msk.bf16.vlgmr.msra.gmra.mxu0 %vm3499_vm3, %v12109_v31  ;;  %v12299_v31 = vld [vmem:[#allocation3 + $0x90] sm:$0xff]  }
 0x336   : > { %10368 = vmatprep.mubr.msk.bf16.mxu0 %vm3499_vm3, %v12112_v42  ;;  %10373 = vmatpush3.bf16.msra.mxu0 %v11859_v49  ;;  %v10886_v42 = vld [vmem:[%s13714_s5 + $0xb0] ss:$8 sps:$4 sm:$0xff]  }
 0x337   : > { %10374 = vmatprep.subr.bf16.mxu0 %v11866_v28  ;;  %5161 = vmatpush1.bf16.msra.mxu1 %v10886_v42 }
 0x338   : > { %5162 = vmatprep.subr.bf16.mxu1 %v10892_v44 }
 0x33a   : > { %10375 = vmatpush3.bf16.msra.mxu0 %v11866_v28 }
 0x33b   : > { %10384 = vmatprep.subr.bf16.mxu0 %v11931_v48  ;;  %5163 = vmatpush1.bf16.msra.mxu1 %v10890_v37 }
 0x33c   : > { %5164 = vmatprep.subr.bf16.mxu1 %v10895_v14 }
 0x33d   : > { %10369 = vmatmul.mubr.msk.bf16.gmra.mxu0 %vm3499_vm3, %v12139_v13 }
 0x33e   : > { %10376 = vmatprep.mubr.msk.bf16.mxu0 %vm3499_vm3, %v12215_v38 }
 0x33f   : > { %5165 = vmatpush1.bf16.msra.mxu1 %v10893_v63  ;;  %v12447_v63 = vld [vmem:[#allocation3 + $0xb8] sm:$0xff]  }
 0x340   : > { %5166 = vmatprep.subr.bf16.mxu1 %v10898_v59 }
 0x343   : > { %5167 = vmatpush1.bf16.msra.mxu1 %v10896_v7 }
 0x344   : > { %10324 = vmatprep.subr.bf16.mxu1 %v11859_v49 }
 0x345   : > { %10377 = vmatmul.mubr.msk.bf16.vlgmr.msra.gmra.mxu0 %vm3499_vm3, %v12226_v11 }
 0x346   : > { %10380 = vmatprep.mubr.msk.bf16.mxu0 %vm3499_vm3, %v12228_v1  ;;  %10385 = vmatpush3.bf16.msra.mxu0 %v11931_v48 }
 0x347   : > { %10386 = vmatprep.subr.bf16.mxu0 %v12023_v6 }
 0x34a   : > { %10387 = vmatpush3.bf16.msra.mxu0 %v12023_v6 }
 0x34b   : > { %10408 = vmatprep.subr.bf16.mxu0 %v11931_v48 }
 0x34d   : > { %10381 = vmatmul.mubr.msk.bf16.gmra.mxu0 %vm3499_vm3, %v12241_v33 }
 0x34e   : > { %10388 = vmatprep.mubr.msk.bf16.mxu0 %vm3499_vm3, %v12271_v34 }
 0x355   : > { %10389 = vmatmul.mubr.msk.bf16.vlgmr.msra.gmra.mxu0 %vm3499_vm3, %v12277_v35 }
 0x356   : > { %10392 = vmatprep.mubr.msk.bf16.mxu0 %vm3499_vm3, %v12279_v36  ;;  %10409 = vmatpush3.bf16.msra.mxu0 %v11931_v48 }
 0x357   : > { %10410 = vmatprep.subr.bf16.mxu0 %v12023_v6 }
 0x35a   : > { %10411 = vmatpush3.bf16.msra.mxu0 %v12023_v6 }
 0x35b   : > { %10432 = vmatprep.subr.bf16.mxu0 %v12091_v29 }
 0x35d   : > { %10393 = vmatmul.mubr.msk.bf16.gmra.mxu0 %vm3499_vm3, %v12288_v10 }
 0x35e   : > { %10412 = vmatprep.mubr.msk.bf16.mxu0 %vm3499_vm3, %v12291_v30 }
 0x365   : > { %10413 = vmatmul.mubr.msk.bf16.vlgmr.msra.gmra.mxu0 %vm3499_vm3, %v12297_v40 }
 0x366   : > { %10416 = vmatprep.mubr.msk.bf16.mxu0 %vm3499_vm3, %v12299_v31  ;;  %10433 = vmatpush3.bf16.msra.mxu0 %v12091_v29 }
 0x367   : > { %10434 = vmatprep.subr.bf16.mxu0 %v12128_v62 }
 0x36a   : > { %10435 = vmatpush3.bf16.msra.mxu0 %v12128_v62 }
 0x36b   : > { %10444 = vmatprep.subr.bf16.mxu0 %v11859_v49 }
 0x36d   : > { %10417 = vmatmul.mubr.msk.bf16.gmra.mxu0 %vm3499_vm3, %v12314_v5 }
 0x36e   : > { %10436 = vmatprep.mubr.msk.bf16.mxu0 %vm3499_vm3, %v12215_v38 }
 0x375   : > { %v12333_v39 = vpop.f32.mrf.mxu0  ;;  %10437 = vmatmul.mubr.msk.bf16.vlgmr.msra.gmra.mxu0 %vm3499_vm3, %v12226_v11 }
 0x376   : > { %10440 = vmatprep.mubr.msk.bf16.mxu0 %vm3499_vm3, %v12228_v1  ;;  %10445 = vmatpush3.bf16.msra.mxu0 %v11859_v49 }
 0x377   : > { %v12346_v15 = vpop.f32.mrf.mxu0  ;;  %10446 = vmatprep.subr.bf16.mxu0 %v11866_v28 }
 0x379   : > { %v12349_v8 = vpop.f32.mrf.mxu0 }
 0x37a   : > { %10447 = vmatpush3.bf16.msra.mxu0 %v11866_v28 }
 0x37b   : > { %v12353_v57 = vpop.f32.mrf.mxu0  ;;  %10456 = vmatprep.subr.bf16.mxu0 %v11931_v48 }
 0x37c   : > { %13739 = vst [vmem:[#allocation15_spill] sm:$0xff] %v12353_v57 }
 0x37d   : > { %v12356_v21 = vpop.f32.mrf.mxu0  ;;  %10441 = vmatmul.mubr.msk.bf16.gmra.mxu0 %vm3499_vm3, %v12241_v33 }
 0x37e   : > { %10448 = vmatprep.mubr.msk.bf16.mxu0 %vm3499_vm3, %v12291_v30 }
 0x37f   : > { %v12362_v47 = vpop.f32.mrf.mxu0 }
 0x381   : > { %v12364_v50 = vpop.f32.mrf.mxu0 }
 0x383   : > { %v12366_v60 = vpop.f32.mrf.mxu0 }
 0x384   : > { %13740 = vst [vmem:[#allocation16_spill] sm:$0xff] %v12366_v60 }
 0x385   : > { %v12368_v13 = vpop.f32.mrf.mxu0  ;;  %10449 = vmatmul.mubr.msk.bf16.vlgmr.msra.gmra.mxu0 %vm3499_vm3, %v12297_v40 }
 0x386   : > { %10452 = vmatprep.mubr.msk.bf16.mxu0 %vm3499_vm3, %v12299_v31  ;;  %10457 = vmatpush3.bf16.msra.mxu0 %v11931_v48 }
 0x387   : > { %v12375_v16 = vpop.f32.mrf.mxu0  ;;  %10458 = vmatprep.subr.bf16.mxu0 %v12023_v6 }
 0x389   : > { %v12378_v26 = vpop.f32.mrf.mxu0 }
 0x38a   : > { %10459 = vmatpush3.bf16.msra.mxu0 %v12023_v6 }
 0x38b   : > { %v12381_v51 = vpop.f32.mrf.mxu0  ;;  %10480 = vmatprep.subr.bf16.mxu0 %v11931_v48 }
 0x38c   : > { %13741 = vst [vmem:[#allocation17_spill] sm:$0xff] %v12381_v51 }
 0x38d   : > { %v12384_v20 = vpop.f32.mrf.mxu0  ;;  %10453 = vmatmul.mubr.msk.bf16.gmra.mxu0 %vm3499_vm3, %v12314_v5 }
 0x38e   : > { %10460 = vmatprep.mubr.msk.bf16.mxu0 %vm3499_vm3, %v10871_v0 }
 0x38f   : > { %v12389_v55 = vpop.f32.mrf.mxu0 }
 0x391   : > { %v12391_v61 = vpop.f32.mrf.mxu0 }
 0x393   : > { %v12393_v56 = vpop.f32.mrf.mxu0 }
 0x394   : > { %13742 = vst [vmem:[#allocation18_spill] sm:$0xff] %v12393_v56 }
 0x395   : > { %v12395_v46 = vpop.f32.mrf.mxu0  ;;  %10461 = vmatmul.mubr.msk.bf16.vlgmr.msra.gmra.mxu0 %vm3499_vm3, %v10872_v32 }
 0x396   : > { %10464 = vmatprep.mubr.msk.bf16.mxu0 %vm3499_vm3, %v10873_v9  ;;  %10481 = vmatpush3.bf16.msra.mxu0 %v11931_v48 }
 0x397   : > { %v12400_v12 = vpop.f32.mrf.mxu0  ;;  %10482 = vmatprep.subr.bf16.mxu0 %v12023_v6 }
 0x399   : > { %v12403_v22 = vpop.f32.mrf.mxu0 }
 0x39a   : > { %10483 = vmatpush3.bf16.msra.mxu0 %v12023_v6 }
 0x39b   : > { %v12406_v41 = vpop.f32.mrf.mxu0  ;;  %10504 = vmatprep.subr.bf16.mxu0 %v12091_v29 }
 0x39d   : > { %v12411_v25 = vpop.f32.mrf.mxu0  ;;  %10465 = vmatmul.mubr.msk.bf16.gmra.mxu0 %vm3499_vm3, %v10874_v3 }
 0x39e   : > { %10484 = vmatprep.mubr.msk.bf16.mxu0 %vm3499_vm3, %v12409_v54 }
 0x39f   : > { %v12416_v4 = vpop.f32.mrf.mxu0 }
 0x3a1   : > { %v12418_v53 = vpop.f32.mrf.mxu0 }
 0x3a3   : > { %v12420_v2 = vpop.f32.mrf.mxu0 }
 0x3a5   : > { %v12426_v38 = vpop.f32.mrf.mxu0  ;;  %10485 = vmatmul.mubr.msk.bf16.vlgmr.msra.gmra.mxu0 %vm3499_vm3, %v12422_v23 }
 0x3a6   : > { %10488 = vmatprep.mubr.msk.bf16.mxu0 %vm3499_vm3, %v12424_v19  ;;  %10505 = vmatpush3.bf16.msra.mxu0 %v12091_v29 }
 0x3a7   : > { %v4414_v11 = vpop.f32.mrf.mxu1  ;;  %v12433_v1 = vpop.f32.mrf.mxu0  ;;  %10506 = vmatprep.subr.bf16.mxu0 %v12128_v62 }
 0x3a8   : > { %v12437_v33 = vadd.f32 %v12333_v39, %v4414_v11 }
 0x3a9   : > { %v4416_v18 = vpop.f32.mrf.mxu1  ;;  %v12439_v42 = vpop.f32.mrf.mxu0 }
 0x3aa   : > { %13743 = vst [vmem:[#allocation19_spill] sm:$0xff] %v12437_v33  ;;  %v12442_v44 = vadd.f32 %v12346_v15, %v4416_v18  ;;  %10507 = vmatpush3.bf16.msra.mxu0 %v12128_v62  ;;  %v12625_v33 = vld [vmem:[%s13712_s3 + $0x18] sm:$0xff]  }
 0x3ab   : > { %v4418_v37 = vpop.f32.mrf.mxu1  ;;  %v12445_v14 = vpop.f32.mrf.mxu0  ;;  %10516 = vmatprep.subr.bf16.mxu0 %v11859_v49 }
 0x3ac   : > { %13744 = vst [vmem:[#allocation20_spill] sm:$0xff] %v12442_v44  ;;  %v12451_v59 = vadd.f32 %v12349_v8, %v4418_v37  ;;  %v12620_v44 = vld [vmem:[#allocation3 + $0xd8] sm:$0xff]  }
 0x3ad   : > { %v12453_v39 = vpop.f32.mrf.mxu1  ;;  %v12455_v7 = vpop.f32.mrf.mxu0  ;;  %10489 = vmatmul.mubr.msk.bf16.gmra.mxu0 %vm3499_vm3, %v12447_v63 }
 0x3ae   : > { %13745 = vst [vmem:[#allocation21_spill] sm:$0xff] %v12451_v59  ;;  %13746 = vst [vmem:[#allocation22_spill] sm:$0xff] %v12453_v39  ;;  %10508 = vmatprep.mubr.msk.bf16.mxu0 %vm3499_vm3, %v12291_v30 }
 0x3af   : > { %v4424_v15 = vpop.f32.mrf.mxu1  ;;  %v12461_v0 = vpop.f32.mrf.mxu0 }
 0x3b0   : > { %v12464_v32 = vadd.f32 %v12356_v21, %v4424_v15 }
 0x3b1   : > { %v4426_v9 = vpop.f32.mrf.mxu1  ;;  %v12466_v3 = vpop.f32.mrf.mxu0 }
 0x3b2   : > { %13747 = vst [vmem:[#allocation23_spill] sm:$0xff] %v12464_v32  ;;  %v12469_v8 = vadd.f32 %v12362_v47, %v4426_v9 }
 0x3b3   : > { %v4428_v11 = vpop.f32.mrf.mxu1  ;;  %v12471_v18 = vpop.f32.mrf.mxu0 }
 0x3b4   : > { %13748 = vst [vmem:[#allocation24_spill] sm:$0xff] %v12469_v8  ;;  %v12474_v37 = vadd.f32 %v12364_v50, %v4428_v11 }
 0x3b5   : > { %v12476_v52 = vpop.f32.mrf.mxu1  ;;  %v12478_v30 = vpop.f32.mrf.mxu0  ;;  %10509 = vmatmul.mubr.msk.bf16.vlgmr.msra.gmra.mxu0 %vm3499_vm3, %v12297_v40 }
 0x3b6   : > { %13749 = vst [vmem:[#allocation25_spill] sm:$0xff] %v12474_v37  ;;  %13750 = vst [vmem:[#allocation26_spill] sm:$0xff] %v12476_v52  ;;  %10512 = vmatprep.mubr.msk.bf16.mxu0 %vm3499_vm3, %v12299_v31  ;;  %10517 = vmatpush3.bf16.msra.mxu0 %v11859_v49 }
 0x3b7   : > { %v4434_v21 = vpop.f32.mrf.mxu1  ;;  %v12485_v47 = vpop.f32.mrf.mxu0  ;;  %10518 = vmatprep.subr.bf16.mxu0 %v11866_v28 }
 0x3b8   : > { %v12489_v50 = vadd.f32 %v12368_v13, %v4434_v21 }
 0x3b9   : > { %v4436_v15 = vpop.f32.mrf.mxu1  ;;  %v12491_v9 = vpop.f32.mrf.mxu0 }
 0x3ba   : > { %13751 = vst [vmem:[#allocation27_spill] sm:$0xff] %v12489_v50  ;;  %v12494_v11 = vadd.f32 %v12375_v16, %v4436_v15  ;;  %10519 = vmatpush3.bf16.msra.mxu0 %v11866_v28  ;;  %v12602_v50 = vld [vmem:[#allocation3 + $0xc8] sm:$0xff]  }
 0x3bb   : > { %v4438_v40 = vpop.f32.mrf.mxu1  ;;  %v12497_v31 = vpop.f32.mrf.mxu0  ;;  %10528 = vmatprep.subr.bf16.mxu0 %v11931_v48 }
 0x3bc   : > { %13752 = vst [vmem:[#allocation28_spill] sm:$0xff] %v12494_v11  ;;  %v12501_v49 = vadd.f32 %v12378_v26, %v4438_v40 }
 0x3bd   : > { %v12503_v56 = vpop.f32.mrf.mxu1  ;;  %v12505_v13 = vpop.f32.mrf.mxu0  ;;  %10513 = vmatmul.mubr.msk.bf16.gmra.mxu0 %vm3499_vm3, %v12314_v5 }
 0x3be   : > { %13753 = vst [vmem:[#allocation29_spill] sm:$0xff] %v12501_v49  ;;  %13754 = vst [vmem:[#allocation30_spill] sm:$0xff] %v12503_v56  ;;  %10520 = vmatprep.mubr.msk.bf16.mxu0 %vm3499_vm3, %v12409_v54 }
 0x3bf   : > { %v4444_v16 = vpop.f32.mrf.mxu1  ;;  %v12511_v28 = vpop.f32.mrf.mxu0 }
 0x3c0   : > { %v12514_v21 = vadd.f32 %v12384_v20, %v4444_v16 }
 0x3c1   : > { %v4446_v15 = vpop.f32.mrf.mxu1  ;;  %v12516_v51 = vpop.f32.mrf.mxu0 }
 0x3c2   : > { %13755 = vst [vmem:[#allocation31_spill] sm:$0xff] %v12514_v21  ;;  %v12519_v26 = vadd.f32 %v12389_v55, %v4446_v15 }
 0x3c3   : > { %v4448_v40 = vpop.f32.mrf.mxu1  ;;  %v12521_v56 = vpop.f32.mrf.mxu0 }
 0x3c4   : > { %13756 = vst [vmem:[#allocation32_spill] sm:$0xff] %v12519_v26  ;;  %v12524_v5 = vadd.f32 %v12391_v61, %v4448_v40 }
 0x3c5   : > { %v12526_v60 = vpop.f32.mrf.mxu1  ;;  %v12528_v52 = vpop.f32.mrf.mxu0  ;;  %10521 = vmatmul.mubr.msk.bf16.vlgmr.msra.gmra.mxu0 %vm3499_vm3, %v12422_v23 }
 0x3c6   : > { %13757 = vst [vmem:[#allocation33_spill] sm:$0xff] %v12524_v5  ;;  %13758 = vst [vmem:[#allocation34_spill] sm:$0xff] %v12526_v60  ;;  %10524 = vmatprep.mubr.msk.bf16.mxu0 %vm3499_vm3, %v12424_v19  ;;  %10529 = vmatpush3.bf16.msra.mxu0 %v11931_v48  ;;  %v10879_v60 = vld [vmem:[#allocation2 + $0xc0] sm:$0xff]  }
 0x3c7   : > { %13759 = vst [vmem:[#allocation35_spill] sm:$0xff] %v12528_v52  ;;  %v12535_v20 = vpop.f32.mrf.mxu1  ;;  %v12537_v55 = vpop.f32.mrf.mxu0  ;;  %10530 = vmatprep.subr.bf16.mxu0 %v12023_v6 }
 0x3c8   : > { %13760 = vst [vmem:[#allocation36_spill] sm:$0xff] %v12537_v55  ;;  %v10881_v55 = vld [vmem:[#allocation2 + $0xd0] sm:$0xff]  }
 0x3c9   : > { %v4612_v61 = vpop.f32.mrf.mxu1  ;;  %v12540_v16 = vpop.f32.mrf.mxu0 }
 0x3ca   : > { %13761 = vst [vmem:[#allocation37_spill] sm:$0xff] %v12540_v16  ;;  %10531 = vmatpush3.bf16.msra.mxu0 %v12023_v6  ;;  %v10880_v16 = vld [vmem:[#allocation2 + $0xc8] sm:$0xff]  }
 0x3cb   : > { %v12543_v15 = vpop.f32.mrf.mxu1  ;;  %v12545_v40 = vpop.f32.mrf.mxu0  ;;  %10552 = vmatprep.subr.bf16.mxu0 %v11931_v48 }
 0x3cc   : > { %13762 = vst [vmem:[#allocation38_spill] sm:$0xff] %v12545_v40 }
 0x3cd   : > { %v12548_v57 = vpop.f32.mrf.mxu1  ;;  %v12550_v39 = vpop.f32.mrf.mxu0  ;;  %10525 = vmatmul.mubr.msk.bf16.gmra.mxu0 %vm3499_vm3, %v12447_v63 }
 0x3ce   : > { %13763 = vst [vmem:[#allocation39_spill] sm:$0xff] %v12550_v39  ;;  %10532 = vmatprep.mubr.msk.bf16.mxu0 %vm3499_vm3, %v10879_v60 }
 0x3cf   : > { %v12555_v10 = vpop.f32.mrf.mxu1  ;;  %v12557_v36 = vpop.f32.mrf.mxu0 }
 0x3d0   : > { %13764 = vst [vmem:[#allocation40_spill] sm:$0xff] %v12557_v36 }
 0x3d1   : > { %v12559_v35 = vpop.f32.mrf.mxu1  ;;  %v12561_v34 = vpop.f32.mrf.mxu0 }
 0x3d2   : > { %13765 = vst [vmem:[#allocation41_spill] sm:$0xff] %v12561_v34 }
 0x3d3   : > { %v12563_v40 = vpop.f32.mrf.mxu1  ;;  %v12565_v52 = vpop.f32.mrf.mxu0 }
 0x3d4   : > { %13766 = vst [vmem:[#allocation42_spill] sm:$0xff] %v12565_v52 }
 0x3d5   : > { %v12567_v39 = vpop.f32.mrf.mxu1  ;;  %v12569_v5 = vpop.f32.mrf.mxu0  ;;  %10533 = vmatmul.mubr.msk.bf16.vlgmr.msra.gmra.mxu0 %vm3499_vm3, %v10880_v16  ;;  %v12583_v16 = vld [vmem:[#allocation3 + $0xc0] sm:$0xff]  }
 0x3d6   : > { %13767 = vst [vmem:[#allocation43_spill] sm:$0xff] %v12569_v5  ;;  %10536 = vmatprep.mubr.msk.bf16.mxu0 %vm3499_vm3, %v10881_v55  ;;  %10553 = vmatpush3.bf16.msra.mxu0 %v11931_v48  ;;  %v10882_v5 = vld [vmem:[#allocation2 + $0xd8] sm:$0xff]  }
 0x3d7   : > { %v10258_v60 = vpop.f32.mrf.mxu1  ;;  %v12574_v36 = vpop.f32.mrf.mxu0  ;;  %10554 = vmatprep.subr.bf16.mxu0 %v12023_v6 }
 0x3d8   : > { %13768 = vst [vmem:[#allocation44_spill] sm:$0xff] %v12574_v36 }
 0x3d9   : > { %v4790_v34 = vpop.f32.mrf.mxu1  ;;  %v12577_v26 = vpop.f32.mrf.mxu0 }
 0x3da   : > { %13769 = vst [vmem:[#allocation45_spill] sm:$0xff] %v12577_v26  ;;  %10555 = vmatpush3.bf16.msra.mxu0 %v12023_v6 }
 0x3db   : > { %v10259_v52 = vpop.f32.mrf.mxu1  ;;  %v12580_v21 = vpop.f32.mrf.mxu0  ;;  %10576 = vmatprep.subr.bf16.mxu0 %v12091_v29 }
 0x3dc   : > { %13770 = vst [vmem:[#allocation46_spill] sm:$0xff] %v12580_v21  ;;  %v5037_v45 = vadd.f32 %v12491_v9, %v10259_v52 }
 0x3dd   : > { %v4793_v55 = vpop.f32.mrf.mxu1  ;;  %v12585_v48 = vpop.f32.mrf.mxu0  ;;  %10537 = vmatmul.mubr.msk.bf16.gmra.mxu0 %vm3499_vm3, %v10882_v5 }
 0x3de   : > { %13771 = vst [vmem:[#allocation47_spill] sm:$0xff] %v12585_v48  ;;  %10556 = vmatprep.mubr.msk.bf16.mxu0 %vm3499_vm3, %v12583_v16  ;;  %v12604_v48 = vld [vmem:[#allocation3 + $0xd0] sm:$0xff]   ;;  %v5059_v9 = vadd.f32 %v12439_v42, %v5037_v45 }
 0x3df   : > { %v12590_v36 = vpop.f32.mrf.mxu1  ;;  %v12592_v26 = vpop.f32.mrf.mxu0 }
 0x3e0   : > { %13772 = vst [vmem:[#allocation48_spill] sm:$0xff] %v12592_v26 }
 0x3e1   : > { %v12594_v6 = vpop.f32.mrf.mxu1  ;;  %v12596_v21 = vpop.f32.mrf.mxu0 }
 0x3e2   : > { %13773 = vst [vmem:[#allocation49_spill] sm:$0xff] %v12596_v21 }
 0x3e3   : > { %v12598_v49 = vpop.f32.mrf.mxu1  ;;  %v12600_v11 = vpop.f32.mrf.mxu0 }
 0x3e4   : > { %13774 = vst [vmem:[#allocation50_spill] sm:$0xff] %v12600_v11  ;;  %v5026_v11 = vadd.f32 %v12485_v47, %v4790_v34  ;;  %v5029_v34 = vadd.f32 %v12497_v31, %v4793_v55 }
 0x3e5   : > { %v4809_v5 = vpop.f32.mrf.mxu1  ;;  %v12606_v37 = vpop.f32.mrf.mxu0  ;;  %10557 = vmatmul.mubr.msk.bf16.vlgmr.msra.gmra.mxu0 %vm3499_vm3, %v12602_v50 }
 0x3e6   : > { %13775 = vst [vmem:[#allocation51_spill] sm:$0xff] %v12606_v37  ;;  %10560 = vmatprep.mubr.msk.bf16.mxu0 %vm3499_vm3, %v12604_v48  ;;  %10577 = vmatpush3.bf16.msra.mxu0 %v12091_v29 }
 0x3e7   : > { %v10282_v21 = vpop.f32.mrf.mxu1  ;;  %v12613_v26 = vpop.f32.mrf.mxu0  ;;  %10578 = vmatprep.subr.bf16.mxu0 %v12128_v62 }
 0x3e8   : > { %13776 = vst [vmem:[#allocation52_spill] sm:$0xff] %v12613_v26  ;;  %v5056_v26 = vadd.f32 %v5026_v11, %v12433_v1  ;;  %v4961_v58 = vadd.f32 %v10282_v21, %v12535_v20 }
 0x3e9   : > { %v4952_v8 = vpop.f32.mrf.mxu1  ;;  %v12617_v32 = vpop.f32.mrf.mxu0 }
 0x3ea   : > { %13777 = vst [vmem:[#allocation53_spill] sm:$0xff] %v12617_v32  ;;  %v4953_v59 = vadd.f32 %v4952_v8, %v4612_v61  ;;  %10579 = vmatpush3.bf16.msra.mxu0 %v12128_v62  ;;  %v4985_v21 = vadd.f32 %v12395_v46, %v4961_v58 }
 0x3eb   : > { %v10283_v37 = vpop.f32.mrf.mxu1  ;;  %10588 = vmatprep.subr.bf16.mxu0 %v12625_v33  ;;  %v12632_v61 = vpop.f32.mrf.mxu0 }
 0x3ec   : > { %v4983_v47 = vadd.f32 %v4953_v59, %v12400_v12  ;;  %v4964_v8 = vadd.f32 %v10283_v37, %v12543_v15  ;;  %v5034_v12 = vadd.f32 %v12478_v30, %v10258_v60  ;;  %v5057_v59 = vadd.f32 %v5029_v34, %v12445_v14 }
 0x3ed   : > { %v4955_v32 = vpop.f32.mrf.mxu1  ;;  %10561 = vmatmul.mubr.msk.bf16.gmra.mxu0 %vm3499_vm3, %v12620_v44  ;;  %v12645_v31 = vpop.f32.mrf.mxu0 }
 0x3ee   : > { %v5064_v27 = vmax.f32 %v4983_v47, %v5056_v26  ;;  %v4956_v17 = vadd.f32 %v4955_v32, %v12548_v57  ;;  %10580 = vmatprep.mubr.msk.bf16.mxu0 %vm3499_vm3, %v12409_v54  ;;  %v4986_v37 = vadd.f32 %v12403_v22, %v4964_v8  ;;  %v5058_v26 = vadd.f32 %v12426_v38, %v5034_v12  ;;  %v12654_v22 = vld [vmem:[%s13713_s4] ss:$0 sm:$0xff] }
 0x3ef   : > { %v10286_v1 = vpop.f32.mrf.mxu1  ;;  %v12658_v14 = vpop.f32.mrf.mxu0 }
 0x3f0   : > { %v4984_v11 = vadd.f32 %v4956_v17, %v12406_v41  ;;  %v5072_v57 = vadd.f32 %v11998_v43, %v5064_v27  ;;  %v5067_v30 = vmax.f32 %v4986_v37, %v5059_v9  ;;  %v5045_v41 = vadd.f32 %v12521_v56, %v4809_v5  ;;  %v12670_v56 = vld [vmem:[%s13712_s3 + $0x10] sm:$0xff]  }
 0x3f1   : > { %v4968_v52 = vpop.f32.mrf.mxu1  ;;  %v5066_v43 = vmax.f32 %v4985_v21, %v5058_v26  ;;  %v12676_v20 = vpop.f32.mrf.mxu0  ;;  %v4977_v47 = vadd.f32 %v10286_v1, %v12555_v10 }
 0x3f2   : > { %v5065_v32 = vmax.f32 %v4984_v11, %v5057_v59  ;;  %v5080_v27 = vmax.f32 %v5072_v57, 0.0  ;;  %v4969_v46 = vadd.f32 %v4968_v52, %v12559_v35  ;;  %v5075_v42 = vadd.f32 %v12654_v22, %v5067_v30 }
 0x3f3   : > { %v10287_v54 = vpop.f32.mrf.mxu1  ;;  %v5061_v15 = vadd.f32 %v5045_v41, %v12471_v18  ;;  %v12690_v18 = vpop.f32.mrf.mxu0  ;;  %v11000_v41 = vld [vmem:[#allocation2 + $0x48] sm:$0xff]  }
 0x3f4   : > { %v5073_v17 = vadd.f32 %v12654_v22, %v5065_v32  ;;  %v4987_v60 = vadd.f32 %v4969_v46, %v12416_v4  ;;  %v4980_v5 = vadd.f32 %v10287_v54, %v12563_v40  ;;  %v5053_v4 = vadd.f32 %v12516_v51, %v12598_v49  ;;  %v10905_v46 = vld [vmem:[%s13714_s5 + $0xd0] ss:$8 sps:$4 sm:$0xff]  }
 0x3f5   : > { %v4971_v45 = vpop.f32.mrf.mxu1  ;;  %10581 = vmatmul.mubr.msk.bf16.vlgmr.msra.gmra.mxu0 %vm3499_vm3, %v12422_v23  ;;  %v5042_v23 = vadd.f32 %v12511_v28, %v12594_v6  ;;  %v13778_v28 = vmov 0   ;;  %v5083_v6 = vmax.f32 %v5075_v42, 0.0  ;;  %v5050_v40 = vadd.f32 %v12505_v13, %v12590_v36  ;;  %v12705_v51 = vpop.f32.mrf.mxu0 }
 0x3f6   : > { %v5081_v58 = vmax.f32 %v5073_v17, 0.0  ;;  %10584 = vmatprep.mubr.msk.bf16.mxu0 %vm3499_vm3, %v12424_v19  ;;  %10589 = vmatpush3.bf16.msra.mxu0 %v12625_v33  ;;  %v4972_v38 = vadd.f32 %v4971_v45, %v12567_v39  ;;  %v5074_v39 = vadd.f32 %v12654_v22, %v5066_v43  ;;  %v4990_v12 = vadd.f32 %v12418_v53, %v4980_v5  ;;  %v13779_v17 = vld [vmem:[#allocation8_spill] sm:$0xff]  ;;  %v13782_v45 = vld [vmem:[#allocation7_spill] sm:$0xff] }
 0x3f7   : > { %10590 = vmatprep.subr.bf16.mxu0 %v12670_v56  ;;  %v5060_v55 = vadd.f32 %v5042_v23, %v12461_v0  ;;  %v5063_v10 = vadd.f32 %v12466_v3, %v5053_v4  ;;  %v4989_v49 = vadd.f32 %v12411_v25, %v4977_v47  ;;  %v5062_v36 = vadd.f32 %v12455_v7, %v5050_v40  ;;  %v12713_v59 = vpop.f32.mrf.mxu0  ;;  %v10904_v43 = vld [vmem:[%s13714_s5 + $0xe4] ss:$8 sps:$4 sm:$0xff]   ;;  %v10908_v23 = vld [vmem:[%s13714_s5 + $0xc0] ss:$8 sps:$4 sm:$0xff]  }
 0x3f8   : > { %v5088_v35 = vpack.c.bf16 %v5081_v58, %v5080_v27  ;;  %v4988_v19 = vadd.f32 %v4972_v38, %v12420_v2  ;;  %v5082_v34 = vmax.f32 %v5074_v39, 0.0  ;;  %v10902_v27 = vld [vmem:[%s13714_s5 + $0xe0] ss:$8 sps:$4 sm:$0xff]   ;;  %v10907_v58 = vld [vmem:[%s13714_s5 + $0xd4] ss:$8 sps:$4 sm:$0xff]  }
 0x3f9   : > { %v5068_v0 = vmax.f32 %v4987_v60, %v5060_v55  ;;  %v5071_v13 = vmax.f32 %v4990_v12, %v5063_v10  ;;  %v5070_v37 = vmax.f32 %v4989_v49, %v5062_v36  ;;  %v12722_v7 = vpop.f32.mrf.mxu0  ;;  %v10910_v38 = vld [vmem:[%s13714_s5 + $0xc4] ss:$8 sps:$4 sm:$0xff]  }
 0x3fa   : > { %9081 = vmatmul.mubr.msk.bf16.vlgmr.msra.gmra.mxu1 %vm4367_vm4, %v5088_v35  ;;  %10591 = vmatpush3.bf16.msra.mxu0 %v12670_v56  ;;  %v5069_v2 = vmax.f32 %v4988_v19, %v5061_v15  ;;  %v5089_v8 = vpack.c.bf16 %v5083_v6, %v5082_v34  ;;  %v13783_v35 = vld [vmem:[#allocation19_spill] sm:$0xff]  ;;  %v13784_v39 = vld [vmem:[#allocation20_spill] sm:$0xff]  ;;  %v13785_v6 = vld [vmem:[#allocation21_spill] sm:$0xff] }
 0x3fb   : > { %10325 = vmatpush3.bf16.msra.mxu1 %v12625_v33  ;;  %5194 = vmatprep.mubr.bf16.mxu1 %v13778_v28  ;;  %v5076_v1 = vadd.f32 %v12654_v22, %v5068_v0  ;;  %v5079_v25 = vadd.f32 %v12654_v22, %v5071_v13  ;;  %v5078_v52 = vadd.f32 %v12654_v22, %v5070_v37  ;;  %v12728_v21 = vpop.f32.mrf.mxu0  ;;  %v13786_v34 = vld [vmem:[#allocation23_spill] sm:$0xff]  ;;  %v13787_v40 = vld [vmem:[#allocation24_spill] sm:$0xff] }
 0x3fc   : > { %10326 = vmatprep.subr.bf16.mxu1 %v12670_v56  ;;  %10600 = vmatprep.subr.bf16.mxu0 %v12091_v29  ;;  %v13790_v36 = vld [vmem:[#allocation27_spill] sm:$0xff]  ;;  %v13791_v37 = vld [vmem:[#allocation28_spill] sm:$0xff] }
 0x3fd   : > { %10585 = vmatmul.mubr.msk.bf16.gmra.mxu0 %vm3499_vm3, %v12447_v63  ;;  %v5077_v63 = vadd.f32 %v12654_v22, %v5069_v2  ;;  %v5084_v11 = vmax.f32 %v5076_v1, 0.0  ;;  %v5087_v9 = vmax.f32 %v5079_v25, 0.0  ;;  %v5086_v57 = vmax.f32 %v5078_v52, 0.0  ;;  %v12734_v54 = vpop.f32.mrf.mxu0 }
 0x3fe   : > { %10592 = vmatprep.mubr.msk.bf16.mxu0 %vm3499_vm3, %v12583_v16 }
 0x3ff   : > { %10327 = vmatpush3.bf16.msra.mxu1 %v12670_v56  ;;  %v5085_v53 = vmax.f32 %v5077_v63, 0.0  ;;  %v5091_v32 = vpack.c.bf16 %v5087_v9, %v5086_v57  ;;  %v12739_v26 = vpop.f32.mrf.mxu0  ;;  %v13788_v63 = vld [vmem:[#allocation25_spill] sm:$0xff] }
 0x400   : > { %10348 = vmatprep.subr.bf16.mxu1 %v12091_v29 }
 0x401   : > { %v5090_v3 = vpack.c.bf16 %v5085_v53, %v5084_v11  ;;  %v12745_v30 = vpop.f32.mrf.mxu0 }
 0x402   : > { %9082 = vmatmul.mubr.msk.bf16.gmra.mxu1 %vm4367_vm4, %v5089_v8 }
 0x403   : > { %5204 = vmatprep.mubr.bf16.mxu1 %v13778_v28 }
 0x405   : > { %10593 = vmatmul.mubr.msk.bf16.vlgmr.msra.gmra.mxu0 %vm3499_vm3, %v12602_v50 }
 0x406   : > { %10596 = vmatprep.mubr.msk.bf16.mxu0 %vm3499_vm3, %v12604_v48  ;;  %10601 = vmatpush3.bf16.msra.mxu0 %v12091_v29 }
 0x407   : > { %10602 = vmatprep.subr.bf16.mxu0 %v12128_v62 }
 0x40a   : > { %9083 = vmatmul.mubr.msk.bf16.gmra.mxu1 %vm4367_vm4, %v5090_v3  ;;  %10603 = vmatpush3.bf16.msra.mxu0 %v12128_v62  ;;  %v13792_v3 = vld [vmem:[#allocation29_spill] sm:$0xff] }
 0x40b   : > { %5214 = vmatprep.mubr.bf16.mxu1 %v13778_v28 }
 0x40d   : > { %10597 = vmatmul.mubr.msk.bf16.gmra.mxu0 %vm3499_vm3, %v12620_v44 }
 0x40e   : > { %10604 = vmatprep.mubr.msk.bf16.mxu0 %vm3499_vm3, %v12583_v16  ;;  %v13780_v16 = vld [vmem:[#allocation9_spill] sm:$0xff] }
 0x412   : > { %9084 = vmatmul.mubr.msk.bf16.gmra.mxu1 %vm4367_vm4, %v5091_v32  ;;  %v13794_v32 = vld [vmem:[#allocation31_spill] sm:$0xff] }
 0x413   : > { %10328 = vmatprep.mubr.msk.bf16.mxu1 %vm3499_vm3, %v12184_v24  ;;  %v12753_v24 = vpop.f32.mrf.mxu0 }
 0x415   : > { %10605 = vmatmul.mubr.msk.bf16.vlgmr.msra.gmra.mxu0 %vm3499_vm3, %v12602_v50  ;;  %v13781_v50 = vld [vmem:[#allocation10_spill] sm:$0xff] }
 0x416   : > { %10608 = vmatprep.mubr.msk.bf16.mxu0 %vm3499_vm3, %v12604_v48  ;;  %v10999_v48 = vld [vmem:[#allocation2 + $0x40] sm:$0xff]  }
 0x41a   : > { %10329 = vmatmul.mubr.msk.bf16.vlgmr.msra.gmra.mxu1 %vm3499_vm3, %v13779_v17 }
 0x41b   : > { %10332 = vmatprep.mubr.msk.bf16.mxu1 %vm3499_vm3, %v13780_v16  ;;  %10349 = vmatpush3.bf16.msra.mxu1 %v12091_v29  ;;  %v11001_v29 = vld [vmem:[#allocation2 + $0x50] sm:$0xff]  }
 0x41c   : > { %10350 = vmatprep.subr.bf16.mxu1 %v12128_v62 }
 0x41d   : > { %10609 = vmatmul.mubr.msk.bf16.gmra.mxu0 %vm3499_vm3, %v12620_v44  ;;  %v10899_v44 = vld [vmem:[%s13714_s5 + $0xf0] ss:$8 sps:$4 sm:$0xff]  }
 0x41e   : > { %8208 = vmatprep.mubr.bf16.mxu0 %v13778_v28 }
 0x41f   : > { %10351 = vmatpush3.bf16.msra.mxu1 %v12128_v62  ;;  %v10901_v62 = vld [vmem:[%s13714_s5 + $0xf4] ss:$8 sps:$4 sm:$0xff]  }
 0x420   : > { %5823 = vmatprep.subr.bf16.mxu1 %v10901_v62 }
 0x422   : > { %10333 = vmatmul.mubr.msk.bf16.gmra.mxu1 %vm3499_vm3, %v13781_v50  ;;  %v13795_v50 = vld [vmem:[#allocation32_spill] sm:$0xff] }
 0x423   : > { %10352 = vmatprep.mubr.msk.bf16.mxu1 %vm3499_vm3, %v10999_v48 }
 0x42a   : > { %10353 = vmatmul.mubr.msk.bf16.vlgmr.msra.gmra.mxu1 %vm3499_vm3, %v11000_v41 }
 0x42b   : > { %10356 = vmatprep.mubr.msk.bf16.mxu1 %vm3499_vm3, %v11001_v29  ;;  %5824 = vmatpush1.bf16.msra.mxu1 %v10899_v44  ;;  %v13796_v29 = vld [vmem:[#allocation33_spill] sm:$0xff] }
 0x42c   : > { %5825 = vmatprep.subr.bf16.mxu1 %v10904_v43 }
 0x42f   : > { %5826 = vmatpush1.bf16.msra.mxu1 %v10902_v27 }
 0x430   : > { %5827 = vmatprep.subr.bf16.mxu1 %v10907_v58 }
 0x432   : > { %10357 = vmatmul.mubr.msk.bf16.gmra.mxu1 %vm3499_vm3, %v13782_v45 }
 0x433   : > { %5847 = vmatprep.mubr.bf16.mxu1 %v13778_v28  ;;  %5828 = vmatpush1.bf16.msra.mxu1 %v10905_v46 }
 0x434   : > { %5829 = vmatprep.subr.bf16.mxu1 %v10910_v38 }
 0x437   : > { %5830 = vmatpush1.bf16.msra.mxu1 %v10908_v23 }
 0x438   : > { %10396 = vmatprep.subr.bf16.mxu1 %v12625_v33 }
 0x4ba   : > { %v5186_v42 = vpop.f32.mrf.mxu1 }
 0x4bb   : > { %v12793_v19 = vadd.f32 %v5186_v42, %v13783_v35 }
 0x4bc   : > { %v5188_v15 = vpop.f32.mrf.mxu1 }
 0x4bd   : > { %v12796_v60 = vadd.f32 %v5188_v15, %v13784_v39 }
 0x4be   : > { %v5190_v55 = vpop.f32.mrf.mxu1 }
 0x4bf   : > { %v12799_v5 = vadd.f32 %v5190_v55, %v13785_v6  ;;  %v13798_v55 = vld [vmem:[#allocation36_spill] sm:$0xff] }
 0x4c0   : > { %v12801_v2 = vpop.f32.mrf.mxu1 }
 0x4c2   : > { %v5196_v4 = vpop.f32.mrf.mxu1 }
 0x4c3   : > { %v12804_v47 = vadd.f32 %v5196_v4, %v13786_v34  ;;  %v13799_v34 = vld [vmem:[#allocation52_spill] sm:$0xff] }
 0x4c4   : > { %v5198_v0 = vpop.f32.mrf.mxu1 }
 0x4c5   : > { %v12807_v8 = vadd.f32 %v5198_v0, %v13787_v40 }
 0x4c6   : > { %v5200_v12 = vpop.f32.mrf.mxu1 }
 0x4c7   : > { %v12810_v10 = vadd.f32 %v5200_v12, %v13788_v63  ;;  %v13800_v12 = vld [vmem:[#allocation44_spill] sm:$0xff] }
 0x4c8   : > { %v12812_v49 = vpop.f32.mrf.mxu1 }
 0x4c9   : > { %13789 = vst [vmem:[#allocation8_spill] sm:$0xff] %v12812_v49 }
 0x4ca   : > { %v5206_v1 = vpop.f32.mrf.mxu1 }
 0x4cb   : > { %v12815_v13 = vadd.f32 %v5206_v1, %v13790_v36  ;;  %v13801_v1 = vld [vmem:[#allocation37_spill] sm:$0xff] }
 0x4cc   : > { %v5208_v53 = vpop.f32.mrf.mxu1 }
 0x4cd   : > { %v12818_v11 = vadd.f32 %v5208_v53, %v13791_v37 }
 0x4ce   : > { %v5210_v25 = vpop.f32.mrf.mxu1 }
 0x4cf   : > { %v12821_v52 = vadd.f32 %v5210_v25, %v13792_v3  ;;  %v13802_v25 = vld [vmem:[#allocation35_spill] sm:$0xff] }
 0x4d0   : > { %v12823_v9 = vpop.f32.mrf.mxu1 }
 0x4d1   : > { %13793 = vst [vmem:[#allocation9_spill] sm:$0xff] %v12823_v9 }
 0x4d2   : > { %v5216_v57 = vpop.f32.mrf.mxu1 }
 0x4d3   : > { %v12826_v17 = vadd.f32 %v5216_v57, %v13794_v32  ;;  %v13803_v32 = vld [vmem:[#allocation38_spill] sm:$0xff] }
 0x4d4   : > { %v5218_v16 = vpop.f32.mrf.mxu1 }
 0x4d5   : > { %v12829_v48 = vadd.f32 %v5218_v16, %v13795_v50 }
 0x4d6   : > { %v5220_v41 = vpop.f32.mrf.mxu1 }
 0x4d7   : > { %v12832_v45 = vadd.f32 %v5220_v41, %v13796_v29  ;;  %v13804_v29 = vld [vmem:[#allocation45_spill] sm:$0xff] }
 0x4d8   : > { %v12834_v62 = vpop.f32.mrf.mxu1 }
 0x4d9   : > { %13797 = vst [vmem:[#allocation10_spill] sm:$0xff] %v12834_v62 }
 0x4da   : > { %v10330_v44 = vpop.f32.mrf.mxu1 }
 0x4db   : > { %v5697_v50 = vadd.f32 %v12705_v51, %v10330_v44 }
 0x4dc   : > { %v5453_v43 = vpop.f32.mrf.mxu1 }
 0x4dd   : > { %v5689_v15 = vadd.f32 %v12713_v59, %v5453_v43 }
 0x4de   : > { %v10331_v27 = vpop.f32.mrf.mxu1 }
 0x4df   : > { %v5719_v0 = vadd.f32 %v5689_v15, %v13799_v34  ;;  %v5700_v37 = vadd.f32 %v12722_v7, %v10331_v27  ;;  %v13808_v34 = vld [vmem:[#allocation51_spill] sm:$0xff] }
 0x4e0   : > { %v5456_v58 = vpop.f32.mrf.mxu1 }
 0x4e1   : > { %v5692_v40 = vadd.f32 %v12728_v21, %v5456_v58  ;;  %v13805_v21 = vld [vmem:[#allocation46_spill] sm:$0xff] }
 0x4e2   : > { %v10334_v46 = vpop.f32.mrf.mxu1 }
 0x4e3   : > { %v5720_v41 = vadd.f32 %v5692_v40, %v12632_v61 }
 0x4e4   : > { %v5469_v38 = vpop.f32.mrf.mxu1 }
 0x4e6   : > { %v10335_v23 = vpop.f32.mrf.mxu1 }
 0x4e8   : > { %v5472_v42 = vpop.f32.mrf.mxu1 }
 0x4e9   : > { %v5708_v61 = vadd.f32 %v12753_v24, %v5472_v42  ;;  %v13812_v24 = vld [vmem:[#allocation48_spill] sm:$0xff] }
 0x4ea   : > { %v10354_v35 = vpop.f32.mrf.mxu1 }
 0x4eb   : > { %v5624_v3 = vadd.f32 %v10354_v35, %v13802_v25 }
 0x4ec   : > { %v5615_v39 = vpop.f32.mrf.mxu1 }
 0x4ed   : > { %v5616_v6 = vadd.f32 %v5615_v39, %v13798_v55  ;;  %v13806_v39 = vld [vmem:[#allocation53_spill] sm:$0xff] }
 0x4ee   : > { %v10355_v4 = vpop.f32.mrf.mxu1  ;;  %v5722_v55 = vadd.f32 %v13806_v39, %v5700_v37  ;;  %v13810_v37 = vld [vmem:[#allocation42_spill] sm:$0xff]  ;;  %v13814_v39 = vld [vmem:[#allocation39_spill] sm:$0xff] }
 0x4ef   : > { %v5646_v63 = vadd.f32 %v5616_v6, %v13800_v12  ;;  %v5627_v36 = vadd.f32 %v10355_v4, %v13801_v1  ;;  %v13807_v6 = vld [vmem:[#allocation43_spill] sm:$0xff] }
 0x4f0   : > { %v5618_v53 = vpop.f32.mrf.mxu1  ;;  %v5648_v4 = vadd.f32 %v13807_v6, %v5624_v3  ;;  %v5705_v3 = vadd.f32 %v12739_v26, %v5469_v38  ;;  %v13813_v38 = vld [vmem:[#allocation41_spill] sm:$0xff] }
 0x4f1   : > { %v5727_v57 = vmax.f32 %v5646_v63, %v5719_v0  ;;  %v5619_v59 = vadd.f32 %v5618_v53, %v13803_v32  ;;  %v5649_v43 = vadd.f32 %v13804_v29, %v5627_v36  ;;  %v5721_v0 = vadd.f32 %v13808_v34, %v5697_v50  ;;  %v13809_v36 = vld [vmem:[#allocation40_spill] sm:$0xff] }
 0x4f2   : > { %v10358_v16 = vpop.f32.mrf.mxu1 }
 0x4f3   : > { %v5647_v58 = vadd.f32 %v5619_v59, %v13805_v21  ;;  %v5735_v7 = vadd.f32 %v12654_v22, %v5727_v57  ;;  %v5730_v12 = vmax.f32 %v5649_v43, %v5722_v55  ;;  %v5729_v40 = vmax.f32 %v5648_v4, %v5721_v0  ;;  %v13811_v59 = vld [vmem:[#allocation50_spill] sm:$0xff] }
 0x4f4   : > { %v5631_v15 = vpop.f32.mrf.mxu1  ;;  %v5723_v43 = vadd.f32 %v5705_v3, %v12658_v14  ;;  %v5640_v55 = vadd.f32 %v10358_v16, %v13814_v39  ;;  %v5713_v4 = vadd.f32 %v12734_v54, %v10334_v46  ;;  %v13820_v3 = vld [vmem:[#allocation14_spill] sm:$0xff] }
 0x4f5   : > { %v5728_v27 = vmax.f32 %v5647_v58, %v5720_v41  ;;  %v5743_v63 = vmax.f32 %v5735_v7, 0.0  ;;  %v5632_v53 = vadd.f32 %v5631_v15, %v13809_v36  ;;  %v5738_v57 = vadd.f32 %v12654_v22, %v5730_v12 }
 0x4f6   : > { %v10359_v35 = vpop.f32.mrf.mxu1  ;;  %v5724_v41 = vadd.f32 %v5708_v61, %v12690_v18  ;;  %v5737_v29 = vadd.f32 %v12654_v22, %v5729_v40  ;;  %v5716_v18 = vadd.f32 %v12745_v30, %v10335_v23  ;;  %v13816_v23 = vld [vmem:[#allocation47_spill] sm:$0xff]  ;;  %v5725_v54 = vadd.f32 %v12645_v31, %v5713_v4  ;;  %v13818_v31 = vld [vmem:[#allocation12_spill] sm:$0xff] }
 0x4f7   : > { %v5736_v51 = vadd.f32 %v12654_v22, %v5728_v27  ;;  %v5650_v42 = vadd.f32 %v5632_v53, %v13812_v24  ;;  %v5746_v26 = vmax.f32 %v5738_v57, 0.0  ;;  %v5643_v21 = vadd.f32 %v10359_v35, %v13813_v38  ;;  %v13815_v27 = vld [vmem:[#allocation49_spill] sm:$0xff]  ;;  %v12878_v35 = vld [vmem:[%s13712_s3 + $0x8] sm:$0xff]   ;;  %v13817_v53 = vld [vmem:[#allocation11_spill] sm:$0xff] }
 0x4f8   : > { %v5634_v44 = vpop.f32.mrf.mxu1  ;;  %v5745_v15 = vmax.f32 %v5737_v29, 0.0  ;;  %v5726_v30 = vadd.f32 %v12676_v20, %v5716_v18  ;;  %v5652_v16 = vadd.f32 %v13816_v23, %v5640_v55  ;;  %v11004_v57 = vld [vmem:[#allocation2 + $0x60] sm:$0xff]   ;;  %v10911_v29 = vld [vmem:[%s13714_s5 + $0x130] ss:$8 sps:$4 sm:$0xff]  }
 0x4f9   : > { %v5744_v1 = vmax.f32 %v5736_v51, 0.0  ;;  %v5635_v25 = vadd.f32 %v5634_v44, %v13810_v37  ;;  %v5731_v6 = vmax.f32 %v5650_v42, %v5723_v43  ;;  %v5653_v34 = vadd.f32 %v13815_v27, %v5643_v21  ;;  %v13819_v37 = vld [vmem:[#allocation13_spill] sm:$0xff]  ;;  %v10916_v24 = vld [vmem:[%s13714_s5 + $0x124] ss:$8 sps:$4 sm:$0xff]   ;;  %v10914_v42 = vld [vmem:[%s13714_s5 + $0x120] ss:$8 sps:$4 sm:$0xff]  }
 0x4fa   : > { %v5752_v7 = vpack.c.bf16 %v5746_v26, %v5745_v15  ;;  %v5733_v51 = vmax.f32 %v5652_v16, %v5725_v54  ;;  %v10919_v43 = vld [vmem:[%s13714_s5 + $0x114] ss:$8 sps:$4 sm:$0xff]   ;;  %v10917_v26 = vld [vmem:[%s13714_s5 + $0x110] ss:$8 sps:$4 sm:$0xff]   ;;  %v10922_v38 = vld [vmem:[%s13714_s5 + $0x104] ss:$8 sps:$4 sm:$0xff]  }
 0x4fb   : > { %v5751_v32 = vpack.c.bf16 %v5744_v1, %v5743_v63  ;;  %v5651_v50 = vadd.f32 %v5635_v25, %v13811_v59  ;;  %v5739_v0 = vadd.f32 %v12654_v22, %v5731_v6  ;;  %v5734_v46 = vmax.f32 %v5653_v34, %v5726_v30  ;;  %v12902_v25 = vld [vmem:[%s13712_s3] sm:$0xff]   ;;  %v11006_v59 = vld [vmem:[#allocation2 + $0x70] sm:$0xff]  }
 0x4fc   : > { %v5741_v63 = vadd.f32 %v12654_v22, %v5733_v51  ;;  %v10920_v21 = vld [vmem:[%s13714_s5 + $0x100] ss:$8 sps:$4 sm:$0xff]  }
 0x4fd   : > { %9125 = vmatmul.mubr.msk.bf16.vlgmr.msra.gmra.mxu1 %vm4367_vm4, %v5751_v32  ;;  %v5732_v58 = vmax.f32 %v5651_v50, %v5724_v41  ;;  %v5747_v61 = vmax.f32 %v5739_v0, 0.0  ;;  %v5742_v44 = vadd.f32 %v12654_v22, %v5734_v46  ;;  %v11005_v32 = vld [vmem:[#allocation2 + $0x68] sm:$0xff]   ;;  %v11007_v50 = vld [vmem:[#allocation2 + $0x78] sm:$0xff]  }
 0x4fe   : > { %10397 = vmatpush3.bf16.msra.mxu1 %v12625_v33  ;;  %5857 = vmatprep.mubr.bf16.mxu1 %v13778_v28  ;;  %v5749_v1 = vmax.f32 %v5741_v63, 0.0  ;;  %v10913_v41 = vld [vmem:[%s13714_s5 + $0x134] ss:$8 sps:$4 sm:$0xff]  }
 0x4ff   : > { %10398 = vmatprep.subr.bf16.mxu1 %v12670_v56  ;;  %v5740_v14 = vadd.f32 %v12654_v22, %v5732_v58  ;;  %v5750_v20 = vmax.f32 %v5742_v44, 0.0  ;;  %v12937_v58 = vpop.f32.mrf.mxu0 }
 0x501   : > { %v5748_v12 = vmax.f32 %v5740_v14, 0.0  ;;  %v5754_v36 = vpack.c.bf16 %v5750_v20, %v5749_v1  ;;  %v12940_v18 = vpop.f32.mrf.mxu0 }
 0x502   : > { %10399 = vmatpush3.bf16.msra.mxu1 %v12670_v56 }
 0x503   : > { %10420 = vmatprep.subr.bf16.mxu1 %v12878_v35  ;;  %v5753_v40 = vpack.c.bf16 %v5748_v12, %v5747_v61  ;;  %v12942_v15 = vpop.f32.mrf.mxu0 }
 0x505   : > { %9126 = vmatmul.mubr.msk.bf16.gmra.mxu1 %vm4367_vm4, %v5752_v7  ;;  %v12944_v39 = vpop.f32.mrf.mxu0 }
 0x506   : > { %5867 = vmatprep.mubr.bf16.mxu1 %v13778_v28 }
 0x507   : > { %v12946_v55 = vpop.f32.mrf.mxu0 }
 0x509   : > { %v12948_v6 = vpop.f32.mrf.mxu0 }
 0x50b   : > { %v12950_v4 = vpop.f32.mrf.mxu0 }
 0x50d   : > { %9127 = vmatmul.mubr.msk.bf16.gmra.mxu1 %vm4367_vm4, %v5753_v40  ;;  %v12952_v7 = vpop.f32.mrf.mxu0 }
 0x50e   : > { %5877 = vmatprep.mubr.bf16.mxu1 %v13778_v28 }
 0x50f   : > { %v12954_v27 = vpop.f32.mrf.mxu0 }
 0x511   : > { %v12956_v34 = vpop.f32.mrf.mxu0 }
 0x513   : > { %v12958_v14 = vpop.f32.mrf.mxu0 }
 0x515   : > { %9128 = vmatmul.mubr.msk.bf16.gmra.mxu1 %vm4367_vm4, %v5754_v36  ;;  %v12960_v30 = vpop.f32.mrf.mxu0 }
 0x516   : > { %10400 = vmatprep.mubr.msk.bf16.mxu1 %vm3499_vm3, %v13817_v53 }
 0x517   : > { %v12962_v23 = vpop.f32.mrf.mxu0 }
 0x519   : > { %v12964_v16 = vpop.f32.mrf.mxu0 }
 0x51b   : > { %v12966_v0 = vpop.f32.mrf.mxu0 }
 0x51d   : > { %10401 = vmatmul.mubr.msk.bf16.vlgmr.msra.gmra.mxu1 %vm3499_vm3, %v13818_v31  ;;  %v12968_v54 = vpop.f32.mrf.mxu0 }
 0x51e   : > { %10404 = vmatprep.mubr.msk.bf16.mxu1 %vm3499_vm3, %v13819_v37  ;;  %10421 = vmatpush3.bf16.msra.mxu1 %v12878_v35 }
 0x51f   : > { %10422 = vmatprep.subr.bf16.mxu1 %v12902_v25  ;;  %v12970_v12 = vpop.f32.mrf.mxu0 }
 0x521   : > { %v6213_v63 = vpop.f32.mrf.mxu0 }
 0x522   : > { %10423 = vmatpush3.bf16.msra.mxu1 %v12902_v25 }
 0x523   : > { %6486 = vmatprep.subr.bf16.mxu1 %v10913_v41  ;;  %v10415_v53 = vpop.f32.mrf.mxu0 }
 0x525   : > { %10405 = vmatmul.mubr.msk.bf16.gmra.mxu1 %vm3499_vm3, %v13820_v3 }
 0x526   : > { %10424 = vmatprep.mubr.msk.bf16.mxu1 %vm3499_vm3, %v11004_v57  ;;  %v6216_v57 = vpop.f32.mrf.mxu0 }
 0x52d   : > { %10425 = vmatmul.mubr.msk.bf16.vlgmr.msra.gmra.mxu1 %vm3499_vm3, %v11005_v32 }
 0x52e   : > { %10428 = vmatprep.mubr.msk.bf16.mxu1 %vm3499_vm3, %v11006_v59  ;;  %6487 = vmatpush1.bf16.msra.mxu1 %v10911_v29  ;;  %v12994_v59 = vpop.f32.mrf.mxu0 }
 0x52f   : > { %6488 = vmatprep.subr.bf16.mxu1 %v10916_v24 }
 0x532   : > { %6489 = vmatpush1.bf16.msra.mxu1 %v10914_v42 }
 0x533   : > { %6490 = vmatprep.subr.bf16.mxu1 %v10919_v43 }
 0x535   : > { %10429 = vmatmul.mubr.msk.bf16.gmra.mxu1 %vm3499_vm3, %v11007_v50 }
 0x536   : > { %6510 = vmatprep.mubr.bf16.mxu1 %v13778_v28  ;;  %6491 = vmatpush1.bf16.msra.mxu1 %v10917_v26 }
 0x537   : > { %6492 = vmatprep.subr.bf16.mxu1 %v10922_v38 }
 0x53a   : > { %6493 = vmatpush1.bf16.msra.mxu1 %v10920_v21 }
 0x53b   : > { %10468 = vmatprep.subr.bf16.mxu1 %v12625_v33 }
 0x5bd   : > { %v5849_v46 = vpop.f32.mrf.mxu1 }
 0x5be   : > { %v12973_v51 = vadd.f32 %v5849_v46, %v12793_v19 }
 0x5bf   : > { %v5851_v61 = vpop.f32.mrf.mxu1 }
 0x5c0   : > { %v12976_v44 = vadd.f32 %v5851_v61, %v12796_v60 }
 0x5c1   : > { %v5853_v40 = vpop.f32.mrf.mxu1 }
 0x5c2   : > { %v12979_v20 = vadd.f32 %v5853_v40, %v12799_v5 }
 0x5c3   : > { %v12981_v1 = vpop.f32.mrf.mxu1 }
 0x5c4   : > { %13821 = vst [vmem:[#allocation7_spill] sm:$0xff] %v12979_v20 }
 0x5c5   : > { %v5859_v36 = vpop.f32.mrf.mxu1 }
 0x5c6   : > { %v12984_v31 = vadd.f32 %v5859_v36, %v12804_v47 }
 0x5c7   : > { %v5861_v37 = vpop.f32.mrf.mxu1 }
 0x5c8   : > { %13822 = vst [vmem:[#allocation19_spill] sm:$0xff] %v12984_v31  ;;  %v12987_v19 = vadd.f32 %v5861_v37, %v12807_v8  ;;  %v13002_v8 = vpop.f32.mrf.mxu0 }
 0x5c9   : > { %v5863_v3 = vpop.f32.mrf.mxu1 }
 0x5ca   : > { %13823 = vst [vmem:[#allocation20_spill] sm:$0xff] %v12987_v19  ;;  %v12990_v60 = vadd.f32 %v5863_v3, %v12810_v10  ;;  %v13009_v43 = vpop.f32.mrf.mxu0 }
 0x5cb   : > { %v12992_v32 = vpop.f32.mrf.mxu1 }
 0x5cc   : > { %13824 = vst [vmem:[#allocation21_spill] sm:$0xff] %v12990_v60  ;;  %13825 = vst [vmem:[#allocation23_spill] sm:$0xff] %v12992_v32  ;;  %v6232_v21 = vpop.f32.mrf.mxu0 }
 0x5cd   : > { %v5869_v5 = vpop.f32.mrf.mxu1 }
 0x5ce   : > { %v12997_v50 = vadd.f32 %v5869_v5, %v12815_v13  ;;  %v10438_v40 = vpop.f32.mrf.mxu0 }
 0x5cf   : > { %v5871_v41 = vpop.f32.mrf.mxu1 }
 0x5d0   : > { %13826 = vst [vmem:[#allocation24_spill] sm:$0xff] %v12997_v50  ;;  %v13000_v47 = vadd.f32 %v5871_v41, %v12818_v11  ;;  %v6351_v3 = vpop.f32.mrf.mxu0 }
 0x5d1   : > { %v5873_v29 = vpop.f32.mrf.mxu1 }
 0x5d2   : > { %13827 = vst [vmem:[#allocation25_spill] sm:$0xff] %v13000_v47  ;;  %v13005_v24 = vadd.f32 %v5873_v29, %v12821_v52 }
 0x5d3   : > { %v13007_v10 = vpop.f32.mrf.mxu1 }
 0x5d4   : > { %13828 = vst [vmem:[#allocation27_spill] sm:$0xff] %v13005_v24  ;;  %13829 = vst [vmem:[#allocation28_spill] sm:$0xff] %v13007_v10 }
 0x5d5   : > { %v5879_v42 = vpop.f32.mrf.mxu1 }
 0x5d6   : > { %v13012_v26 = vadd.f32 %v5879_v42, %v12826_v17  ;;  %v10439_v17 = vpop.f32.mrf.mxu0 }
 0x5d7   : > { %v5881_v13 = vpop.f32.mrf.mxu1 }
 0x5d8   : > { %13830 = vst [vmem:[#allocation29_spill] sm:$0xff] %v13012_v26  ;;  %v13015_v38 = vadd.f32 %v5881_v13, %v12829_v48  ;;  %v6354_v48 = vpop.f32.mrf.mxu0 }
 0x5d9   : > { %v5883_v11 = vpop.f32.mrf.mxu1 }
 0x5da   : > { %13831 = vst [vmem:[#allocation31_spill] sm:$0xff] %v13015_v38  ;;  %v13018_v46 = vadd.f32 %v5883_v11, %v12832_v45  ;;  %v10442_v62 = vpop.f32.mrf.mxu0 }
 0x5db   : > { %v13020_v61 = vpop.f32.mrf.mxu1 }
 0x5dc   : > { %13832 = vst [vmem:[#allocation32_spill] sm:$0xff] %v13018_v46  ;;  %13833 = vst [vmem:[#allocation33_spill] sm:$0xff] %v13020_v61  ;;  %v6367_v61 = vpop.f32.mrf.mxu0 }
 0x5dd   : > { %v10402_v52 = vpop.f32.mrf.mxu1 }
 0x5df   : > { %v6116_v36 = vpop.f32.mrf.mxu1 }
 0x5e0   : > { %v6352_v26 = vadd.f32 %v6351_v3, %v6116_v36  ;;  %v10443_v36 = vpop.f32.mrf.mxu0  ;;  %v6360_v3 = vadd.f32 %v10438_v40, %v10402_v52 }
 0x5e1   : > { %v10403_v37 = vpop.f32.mrf.mxu1 }
 0x5e2   : > { %v6382_v24 = vadd.f32 %v6352_v26, %v6213_v63  ;;  %v6363_v60 = vadd.f32 %v10439_v17, %v10403_v37 }
 0x5e3   : > { %v6119_v5 = vpop.f32.mrf.mxu1 }
 0x5e4   : > { %v6355_v10 = vadd.f32 %v6354_v48, %v6119_v5  ;;  %v6385_v5 = vadd.f32 %v10415_v53, %v6363_v60 }
 0x5e5   : > { %v13022_v41 = vpop.f32.mrf.mxu1 }
 0x5e6   : > { %v6383_v20 = vadd.f32 %v6355_v10, %v6216_v57 }
 0x5e7   : > { %v6132_v29 = vpop.f32.mrf.mxu1 }
 0x5e9   : > { %v10407_v42 = vpop.f32.mrf.mxu1 }
 0x5eb   : > { %v6135_v13 = vpop.f32.mrf.mxu1 }
 0x5ed   : > { %v10426_v38 = vpop.f32.mrf.mxu1 }
 0x5ee   : > { %v6287_v32 = vadd.f32 %v10426_v38, %v12937_v58  ;;  %v6370_v58 = vpop.f32.mrf.mxu0 }
 0x5ef   : > { %v6278_v45 = vpop.f32.mrf.mxu1 }
 0x5f0   : > { %v6279_v11 = vadd.f32 %v6278_v45, %v12940_v18 }
 0x5f1   : > { %v10427_v46 = vpop.f32.mrf.mxu1 }
 0x5f2   : > { %v6309_v47 = vadd.f32 %v6279_v11, %v12956_v34  ;;  %v6290_v9 = vadd.f32 %v10427_v46, %v12942_v15  ;;  %v6311_v34 = vadd.f32 %v12954_v27, %v6287_v32  ;;  %v6368_v27 = vadd.f32 %v6367_v61, %v6132_v29 }
 0x5f3   : > { %v6281_v50 = vpop.f32.mrf.mxu1 }
 0x5f4   : > { %v6390_v19 = vmax.f32 %v6309_v47, %v6382_v24  ;;  %v6282_v49 = vadd.f32 %v6281_v50, %v12944_v39  ;;  %v6312_v18 = vadd.f32 %v12958_v14, %v6290_v9  ;;  %v6384_v47 = vadd.f32 %v12970_v12, %v6360_v3  ;;  %v13079_v3 = vld [vmem:[#allocation2 + $0xb8] sm:$0xff]  }
 0x5f5   : > { %v10430_v31 = vpop.f32.mrf.mxu1  ;;  %v6371_v24 = vadd.f32 %v6370_v58, %v6135_v13  ;;  %v10931_v58 = vld [vmem:[%s13714_s5 + $0x154] ss:$8 sps:$4 sm:$0xff]  }
 0x5f6   : > { %v6310_v63 = vadd.f32 %v6282_v49, %v12960_v30  ;;  %v6398_v15 = vadd.f32 %v12654_v22, %v6390_v19  ;;  %v6393_v39 = vmax.f32 %v6312_v18, %v6385_v5  ;;  %v6392_v10 = vmax.f32 %v6311_v34, %v6384_v47  ;;  %v11012_v18 = vld [vmem:[#allocation2 + $0x80] sm:$0xff]   ;;  %v11015_v5 = vld [vmem:[#allocation2 + $0x98] sm:$0xff]  }
 0x5f7   : > { %v6294_v26 = vpop.f32.mrf.mxu1  ;;  %v6387_v60 = vadd.f32 %v6371_v24, %v6232_v21  ;;  %v6303_v52 = vadd.f32 %v10430_v31, %v12946_v55  ;;  %v10925_v34 = vld [vmem:[%s13714_s5 + $0x174] ss:$8 sps:$4 sm:$0xff]   ;;  %v10929_v47 = vld [vmem:[%s13714_s5 + $0x150] ss:$8 sps:$4 sm:$0xff]   ;;  %v13112_v24 = vpop.f32.mrf.mxu0 }
 0x5f8   : > { %v6391_v46 = vmax.f32 %v6310_v63, %v6383_v20  ;;  %v6406_v9 = vmax.f32 %v6398_v15, 0.0  ;;  %v6295_v49 = vadd.f32 %v6294_v26, %v12948_v6  ;;  %v6401_v53 = vadd.f32 %v12654_v22, %v6393_v39  ;;  %v11013_v63 = vld [vmem:[#allocation2 + $0x88] sm:$0xff]   ;;  %v11014_v26 = vld [vmem:[#allocation2 + $0x90] sm:$0xff]  }
 0x5f9   : > { %v10431_v37 = vpop.f32.mrf.mxu1  ;;  %v6400_v12 = vadd.f32 %v12654_v22, %v6392_v10  ;;  %v6386_v6 = vadd.f32 %v6368_v27, %v13002_v8  ;;  %v6315_v48 = vadd.f32 %v12962_v23, %v6303_v52  ;;  %v10923_v15 = vld [vmem:[%s13714_s5 + $0x170] ss:$8 sps:$4 sm:$0xff]   ;;  %v10934_v39 = vld [vmem:[%s13714_s5 + $0x144] ss:$8 sps:$4 sm:$0xff]  }
 0x5fa   : > { %v6399_v50 = vadd.f32 %v12654_v22, %v6391_v46  ;;  %v6313_v32 = vadd.f32 %v6295_v49, %v12964_v16  ;;  %v6306_v38 = vadd.f32 %v10431_v37, %v12950_v4  ;;  %v6376_v16 = vadd.f32 %v10442_v62, %v13022_v41  ;;  %v10928_v46 = vld [vmem:[%s13714_s5 + $0x164] ss:$8 sps:$4 sm:$0xff]   ;;  %v10926_v37 = vld [vmem:[%s13714_s5 + $0x160] ss:$8 sps:$4 sm:$0xff]  }
 0x5fb   : > { %v6297_v57 = vpop.f32.mrf.mxu1  ;;  %v6408_v21 = vmax.f32 %v6400_v12, 0.0 }
 0x5fc   : > { %v6407_v14 = vmax.f32 %v6399_v50, 0.0  ;;  %v6298_v30 = vadd.f32 %v6297_v57, %v12952_v7  ;;  %v6409_v7 = vmax.f32 %v6401_v53, 0.0  ;;  %v6394_v40 = vmax.f32 %v6313_v32, %v6386_v6  ;;  %v10932_v50 = vld [vmem:[%s13714_s5 + $0x140] ss:$8 sps:$4 sm:$0xff]   ;;  %v13115_v57 = vpop.f32.mrf.mxu0 }
 0x5fd   : > { %v6316_v29 = vadd.f32 %v12966_v0, %v6306_v38  ;;  %v13834_v38 = vld [vmem:[#allocation22_spill] sm:$0xff] }
 0x5fe   : > { %v6414_v20 = vpack.c.bf16 %v6407_v14, %v6406_v9  ;;  %v6314_v19 = vadd.f32 %v6298_v30, %v12968_v54  ;;  %v6379_v54 = vadd.f32 %v10443_v36, %v10407_v42  ;;  %v6415_v17 = vpack.c.bf16 %v6409_v7, %v6408_v21  ;;  %v13064_v36 = vld [vmem:[#allocation2 + $0xa0] sm:$0xff]   ;;  %v13117_v10 = vpop.f32.mrf.mxu0 }
 0x5ff   : > { %v6402_v42 = vadd.f32 %v12654_v22, %v6394_v40 }
 0x600   : > { %9169 = vmatmul.mubr.msk.bf16.vlgmr.msra.gmra.mxu1 %vm4367_vm4, %v6414_v20  ;;  %v6395_v61 = vmax.f32 %v6314_v19, %v6387_v60  ;;  %v6389_v4 = vadd.f32 %v13009_v43, %v6379_v54  ;;  %v13119_v9 = vpop.f32.mrf.mxu0 }
 0x601   : > { %10469 = vmatpush3.bf16.msra.mxu1 %v12625_v33  ;;  %6520 = vmatprep.mubr.bf16.mxu1 %v13778_v28  ;;  %v6410_v0 = vmax.f32 %v6402_v42, 0.0 }
 0x602   : > { %10470 = vmatprep.subr.bf16.mxu1 %v12670_v56  ;;  %v6403_v8 = vadd.f32 %v12654_v22, %v6395_v61  ;;  %v6397_v62 = vmax.f32 %v6316_v29, %v6389_v4  ;;  %v13121_v14 = vpop.f32.mrf.mxu0  ;;  %v13835_v61 = vld [vmem:[#allocation15_spill] sm:$0xff] }
 0x603   : > { %v4546_v54 = vadd.f32 %v13835_v61, %v13834_v38 }
 0x604   : > { %v6411_v55 = vmax.f32 %v6403_v8, 0.0  ;;  %v6405_v41 = vadd.f32 %v12654_v22, %v6397_v62  ;;  %v13123_v49 = vpop.f32.mrf.mxu0 }
 0x605   : > { %10471 = vmatpush3.bf16.msra.mxu1 %v12670_v56  ;;  %v6388_v56 = vadd.f32 %v12994_v59, %v6376_v16  ;;  %v13068_v59 = vld [vmem:[#allocation2 + $0xa8] sm:$0xff]   ;;  %v5228_v16 = vadd.f32 %v12801_v2, %v4546_v54  ;;  %v13839_v2 = vld [vmem:[#allocation19_spill] sm:$0xff]  ;;  %v13852_v54 = vld [vmem:[#allocation9_spill] sm:$0xff] }
 0x606   : > { %10492 = vmatprep.subr.bf16.mxu1 %v12878_v35  ;;  %v6416_v13 = vpack.c.bf16 %v6411_v55, %v6410_v0  ;;  %v6413_v23 = vmax.f32 %v6405_v41, 0.0  ;;  %v13125_v30 = vpop.f32.mrf.mxu0 }
 0x607   : > { %v6396_v31 = vmax.f32 %v6315_v48, %v6388_v56  ;;  %v5891_v4 = vadd.f32 %v12981_v1, %v5228_v16  ;;  %v13836_v48 = vld [vmem:[#allocation7_spill] sm:$0xff]  ;;  %v13853_v16 = vld [vmem:[#allocation25_spill] sm:$0xff] }
 0x608   : > { %9170 = vmatmul.mubr.msk.bf16.gmra.mxu1 %vm4367_vm4, %v6415_v17  ;;  %v13127_v27 = vpop.f32.mrf.mxu0 }
 0x609   : > { %6530 = vmatprep.mubr.bf16.mxu1 %v13778_v28  ;;  %v6404_v45 = vadd.f32 %v12654_v22, %v6396_v31  ;;  %v13072_v22 = vld [vmem:[#allocation2 + $0xb0] sm:$0xff]   ;;  %v13838_v31 = vld [vmem:[#allocation16_spill] sm:$0xff] }
 0x60a   : > { %v13129_v53 = vpop.f32.mrf.mxu0 }
 0x60b   : > { %v6412_v43 = vmax.f32 %v6404_v45, 0.0  ;;  %v13841_v45 = vld [vmem:[#allocation8_spill] sm:$0xff] }
 0x60c   : > { %v13131_v20 = vpop.f32.mrf.mxu0 }
 0x60d   : > { %v6417_v11 = vpack.c.bf16 %v6413_v23, %v6412_v43  ;;  %v13842_v43 = vld [vmem:[#allocation20_spill] sm:$0xff] }
 0x60e   : > { %v13133_v19 = vpop.f32.mrf.mxu0 }
 0x610   : > { %9171 = vmatmul.mubr.msk.bf16.gmra.mxu1 %vm4367_vm4, %v6416_v13 }
 0x611   : > { %6540 = vmatprep.mubr.bf16.mxu1 %v13778_v28 }
 0x618   : > { %9172 = vmatmul.mubr.msk.bf16.gmra.mxu1 %vm4367_vm4, %v6417_v11 }
 0x619   : > { %10472 = vmatprep.mubr.msk.bf16.mxu1 %vm3499_vm3, %v13064_v36 }
 0x620   : > { %10473 = vmatmul.mubr.msk.bf16.vlgmr.msra.gmra.mxu1 %vm3499_vm3, %v13068_v59 }
 0x621   : > { %10476 = vmatprep.mubr.msk.bf16.mxu1 %vm3499_vm3, %v13072_v22  ;;  %10493 = vmatpush3.bf16.msra.mxu1 %v12878_v35 }
 0x622   : > { %10494 = vmatprep.subr.bf16.mxu1 %v12902_v25 }
 0x625   : > { %10495 = vmatpush3.bf16.msra.mxu1 %v12902_v25 }
 0x626   : > { %7149 = vmatprep.subr.bf16.mxu1 %v10925_v34 }
 0x628   : > { %10477 = vmatmul.mubr.msk.bf16.gmra.mxu1 %vm3499_vm3, %v13079_v3 }
 0x629   : > { %10496 = vmatprep.mubr.msk.bf16.mxu1 %vm3499_vm3, %v11012_v18 }
 0x630   : > { %10497 = vmatmul.mubr.msk.bf16.vlgmr.msra.gmra.mxu1 %vm3499_vm3, %v11013_v63  ;;  %v13844_v63 = vld [vmem:[#allocation23_spill] sm:$0xff] }
 0x631   : > { %10500 = vmatprep.mubr.msk.bf16.mxu1 %vm3499_vm3, %v11014_v26  ;;  %7150 = vmatpush1.bf16.msra.mxu1 %v10923_v15 }
 0x632   : > { %7151 = vmatprep.subr.bf16.mxu1 %v10928_v46 }
 0x635   : > { %7152 = vmatpush1.bf16.msra.mxu1 %v10926_v37 }
 0x636   : > { %7153 = vmatprep.subr.bf16.mxu1 %v10931_v58  ;;  %v13848_v58 = vld [vmem:[#allocation30_spill] sm:$0xff] }
 0x638   : > { %10501 = vmatmul.mubr.msk.bf16.gmra.mxu1 %vm3499_vm3, %v11015_v5  ;;  %v13845_v5 = vld [vmem:[#allocation21_spill] sm:$0xff] }
 0x639   : > { %7173 = vmatprep.mubr.bf16.mxu1 %v13778_v28  ;;  %7154 = vmatpush1.bf16.msra.mxu1 %v10929_v47  ;;  %v13849_v47 = vld [vmem:[#allocation17_spill] sm:$0xff] }
 0x63a   : > { %7155 = vmatprep.subr.bf16.mxu1 %v10934_v39  ;;  %v4566_v39 = vadd.f32 %v13849_v47, %v13848_v58  ;;  %v13864_v58 = vld [vmem:[#allocation31_spill] sm:$0xff] }
 0x63d   : > { %7156 = vmatpush1.bf16.msra.mxu1 %v10932_v50 }
 0x63e   : > { %10540 = vmatprep.subr.bf16.mxu1 %v12625_v33  ;;  %v13135_v33 = vpop.f32.mrf.mxu0 }
 0x640   : > { %v13137_v60 = vpop.f32.mrf.mxu0 }
 0x642   : > { %v13139_v12 = vpop.f32.mrf.mxu0 }
 0x644   : > { %v13141_v32 = vpop.f32.mrf.mxu0 }
 0x646   : > { %v13143_v6 = vpop.f32.mrf.mxu0 }
 0x648   : > { %v13147_v21 = vpop.f32.mrf.mxu0 }
 0x64a   : > { %v13156_v8 = vpop.f32.mrf.mxu0 }
 0x64c   : > { %v13166_v41 = vpop.f32.mrf.mxu0 }
 0x64e   : > { %v6879_v18 = vpop.f32.mrf.mxu0 }
 0x650   : > { %v13183_v50 = vpop.f32.mrf.mxu0 }
 0x6c0   : > { %v6512_v7 = vpop.f32.mrf.mxu1 }
 0x6c1   : > { %v13150_v52 = vadd.f32 %v6512_v7, %v12973_v51  ;;  %v13837_v51 = vld [vmem:[#allocation26_spill] sm:$0xff]  ;;  %v13850_v7 = vld [vmem:[#allocation24_spill] sm:$0xff] }
 0x6c2   : > { %v6514_v40 = vpop.f32.mrf.mxu1  ;;  %v4556_v0 = vadd.f32 %v13838_v31, %v13837_v51  ;;  %v13856_v51 = vld [vmem:[#allocation27_spill] sm:$0xff] }
 0x6c3   : > { %v13154_v17 = vadd.f32 %v6514_v40, %v12976_v44  ;;  %v5236_v40 = vadd.f32 %v13852_v54, %v4566_v39 }
 0x6c4   : > { %v6516_v29 = vpop.f32.mrf.mxu1  ;;  %v5232_v23 = vadd.f32 %v13841_v45, %v4556_v0  ;;  %v13859_v45 = vld [vmem:[#allocation34_spill] sm:$0xff] }
 0x6c5   : > { %v13160_v42 = vadd.f32 %v6516_v29, %v13836_v48  ;;  %v13192_v48 = vpop.f32.mrf.mxu0 }
 0x6c6   : > { %v6518_v56 = vpop.f32.mrf.mxu1  ;;  %v5895_v26 = vadd.f32 %v13844_v63, %v5232_v23  ;;  %v13860_v23 = vld [vmem:[#allocation18_spill] sm:$0xff]  ;;  %v13861_v63 = vld [vmem:[#allocation29_spill] sm:$0xff] }
 0x6c7   : > { %v13162_v62 = vadd.f32 %v6518_v56, %v5891_v4  ;;  %v13855_v56 = vld [vmem:[#allocation28_spill] sm:$0xff] }
 0x6c8   : > { %v6522_v55 = vpop.f32.mrf.mxu1 }
 0x6c9   : > { %v13169_v44 = vadd.f32 %v6522_v55, %v13839_v2  ;;  %v5899_v55 = vadd.f32 %v13855_v56, %v5236_v40  ;;  %v13867_v40 = vld [vmem:[#allocation32_spill] sm:$0xff] }
 0x6ca   : > { %v6524_v13 = vpop.f32.mrf.mxu1 }
 0x6cb   : > { %13840 = vst [vmem:[#allocation36_spill] sm:$0xff] %v13169_v44  ;;  %v13173_v1 = vadd.f32 %v6524_v13, %v13842_v43  ;;  %v4576_v43 = vadd.f32 %v13860_v23, %v13859_v45 }
 0x6cc   : > { %v6526_v11 = vpop.f32.mrf.mxu1 }
 0x6cd   : > { %13843 = vst [vmem:[#allocation52_spill] sm:$0xff] %v13173_v1  ;;  %v13177_v34 = vadd.f32 %v6526_v11, %v13845_v5  ;;  %v13202_v11 = vpop.f32.mrf.mxu0 }
 0x6ce   : > { %v6528_v15 = vpop.f32.mrf.mxu1 }
 0x6cf   : > { %13846 = vst [vmem:[#allocation44_spill] sm:$0xff] %v13177_v34  ;;  %v13179_v46 = vadd.f32 %v6528_v15, %v5895_v26  ;;  %v13863_v15 = vld [vmem:[#allocation10_spill] sm:$0xff] }
 0x6d0   : > { %v6532_v37 = vpop.f32.mrf.mxu1 }
 0x6d1   : > { %13847 = vst [vmem:[#allocation37_spill] sm:$0xff] %v13179_v46  ;;  %v13186_v38 = vadd.f32 %v6532_v37, %v13850_v7  ;;  %v5240_v37 = vadd.f32 %v13863_v15, %v4576_v43  ;;  %v6895_v7 = vpop.f32.mrf.mxu0 }
 0x6d2   : > { %v6534_v61 = vpop.f32.mrf.mxu1 }
 0x6d3   : > { %13851 = vst [vmem:[#allocation35_spill] sm:$0xff] %v13186_v38  ;;  %v13190_v29 = vadd.f32 %v6534_v61, %v13853_v16  ;;  %v13866_v61 = vld [vmem:[#allocation33_spill] sm:$0xff] }
 0x6d4   : > { %v6536_v4 = vpop.f32.mrf.mxu1  ;;  %v5903_v54 = vadd.f32 %v13866_v61, %v5240_v37 }
 0x6d5   : > { %13854 = vst [vmem:[#allocation38_spill] sm:$0xff] %v13190_v29  ;;  %v13196_v31 = vadd.f32 %v6536_v4, %v13856_v51  ;;  %v10510_v51 = vpop.f32.mrf.mxu0 }
 0x6d6   : > { %v6538_v0 = vpop.f32.mrf.mxu1 }
 0x6d7   : > { %13857 = vst [vmem:[#allocation45_spill] sm:$0xff] %v13196_v31  ;;  %v13198_v2 = vadd.f32 %v6538_v0, %v5899_v55  ;;  %v7014_v45 = vpop.f32.mrf.mxu0 }
 0x6d8   : > { %v6542_v13 = vpop.f32.mrf.mxu1 }
 0x6d9   : > { %13858 = vst [vmem:[#allocation46_spill] sm:$0xff] %v13198_v2  ;;  %v13205_v26 = vadd.f32 %v6542_v13, %v13861_v63  ;;  %v10511_v63 = vpop.f32.mrf.mxu0 }
 0x6da   : > { %v6544_v5 = vpop.f32.mrf.mxu1 }
 0x6db   : > { %13862 = vst [vmem:[#allocation53_spill] sm:$0xff] %v13205_v26  ;;  %v13209_v47 = vadd.f32 %v6544_v5, %v13864_v58  ;;  %v7017_v58 = vpop.f32.mrf.mxu0 }
 0x6dc   : > { %v6546_v39 = vpop.f32.mrf.mxu1 }
 0x6dd   : > { %13865 = vst [vmem:[#allocation43_spill] sm:$0xff] %v13209_v47  ;;  %v13213_v16 = vadd.f32 %v6546_v39, %v13867_v40  ;;  %v10514_v61 = vpop.f32.mrf.mxu0 }
 0x6de   : > { %v6548_v4 = vpop.f32.mrf.mxu1 }
 0x6df   : > { %13868 = vst [vmem:[#allocation51_spill] sm:$0xff] %v13213_v16  ;;  %v13215_v56 = vadd.f32 %v6548_v4, %v5903_v54 }
 0x6e0   : > { %v10474_v55 = vpop.f32.mrf.mxu1 }
 0x6e1   : > { %13869 = vst [vmem:[#allocation40_spill] sm:$0xff] %v13215_v56  ;;  %v7030_v56 = vpop.f32.mrf.mxu0  ;;  %v7023_v44 = vadd.f32 %v10510_v51, %v10474_v55 }
 0x6e2   : > { %v6779_v0 = vpop.f32.mrf.mxu1 }
 0x6e3   : > { %v7015_v39 = vadd.f32 %v7014_v45, %v6779_v0  ;;  %v10515_v45 = vpop.f32.mrf.mxu0 }
 0x6e4   : > { %v10475_v13 = vpop.f32.mrf.mxu1 }
 0x6e5   : > { %v7045_v16 = vadd.f32 %v7015_v39, %v13156_v8  ;;  %v7026_v38 = vadd.f32 %v10511_v63, %v10475_v13 }
 0x6e6   : > { %v6782_v23 = vpop.f32.mrf.mxu1 }
 0x6e7   : > { %v7018_v26 = vadd.f32 %v7017_v58, %v6782_v23 }
 0x6e8   : > { %v13217_v43 = vpop.f32.mrf.mxu1 }
 0x6e9   : > { %v7039_v39 = vadd.f32 %v10514_v61, %v13217_v43 }
 0x6ea   : > { %v6795_v5 = vpop.f32.mrf.mxu1 }
 0x6eb   : > { %v7031_v55 = vadd.f32 %v7030_v56, %v6795_v5 }
 0x6ec   : > { %v10479_v15 = vpop.f32.mrf.mxu1 }
 0x6ee   : > { %v6798_v47 = vpop.f32.mrf.mxu1 }
 0x6f0   : > { %v10498_v37 = vpop.f32.mrf.mxu1 }
 0x6f1   : > { %v6950_v46 = vadd.f32 %v10498_v37, %v13112_v24  ;;  %v13232_v24 = vld [vmem:[%s13713_s4] ss:$0 sm:$0xff] }
 0x6f2   : > { %v6941_v40 = vpop.f32.mrf.mxu1 }
 0x6f3   : > { %v6942_v54 = vadd.f32 %v6941_v40, %v13115_v57  ;;  %v7046_v57 = vadd.f32 %v7018_v26, %v6879_v18  ;;  %v7047_v18 = vadd.f32 %v13147_v21, %v7023_v44 }
 0x6f4   : > { %v10499_v4 = vpop.f32.mrf.mxu1 }
 0x6f5   : > { %v6972_v2 = vadd.f32 %v6942_v54, %v13131_v20  ;;  %v6953_v31 = vadd.f32 %v10499_v4, %v13117_v10  ;;  %v7048_v20 = vadd.f32 %v13166_v41, %v7026_v38  ;;  %v6974_v10 = vadd.f32 %v13129_v53, %v6950_v46 }
 0x6f6   : > { %v6944_v29 = vpop.f32.mrf.mxu1 }
 0x6f7   : > { %v7053_v34 = vmax.f32 %v6972_v2, %v7045_v16  ;;  %v6945_v1 = vadd.f32 %v6944_v29, %v13119_v9  ;;  %v6975_v40 = vadd.f32 %v13133_v19, %v6953_v31  ;;  %v7033_v16 = vpop.f32.mrf.mxu0  ;;  %v7055_v41 = vmax.f32 %v6974_v10, %v7047_v18  ;;  %v13277_v10 = vld [vmem:[#allocation2 + $0xd0] sm:$0xff]  }
 0x6f8   : > { %v10502_v0 = vpop.f32.mrf.mxu1 }
 0x6f9   : > { %v6973_v8 = vadd.f32 %v6945_v1, %v13135_v33  ;;  %v7061_v9 = vadd.f32 %v13232_v24, %v7053_v34  ;;  %v7056_v19 = vmax.f32 %v6975_v40, %v7048_v20  ;;  %v7034_v1 = vadd.f32 %v7033_v16, %v6798_v47  ;;  %v11017_v47 = vld [vmem:[%s13712_s3 + $0x18] sm:$0xff]   ;;  %v13269_v20 = vld [vmem:[#allocation2 + $0xc0] sm:$0xff]   ;;  %v13321_v18 = vpop.f32.mrf.mxu0 }
 0x6fa   : > { %v6957_v23 = vpop.f32.mrf.mxu1  ;;  %v7063_v21 = vadd.f32 %v13232_v24, %v7055_v41  ;;  %v6966_v58 = vadd.f32 %v10502_v0, %v13121_v14  ;;  %v7051_v14 = vadd.f32 %v13183_v50, %v7039_v39  ;;  %v13273_v50 = vld [vmem:[#allocation2 + $0xc8] sm:$0xff]  }
 0x6fb   : > { %v7054_v29 = vmax.f32 %v6973_v8, %v7046_v57  ;;  %v7069_v38 = vmax.f32 %v7061_v9, 0.0  ;;  %v6958_v46 = vadd.f32 %v6957_v23, %v13123_v49  ;;  %v7064_v34 = vadd.f32 %v13232_v24, %v7056_v19  ;;  %v13284_v9 = vld [vmem:[#allocation2 + $0xd8] sm:$0xff]   ;;  %v10944_v16 = vld [vmem:[%s13714_s5 + $0x180] ss:$8 sps:$4 sm:$0xff]   ;;  %v13324_v19 = vpop.f32.mrf.mxu0 }
 0x6fc   : > { %v10503_v2 = vpop.f32.mrf.mxu1  ;;  %v7050_v63 = vadd.f32 %v7034_v1, %v6895_v7  ;;  %v7049_v49 = vadd.f32 %v7031_v55, %v13192_v48  ;;  %v11018_v7 = vld [vmem:[%s13712_s3 + $0x10] sm:$0xff]   ;;  %v7071_v5 = vmax.f32 %v7063_v21, 0.0  ;;  %v6978_v57 = vadd.f32 %v13137_v60, %v6966_v58  ;;  %v13870_v39 = vld [vmem:[#allocation36_spill] sm:$0xff] }
 0x6fd   : > { %v7062_v33 = vadd.f32 %v13232_v24, %v7054_v29  ;;  %v6976_v44 = vadd.f32 %v6958_v46, %v13139_v12  ;;  %v6969_v56 = vadd.f32 %v10503_v2, %v13125_v30  ;;  %v7042_v12 = vadd.f32 %v10515_v45, %v10479_v15  ;;  %v10935_v29 = vld [vmem:[%s13714_s5 + $0x1b0] ss:$8 sps:$4 sm:$0xff]   ;;  %v10946_v2 = vld [vmem:[%s13714_s5 + $0x184] ss:$8 sps:$4 sm:$0xff]  }
 0x6fe   : > { %v6960_v31 = vpop.f32.mrf.mxu1  ;;  %v7059_v0 = vmax.f32 %v6978_v57, %v7051_v14  ;;  %v13874_v57 = vld [vmem:[#allocation44_spill] sm:$0xff]  ;;  %v13876_v14 = vld [vmem:[#allocation37_spill] sm:$0xff] }
 0x6ff   : > { %v7070_v53 = vmax.f32 %v7062_v33, 0.0  ;;  %v6961_v26 = vadd.f32 %v6960_v31, %v13127_v27  ;;  %v7072_v27 = vmax.f32 %v7064_v34, 0.0  ;;  %v7057_v37 = vmax.f32 %v6976_v44, %v7049_v49  ;;  %v13326_v33 = vpop.f32.mrf.mxu0 }
 0x700   : > { %v6979_v48 = vadd.f32 %v13141_v32, %v6969_v56  ;;  %v7052_v30 = vadd.f32 %v13202_v11, %v7042_v12  ;;  %v7067_v8 = vadd.f32 %v13232_v24, %v7059_v0  ;;  %v13878_v0 = vld [vmem:[#allocation35_spill] sm:$0xff] }
 0x701   : > { %v7077_v51 = vpack.c.bf16 %v7070_v53, %v7069_v38  ;;  %v6977_v13 = vadd.f32 %v6961_v26, %v13143_v6  ;;  %v7078_v54 = vpack.c.bf16 %v7072_v27, %v7071_v5  ;;  %v7065_v15 = vadd.f32 %v13232_v24, %v7057_v37  ;;  %v13328_v1 = vpop.f32.mrf.mxu0 }
 0x702   : > { %v7060_v43 = vmax.f32 %v6979_v48, %v7052_v30  ;;  %v7075_v11 = vmax.f32 %v7067_v8, 0.0  ;;  %v13872_v48 = vld [vmem:[#allocation52_spill] sm:$0xff] }
 0x703   : > { %9213 = vmatmul.mubr.msk.bf16.vlgmr.msra.gmra.mxu1 %vm4367_vm4, %v7077_v51  ;;  %v7058_v6 = vmax.f32 %v6977_v13, %v7050_v63  ;;  %v7073_v32 = vmax.f32 %v7065_v15, 0.0  ;;  %v13330_v31 = vpop.f32.mrf.mxu0 }
 0x704   : > { %10541 = vmatpush3.bf16.msra.mxu1 %v11017_v47  ;;  %7183 = vmatprep.mubr.bf16.mxu1 %v13778_v28  ;;  %v7068_v45 = vadd.f32 %v13232_v24, %v7060_v43 }
 0x705   : > { %10542 = vmatprep.subr.bf16.mxu1 %v11018_v7  ;;  %v7066_v4 = vadd.f32 %v13232_v24, %v7058_v6  ;;  %v13332_v41 = vpop.f32.mrf.mxu0 }
 0x706   : > { %v7076_v60 = vmax.f32 %v7068_v45, 0.0 }
 0x707   : > { %v7074_v61 = vmax.f32 %v7066_v4, 0.0  ;;  %v13334_v38 = vpop.f32.mrf.mxu0 }
 0x708   : > { %10543 = vmatpush3.bf16.msra.mxu1 %v11018_v7  ;;  %v7080_v23 = vpack.c.bf16 %v7076_v60, %v7075_v11 }
 0x709   : > { %10564 = vmatprep.subr.bf16.mxu1 %v12878_v35  ;;  %v7079_v40 = vpack.c.bf16 %v7074_v61, %v7073_v32  ;;  %v13336_v53 = vpop.f32.mrf.mxu0 }
 0x70b   : > { %9214 = vmatmul.mubr.msk.bf16.gmra.mxu1 %vm4367_vm4, %v7078_v54  ;;  %v13338_v46 = vpop.f32.mrf.mxu0 }
 0x70c   : > { %7193 = vmatprep.mubr.bf16.mxu1 %v13778_v28 }
 0x70d   : > { %v13340_v26 = vpop.f32.mrf.mxu0 }
 0x70f   : > { %v13342_v55 = vpop.f32.mrf.mxu0 }
 0x713   : > { %9215 = vmatmul.mubr.msk.bf16.gmra.mxu1 %vm4367_vm4, %v7079_v40  ;;  %v13880_v40 = vld [vmem:[#allocation38_spill] sm:$0xff] }
 0x714   : > { %7203 = vmatprep.mubr.bf16.mxu1 %v13778_v28 }
 0x71b   : > { %9216 = vmatmul.mubr.msk.bf16.gmra.mxu1 %vm4367_vm4, %v7080_v23  ;;  %v13882_v23 = vld [vmem:[#allocation45_spill] sm:$0xff] }
 0x71c   : > { %10544 = vmatprep.mubr.msk.bf16.mxu1 %vm3499_vm3, %v13269_v20 }
 0x723   : > { %10545 = vmatmul.mubr.msk.bf16.vlgmr.msra.gmra.mxu1 %vm3499_vm3, %v13273_v50 }
 0x724   : > { %10548 = vmatprep.mubr.msk.bf16.mxu1 %vm3499_vm3, %v13277_v10  ;;  %10565 = vmatpush3.bf16.msra.mxu1 %v12878_v35 }
 0x725   : > { %10566 = vmatprep.subr.bf16.mxu1 %v12902_v25 }
 0x728   : > { %10567 = vmatpush3.bf16.msra.mxu1 %v12902_v25  ;;  %v10937_v25 = vld [vmem:[%s13714_s5 + $0x1b4] ss:$8 sps:$4 sm:$0xff]  }
 0x729   : > { %7812 = vmatprep.subr.bf16.mxu1 %v10937_v25 }
 0x72b   : > { %10549 = vmatmul.mubr.msk.bf16.gmra.mxu1 %vm3499_vm3, %v13284_v9 }
 0x72c   : > { %10568 = vmatprep.mubr.msk.bf16.mxu1 %vm3499_vm3, %v13064_v36  ;;  %v10940_v36 = vld [vmem:[%s13714_s5 + $0x1a4] ss:$8 sps:$4 sm:$0xff]  }
 0x733   : > { %10569 = vmatmul.mubr.msk.bf16.vlgmr.msra.gmra.mxu1 %vm3499_vm3, %v13068_v59  ;;  %v10938_v59 = vld [vmem:[%s13714_s5 + $0x1a0] ss:$8 sps:$4 sm:$0xff]  }
 0x734   : > { %10572 = vmatprep.mubr.msk.bf16.mxu1 %vm3499_vm3, %v13072_v22  ;;  %7813 = vmatpush1.bf16.msra.mxu1 %v10935_v29  ;;  %v10943_v22 = vld [vmem:[%s13714_s5 + $0x194] ss:$8 sps:$4 sm:$0xff]  }
 0x735   : > { %7814 = vmatprep.subr.bf16.mxu1 %v10940_v36  ;;  %v13884_v36 = vld [vmem:[#allocation46_spill] sm:$0xff] }
 0x738   : > { %7815 = vmatpush1.bf16.msra.mxu1 %v10938_v59 }
 0x739   : > { %7816 = vmatprep.subr.bf16.mxu1 %v10943_v22 }
 0x73b   : > { %10573 = vmatmul.mubr.msk.bf16.gmra.mxu1 %vm3499_vm3, %v13079_v3  ;;  %v10941_v3 = vld [vmem:[%s13714_s5 + $0x190] ss:$8 sps:$4 sm:$0xff]  }
 0x73c   : > { %7836 = vmatprep.mubr.bf16.mxu1 %v13778_v28  ;;  %7817 = vmatpush1.bf16.msra.mxu1 %v10941_v3 }
 0x73d   : > { %7818 = vmatprep.subr.bf16.mxu1 %v10946_v2  ;;  %v13886_v2 = vld [vmem:[#allocation53_spill] sm:$0xff] }
 0x740   : > { %7819 = vmatpush1.bf16.msra.mxu1 %v10944_v16 }
 0x741   : > { %10612 = vmatprep.subr.bf16.mxu1 %v12878_v35  ;;  %v13344_v35 = vpop.f32.mrf.mxu0 }
 0x743   : > { %v13346_v34 = vpop.f32.mrf.mxu0 }
 0x745   : > { %v13348_v51 = vpop.f32.mrf.mxu0 }
 0x747   : > { %v13350_v13 = vpop.f32.mrf.mxu0 }
 0x749   : > { %v13352_v63 = vpop.f32.mrf.mxu0 }
 0x74b   : > { %v13354_v44 = vpop.f32.mrf.mxu0 }
 0x74d   : > { %v7539_v6 = vpop.f32.mrf.mxu0 }
 0x74f   : > { %v13368_v37 = vpop.f32.mrf.mxu0 }
 0x751   : > { %v7542_v30 = vpop.f32.mrf.mxu0 }
 0x753   : > { %v13382_v61 = vpop.f32.mrf.mxu0 }
 0x755   : > { %v13390_v11 = vpop.f32.mrf.mxu0 }
 0x757   : > { %v13398_v3 = vpop.f32.mrf.mxu0 }
 0x7c3   : > { %v7175_v21 = vpop.f32.mrf.mxu1 }
 0x7c4   : > { %v13357_v47 = vadd.f32 %v7175_v21, %v13150_v52 }
 0x7c5   : > { %v7177_v49 = vpop.f32.mrf.mxu1 }
 0x7c6   : > { %v13360_v27 = vadd.f32 %v7177_v49, %v13154_v17  ;;  %v13888_v49 = vld [vmem:[#allocation43_spill] sm:$0xff] }
 0x7c7   : > { %v7179_v56 = vpop.f32.mrf.mxu1 }
 0x7c8   : > { %v13363_v7 = vadd.f32 %v7179_v56, %v13160_v42 }
 0x7c9   : > { %v7181_v12 = vpop.f32.mrf.mxu1 }
 0x7ca   : > { %v13366_v5 = vadd.f32 %v7181_v12, %v13162_v62 }
 0x7cb   : > { %v7185_v58 = vpop.f32.mrf.mxu1 }
 0x7cc   : > { %v13371_v54 = vadd.f32 %v7185_v58, %v13870_v39  ;;  %v7558_v58 = vpop.f32.mrf.mxu0  ;;  %v13890_v39 = vld [vmem:[#allocation51_spill] sm:$0xff] }
 0x7cd   : > { %v7187_v52 = vpop.f32.mrf.mxu1 }
 0x7ce   : > { %13871 = vst [vmem:[#allocation42_spill] sm:$0xff] %v13371_v54  ;;  %v13374_v4 = vadd.f32 %v7187_v52, %v13872_v48 }
 0x7cf   : > { %v7189_v17 = vpop.f32.mrf.mxu1 }
 0x7d0   : > { %13873 = vst [vmem:[#allocation50_spill] sm:$0xff] %v13374_v4  ;;  %v13377_v15 = vadd.f32 %v7189_v17, %v13874_v57  ;;  %v13892_v17 = vld [vmem:[#allocation40_spill] sm:$0xff] }
 0x7d1   : > { %v7191_v42 = vpop.f32.mrf.mxu1 }
 0x7d2   : > { %13875 = vst [vmem:[#allocation48_spill] sm:$0xff] %v13377_v15  ;;  %v13380_v43 = vadd.f32 %v7191_v42, %v13876_v14  ;;  %v10582_v14 = vpop.f32.mrf.mxu0 }
 0x7d3   : > { %v7195_v62 = vpop.f32.mrf.mxu1 }
 0x7d4   : > { %13877 = vst [vmem:[#allocation41_spill] sm:$0xff] %v13380_v43  ;;  %v13385_v32 = vadd.f32 %v7195_v62, %v13878_v0 }
 0x7d5   : > { %v7197_v45 = vpop.f32.mrf.mxu1 }
 0x7d6   : > { %13879 = vst [vmem:[#allocation39_spill] sm:$0xff] %v13385_v32  ;;  %v13388_v8 = vadd.f32 %v7197_v45, %v13880_v40  ;;  %v7677_v45 = vpop.f32.mrf.mxu0 }
 0x7d7   : > { %v7199_v60 = vpop.f32.mrf.mxu1 }
 0x7d8   : > { %13881 = vst [vmem:[#allocation49_spill] sm:$0xff] %v13388_v8  ;;  %v13393_v25 = vadd.f32 %v7199_v60, %v13882_v23  ;;  %v10583_v23 = vpop.f32.mrf.mxu0 }
 0x7d9   : > { %v7201_v29 = vpop.f32.mrf.mxu1 }
 0x7da   : > { %13883 = vst [vmem:[#allocation47_spill] sm:$0xff] %v13393_v25  ;;  %v13396_v59 = vadd.f32 %v7201_v29, %v13884_v36 }
 0x7db   : > { %v7205_v22 = vpop.f32.mrf.mxu1 }
 0x7dc   : > { %13885 = vst [vmem:[#allocation11_spill] sm:$0xff] %v13396_v59  ;;  %v13401_v16 = vadd.f32 %v7205_v22, %v13886_v2  ;;  %v7680_v22 = vpop.f32.mrf.mxu0 }
 0x7dd   : > { %v7207_v21 = vpop.f32.mrf.mxu1 }
 0x7de   : > { %13887 = vst [vmem:[#allocation12_spill] sm:$0xff] %v13401_v16  ;;  %v13404_v56 = vadd.f32 %v7207_v21, %v13888_v49  ;;  %v10586_v49 = vpop.f32.mrf.mxu0 }
 0x7df   : > { %v7209_v12 = vpop.f32.mrf.mxu1 }
 0x7e0   : > { %13889 = vst [vmem:[#allocation13_spill] sm:$0xff] %v13404_v56  ;;  %v13407_v52 = vadd.f32 %v7209_v12, %v13890_v39 }
 0x7e1   : > { %v7211_v48 = vpop.f32.mrf.mxu1 }
 0x7e2   : > { %13891 = vst [vmem:[#allocation14_spill] sm:$0xff] %v13407_v52  ;;  %v13410_v57 = vadd.f32 %v7211_v48, %v13892_v17 }
 0x7e3   : > { %v10546_v42 = vpop.f32.mrf.mxu1 }
 0x7e4   : > { %13893 = vst [vmem:[#allocation22_spill] sm:$0xff] %v13410_v57  ;;  %v7693_v57 = vpop.f32.mrf.mxu0 }
 0x7e5   : > { %v7442_v62 = vpop.f32.mrf.mxu1 }
 0x7e6   : > { %v7678_v12 = vadd.f32 %v7677_v45, %v7442_v62  ;;  %v10587_v62 = vpop.f32.mrf.mxu0  ;;  %v7686_v45 = vadd.f32 %v10582_v14, %v10546_v42  ;;  %v11023_v14 = vld [vmem:[%s13712_s3 + $0x8] sm:$0xff]  }
 0x7e7   : > { %v10547_v0 = vpop.f32.mrf.mxu1 }
 0x7e8   : > { %v7708_v52 = vadd.f32 %v7678_v12, %v7539_v6  ;;  %v7689_v8 = vadd.f32 %v10583_v23, %v10547_v0 }
 0x7e9   : > { %v7445_v40 = vpop.f32.mrf.mxu1 }
 0x7ea   : > { %v7681_v56 = vadd.f32 %v7680_v22, %v7445_v40 }
 0x7eb   : > { %v13412_v60 = vpop.f32.mrf.mxu1 }
 0x7ec   : > { %v7709_v54 = vadd.f32 %v7681_v56, %v7542_v30 }
 0x7ed   : > { %v7458_v29 = vpop.f32.mrf.mxu1 }
 0x7ef   : > { %v10551_v36 = vpop.f32.mrf.mxu1 }
 0x7f1   : > { %v7461_v2 = vpop.f32.mrf.mxu1 }
 0x7f3   : > { %v10570_v21 = vpop.f32.mrf.mxu1 }
 0x7f4   : > { %v7613_v32 = vadd.f32 %v10570_v21, %v13321_v18  ;;  %v7702_v21 = vadd.f32 %v10586_v49, %v13412_v60 }
 0x7f5   : > { %v7604_v39 = vpop.f32.mrf.mxu1 }
 0x7f6   : > { %v7605_v48 = vadd.f32 %v7604_v39, %v13324_v19 }
 0x7f7   : > { %v10571_v17 = vpop.f32.mrf.mxu1 }
 0x7f8   : > { %v7635_v16 = vadd.f32 %v7605_v48, %v13340_v26  ;;  %v7616_v59 = vadd.f32 %v10571_v17, %v13326_v33  ;;  %v7711_v26 = vadd.f32 %v13368_v37, %v7689_v8  ;;  %v7637_v33 = vadd.f32 %v13338_v46, %v7613_v32 }
 0x7f9   : > { %v7607_v25 = vpop.f32.mrf.mxu1  ;;  %v7694_v46 = vadd.f32 %v7693_v57, %v7458_v29 }
 0x7fa   : > { %v7716_v43 = vmax.f32 %v7635_v16, %v7708_v52  ;;  %v7608_v15 = vadd.f32 %v7607_v25, %v13328_v1  ;;  %v7638_v19 = vadd.f32 %v13342_v55, %v7616_v59  ;;  %v7696_v16 = vpop.f32.mrf.mxu0  ;;  %v7710_v1 = vadd.f32 %v13354_v44, %v7686_v45 }
 0x7fb   : > { %v10574_v4 = vpop.f32.mrf.mxu1  ;;  %v7697_v30 = vadd.f32 %v7696_v16, %v7461_v2  ;;  %v10963_v16 = vld [vmem:[%s13716_s7 + $0x68] sm:$0xff]  }
 0x7fc   : > { %v7636_v6 = vadd.f32 %v7608_v15, %v13344_v35  ;;  %v7724_v0 = vadd.f32 %v13232_v24, %v7716_v43  ;;  %v7719_v25 = vmax.f32 %v7638_v19, %v7711_v26  ;;  %v7718_v55 = vmax.f32 %v7637_v33, %v7710_v1  ;;  %v10956_v26 = vld [vmem:[%s13714_s5 + $0x1c0] ss:$8 sps:$4 sm:$0xff]   ;;  %v10959_v33 = vld [vmem:[%s13716_s7 + $0x78] sm:$0xff]  }
 0x7fd   : > { %v7620_v40 = vpop.f32.mrf.mxu1  ;;  %v7713_v8 = vadd.f32 %v7697_v30, %v7558_v58  ;;  %v11024_v58 = vld [vmem:[%s13712_s3] sm:$0xff]   ;;  %v7629_v22 = vadd.f32 %v10574_v4, %v13330_v31  ;;  %v7714_v31 = vadd.f32 %v13382_v61, %v7702_v21  ;;  %v10949_v61 = vld [vmem:[%s13714_s5 + $0x1f4] ss:$8 sps:$4 sm:$0xff]   ;;  %v10964_v1 = vld [vmem:[%s13716_s7 + $0x28] sm:$0xff]   ;;  %v10594_v30 = vpop.f32.mrf.mxu0 }
 0x7fe   : > { %v7717_v23 = vmax.f32 %v7636_v6, %v7709_v54  ;;  %v7732_v59 = vmax.f32 %v7724_v0, 0.0  ;;  %v7621_v15 = vadd.f32 %v7620_v40, %v13332_v41  ;;  %v7727_v43 = vadd.f32 %v13232_v24, %v7719_v25  ;;  %v10947_v6 = vld [vmem:[%s13714_s5 + $0x1f0] ss:$8 sps:$4 sm:$0xff]   ;;  %8184 = vmatprep.subr.bf16.mxu0 %v10949_v61  ;;  %v10958_v40 = vld [vmem:[%s13714_s5 + $0x1c4] ss:$8 sps:$4 sm:$0xff]  }
 0x7ff   : > { %v10575_v18 = vpop.f32.mrf.mxu1  ;;  %v7726_v44 = vadd.f32 %v13232_v24, %v7718_v55  ;;  %v7712_v41 = vadd.f32 %v7694_v46, %v13390_v11  ;;  %v7641_v48 = vadd.f32 %v13346_v34, %v7629_v22  ;;  %8185 = vmatpush1.bf16.msra.mxu0 %v10947_v6  ;;  %v10960_v0 = vld [vmem:[%s13716_s7 + $0x38] sm:$0xff]   ;;  %v10965_v25 = vld [vmem:[%s13716_s7 + $0x60] sm:$0xff]   ;;  %v13897_v22 = vld [vmem:[#allocation41_spill] sm:$0xff] }
 0x800   : > { %v7725_v52 = vadd.f32 %v13232_v24, %v7717_v23  ;;  %v7639_v42 = vadd.f32 %v7621_v15, %v13348_v51  ;;  %v7632_v57 = vadd.f32 %v10575_v18, %v13334_v38  ;;  %v7705_v51 = vadd.f32 %v10587_v62, %v10551_v36  ;;  %v10961_v23 = vld [vmem:[%s13716_s7 + $0x70] sm:$0xff]   ;;  %v13898_v21 = vld [vmem:[#allocation39_spill] sm:$0xff] }
 0x801   : > { %v7623_v56 = vpop.f32.mrf.mxu1  ;;  %v7734_v29 = vmax.f32 %v7726_v44, 0.0  ;;  %v7722_v60 = vmax.f32 %v7641_v48, %v7714_v31  ;;  %v10962_v18 = vld [vmem:[%s13716_s7 + $0x30] sm:$0xff]   ;;  %v13900_v31 = vld [vmem:[#allocation47_spill] sm:$0xff] }
 0x802   : > { %v7733_v35 = vmax.f32 %v7725_v52, 0.0  ;;  %v7624_v37 = vadd.f32 %v7623_v56, %v13336_v53  ;;  %v7735_v53 = vmax.f32 %v7727_v43, 0.0  ;;  %v7720_v2 = vmax.f32 %v7639_v42, %v7712_v41  ;;  %v10966_v52 = vld [vmem:[%s13716_s7 + $0x20] sm:$0xff]   ;;  %v7927_v56 = vpop.f32.mrf.mxu0  ;;  %v13903_v61 = vld [vmem:[#allocation13_spill] sm:$0xff] }
 0x803   : > { %v7642_v11 = vadd.f32 %v13350_v13, %v7632_v57  ;;  %v7715_v38 = vadd.f32 %v13398_v3, %v7705_v51  ;;  %v7730_v45 = vadd.f32 %v13232_v24, %v7722_v60  ;;  %v13895_v57 = vld [vmem:[#allocation50_spill] sm:$0xff] }
 0x804   : > { %v7740_v54 = vpack.c.bf16 %v7733_v35, %v7732_v59  ;;  %v7640_v32 = vadd.f32 %v7624_v37, %v13352_v63  ;;  %v7741_v12 = vpack.c.bf16 %v7735_v53, %v7734_v29  ;;  %v7728_v17 = vadd.f32 %v13232_v24, %v7720_v2  ;;  %v10595_v55 = vpop.f32.mrf.mxu0 }
 0x805   : > { %v7723_v4 = vmax.f32 %v7642_v11, %v7715_v38  ;;  %v7738_v3 = vmax.f32 %v7730_v45, 0.0  ;;  %v13899_v38 = vld [vmem:[#allocation49_spill] sm:$0xff]  ;;  %v13902_v45 = vld [vmem:[#allocation12_spill] sm:$0xff] }
 0x806   : > { %9257 = vmatmul.mubr.msk.bf16.vlgmr.msra.gmra.mxu1 %vm4367_vm4, %v7740_v54  ;;  %v7721_v63 = vmax.f32 %v7640_v32, %v7713_v8  ;;  %v7736_v49 = vmax.f32 %v7728_v17, 0.0  ;;  %v7930_v15 = vpop.f32.mrf.mxu0 }
 0x807   : > { %10613 = vmatpush3.bf16.msra.mxu1 %v11023_v14  ;;  %7846 = vmatprep.mubr.bf16.mxu1 %v13778_v28  ;;  %v7731_v13 = vadd.f32 %v13232_v24, %v7723_v4  ;;  %v13894_v14 = vld [vmem:[#allocation42_spill] sm:$0xff] }
 0x808   : > { %10614 = vmatprep.subr.bf16.mxu1 %v11024_v58  ;;  %v7729_v39 = vadd.f32 %v13232_v24, %v7721_v63  ;;  %v13522_v32 = vpop.f32.mrf.mxu0 }
 0x809   : > { %v7739_v34 = vmax.f32 %v7731_v13, 0.0 }
 0x80a   : > { %v7737_v36 = vmax.f32 %v7729_v39, 0.0 }
 0x80b   : > { %10615 = vmatpush3.bf16.msra.mxu1 %v11024_v58  ;;  %v7743_v19 = vpack.c.bf16 %v7739_v34, %v7738_v3  ;;  %v13896_v58 = vld [vmem:[#allocation48_spill] sm:$0xff] }
 0x80c   : > { %v7742_v62 = vpack.c.bf16 %v7737_v36, %v7736_v49  ;;  %9808 = vmatprep.subr.bf16.mxu1 %v10959_v33  ;;  %v13901_v49 = vld [vmem:[#allocation11_spill] sm:$0xff] }
 0x80e   : > { %9258 = vmatmul.mubr.msk.bf16.gmra.mxu1 %vm4367_vm4, %v7741_v12 }
 0x80f   : > { %7856 = vmatprep.mubr.bf16.mxu1 %v13778_v28 }
 0x816   : > { %9259 = vmatmul.mubr.msk.bf16.gmra.mxu1 %vm4367_vm4, %v7742_v62 }
 0x817   : > { %7866 = vmatprep.mubr.bf16.mxu1 %v13778_v28 }
 0x81e   : > { %9260 = vmatmul.mubr.msk.bf16.gmra.mxu1 %vm4367_vm4, %v7743_v19 }
 0x81f   : > { %10616 = vmatprep.mubr.msk.bf16.mxu1 %vm3499_vm3, %v13269_v20  ;;  %v10952_v20 = vld [vmem:[%s13714_s5 + $0x1e4] ss:$8 sps:$4 sm:$0xff]  }
 0x820   : > { %8186 = vmatprep.subr.bf16.mxu0 %v10952_v20 }
 0x826   : > { %10617 = vmatmul.mubr.msk.bf16.vlgmr.msra.gmra.mxu1 %vm3499_vm3, %v13273_v50  ;;  %v10950_v50 = vld [vmem:[%s13714_s5 + $0x1e0] ss:$8 sps:$4 sm:$0xff]  }
 0x827   : > { %10620 = vmatprep.mubr.msk.bf16.mxu1 %vm3499_vm3, %v13277_v10  ;;  %8187 = vmatpush1.bf16.msra.mxu0 %v10950_v50  ;;  %v10955_v10 = vld [vmem:[%s13714_s5 + $0x1d4] ss:$8 sps:$4 sm:$0xff]  }
 0x828   : > { %8188 = vmatprep.subr.bf16.mxu0 %v10955_v10  ;;  %9809 = vmatpush3.bf16.msra.mxu1 %v10960_v0  ;;  %v13904_v50 = vld [vmem:[#allocation14_spill] sm:$0xff] }
 0x829   : > { %9810 = vmatprep.subr.bf16.mxu1 %v10961_v23 }
 0x82c   : > { %9811 = vmatpush3.bf16.msra.mxu1 %v10962_v18 }
 0x82d   : > { %9812 = vmatprep.subr.bf16.mxu1 %v10963_v16 }
 0x82e   : > { %10621 = vmatmul.mubr.msk.bf16.gmra.mxu1 %vm3499_vm3, %v13284_v9  ;;  %v10953_v9 = vld [vmem:[%s13714_s5 + $0x1d0] ss:$8 sps:$4 sm:$0xff]  }
 0x82f   : > { %8189 = vmatpush1.bf16.msra.mxu0 %v10953_v9 }
 0x830   : > { %8190 = vmatprep.subr.bf16.mxu0 %v10958_v40  ;;  %9813 = vmatpush3.bf16.msra.mxu1 %v10964_v1 }
 0x831   : > { %9814 = vmatprep.subr.bf16.mxu1 %v10965_v25 }
 0x833   : > { %8191 = vmatpush1.bf16.msra.mxu0 %v10956_v26  ;;  %v13905_v26 = vld [vmem:[#allocation22_spill] sm:$0xff] }
 0x834   : > { %9815 = vmatpush3.bf16.msra.mxu1 %v10966_v52 }
 0x8c6   : > { %v7838_v59 = vpop.f32.mrf.mxu1 }
 0x8c7   : > { %v13514_v35 = vadd.f32 %v7838_v59, %v13357_v47  ;;  %v7943_v47 = vpop.f32.mrf.mxu0 }
 0x8c8   : > { %v7840_v37 = vpop.f32.mrf.mxu1 }
 0x8c9   : > { %v13517_v46 = vadd.f32 %v7840_v37, %v13360_v27 }
 0x8ca   : > { %v7842_v43 = vpop.f32.mrf.mxu1 }
 0x8cb   : > { %v13520_v54 = vadd.f32 %v7842_v43, %v13363_v7  ;;  %v10599_v7 = vpop.f32.mrf.mxu0 }
 0x8cc   : > { %v7844_v8 = vpop.f32.mrf.mxu1 }
 0x8cd   : > { %v13525_v44 = vadd.f32 %v7844_v8, %v13366_v5  ;;  %v7946_v11 = vpop.f32.mrf.mxu0 }
 0x8ce   : > { %v7848_v42 = vpop.f32.mrf.mxu1 }
 0x8cf   : > { %v13528_v41 = vadd.f32 %v7848_v42, %v13894_v14  ;;  %v10606_v36 = vpop.f32.mrf.mxu0 }
 0x8d0   : > { %v7850_v53 = vpop.f32.mrf.mxu1 }
 0x8d1   : > { %v13531_v63 = vadd.f32 %v7850_v53, %v13895_v57  ;;  %v7992_v3 = vpop.f32.mrf.mxu0 }
 0x8d2   : > { %v7852_v27 = vpop.f32.mrf.mxu1 }
 0x8d3   : > { %v13534_v51 = vadd.f32 %v7852_v27, %v13896_v58  ;;  %v10607_v9 = vpop.f32.mrf.mxu0 }
 0x8d4   : > { %v7854_v29 = vpop.f32.mrf.mxu1 }
 0x8d5   : > { %v13537_v2 = vadd.f32 %v7854_v29, %v13897_v22  ;;  %v7995_v23 = vpop.f32.mrf.mxu0 }
 0x8d6   : > { %v7858_v5 = vpop.f32.mrf.mxu1 }
 0x8d7   : > { %v13540_v12 = vadd.f32 %v7858_v5, %v13898_v21  ;;  %v10610_v52 = vpop.f32.mrf.mxu0 }
 0x8d8   : > { %v7860_v39 = vpop.f32.mrf.mxu1 }
 0x8d9   : > { %v13543_v48 = vadd.f32 %v7860_v39, %v13899_v38  ;;  %v8008_v57 = vpop.f32.mrf.mxu0 }
 0x8da   : > { %v7862_v17 = vpop.f32.mrf.mxu1 }
 0x8db   : > { %v13546_v4 = vadd.f32 %v7862_v17, %v13900_v31  ;;  %v10611_v39 = vpop.f32.mrf.mxu0 }
 0x8dc   : > { %v7864_v60 = vpop.f32.mrf.mxu1 }
 0x8dd   : > { %v13549_v13 = vadd.f32 %v7864_v60, %v13901_v49  ;;  %v8011_v60 = vpop.f32.mrf.mxu0 }
 0x8de   : > { %v7868_v62 = vpop.f32.mrf.mxu1 }
 0x8df   : > { %v13552_v34 = vadd.f32 %v7868_v62, %v13902_v45 }
 0x8e0   : > { %v7870_v19 = vpop.f32.mrf.mxu1 }
 0x8e1   : > { %v13555_v6 = vadd.f32 %v7870_v19, %v13903_v61 }
 0x8e2   : > { %v7872_v20 = vpop.f32.mrf.mxu1 }
 0x8e3   : > { %v13558_v10 = vadd.f32 %v7872_v20, %v13904_v50 }
 0x8e4   : > { %v7874_v40 = vpop.f32.mrf.mxu1 }
 0x8e5   : > { %v13561_v33 = vadd.f32 %v7874_v40, %v13905_v26 }
 0x8e6   : > { %v10618_v0 = vpop.f32.mrf.mxu1 }
 0x8e7   : > { %v8066_v42 = vadd.f32 %v10618_v0, %v10594_v30 }
 0x8e8   : > { %v8057_v18 = vpop.f32.mrf.mxu1 }
 0x8e9   : > { %v8058_v16 = vadd.f32 %v8057_v18, %v7927_v56  ;;  %v8090_v5 = vmax.f32 %v8066_v42, %v10606_v36 }
 0x8ea   : > { %v10619_v1 = vpop.f32.mrf.mxu1 }
 0x8eb   : > { %v8088_v25 = vmax.f32 %v8058_v16, %v7992_v3  ;;  %v8069_v37 = vadd.f32 %v10619_v1, %v10595_v55  ;;  %v8098_v30 = vadd.f32 %v13232_v24, %v8090_v5  ;;  %v10967_v16 = vld [vmem:[%s13716_s7 + $0x58] sm:$0xff]  }
 0x8ec   : > { %v8060_v59 = vpop.f32.mrf.mxu1  ;;  %v10968_v1 = vld [vmem:[%s13716_s7 + $0x18] sm:$0xff]   ;;  %9816 = vmatprep.subr.bf16.mxu1 %v10967_v16 }
 0x8ed   : > { %v8061_v43 = vadd.f32 %v8060_v59, %v7930_v15  ;;  %v8096_v14 = vadd.f32 %v13232_v24, %v8088_v25  ;;  %v8091_v58 = vmax.f32 %v8069_v37, %v10607_v9  ;;  %v8106_v45 = vmax.f32 %v8098_v30, 0.0  ;;  %9817 = vmatpush3.bf16.msra.mxu1 %v10968_v1  ;;  %v10971_v25 = vld [vmem:[%s13716_s7 + $0x48] sm:$0xff]   ;;  %v10973_v59 = vld [vmem:[%s13716_s7 + $0x40] sm:$0xff]  }
 0x8ee   : > { %v10622_v8 = vpop.f32.mrf.mxu1  ;;  %v10974_v37 = vld [vmem:[%s13716_s7] sm:$0xff]  }
 0x8ef   : > { %v8089_v53 = vmax.f32 %v8061_v43, %v7995_v23  ;;  %v8104_v21 = vmax.f32 %v8096_v14, 0.0  ;;  %v8099_v17 = vadd.f32 %v13232_v24, %v8091_v58  ;;  %v8082_v20 = vadd.f32 %v10622_v8, %v13522_v32  ;;  %v8265_v14 = vld [vmem:[%s13715_s6] sm:$0x3] }
 0x8f0   : > { %v8073_v27 = vpop.f32.mrf.mxu1  ;;  %v8267_v43 = vlaneseq }
 0x8f1   : > { %v8097_v29 = vadd.f32 %v13232_v24, %v8089_v53  ;;  %v8074_v31 = vadd.f32 %v8073_v27, %v7943_v47  ;;  %v8107_v49 = vmax.f32 %v8099_v17, 0.0  ;;  %v8094_v9 = vmax.f32 %v8082_v20, %v10610_v52  ;;  %v10972_v52 = vld [vmem:[%s13716_s7 + $0x8] sm:$0xff]  }
 0x8f2   : > { %v10623_v22 = vpop.f32.mrf.mxu1  ;;  %v8268_v8 = vshrl.u32 %v8267_v43, 7 }
 0x8f3   : > { %v8105_v56 = vmax.f32 %v8097_v29, 0.0  ;;  %v8092_v36 = vmax.f32 %v8074_v31, %v8008_v57  ;;  %v8113_v3 = vpack.c.bf16 %v8107_v49, %v8106_v45  ;;  %v8085_v19 = vadd.f32 %v10623_v22, %v10599_v7 }
 0x8f4   : > { %v8076_v38 = vpop.f32.mrf.mxu1  ;;  %v8102_v23 = vadd.f32 %v13232_v24, %v8094_v9  ;;  %v8269_v42 = vsub.s32 0, %v8268_v8  ;;  %v8273_v53 = vsub.s32 1, %v8268_v8 }
 0x8f5   : > { %v8112_v55 = vpack.c.bf16 %v8105_v56, %v8104_v21  ;;  %v8077_v15 = vadd.f32 %v8076_v38, %v7946_v11  ;;  %v8100_v11 = vadd.f32 %v13232_v24, %v8092_v36  ;;  %v8095_v47 = vmax.f32 %v8085_v19, %v10611_v39 }
 0x8f6   : > { %v8110_v7 = vmax.f32 %v8102_v23, 0.0  ;;  %v13607_v58 = vrot.slane %v8265_v14, %v8269_v42  ;;  %v13610_v5 = vrot.slane %v8265_v14, %v8273_v53 }
 0x8f7   : > { %9281 = vmatmul.mubr.msk.bf16.vlgmr.msra.gmra.mxu0 %vm4367_vm4, %v8112_v55  ;;  %v8093_v62 = vmax.f32 %v8077_v15, %v8011_v60  ;;  %v8108_v40 = vmax.f32 %v8100_v11, 0.0  ;;  %v8103_v26 = vadd.f32 %v13232_v24, %v8095_v47 }
 0x8f8   : > { %8218 = vmatprep.mubr.bf16.mxu0 %v13778_v28 }
 0x8f9   : > { %v8101_v61 = vadd.f32 %v13232_v24, %v8093_v62  ;;  %v8111_v32 = vmax.f32 %v8103_v26, 0.0  ;;  %v10969_v24 = vld [vmem:[%s13716_s7 + $0x50] sm:$0xff]  }
 0x8fa   : > { %9818 = vmatprep.subr.bf16.mxu1 %v10969_v24 }
 0x8fb   : > { %v8109_v50 = vmax.f32 %v8101_v61, 0.0  ;;  %v8115_v18 = vpack.c.bf16 %v8111_v32, %v8110_v7 }
 0x8fd   : > { %v8114_v0 = vpack.c.bf16 %v8109_v50, %v8108_v40 }
 0x8ff   : > { %9282 = vmatmul.mubr.msk.bf16.gmra.mxu0 %vm4367_vm4, %v8113_v3 }
 0x900   : > { %8228 = vmatprep.mubr.bf16.mxu0 %v13778_v28 }
 0x907   : > { %9283 = vmatmul.mubr.msk.bf16.gmra.mxu0 %vm4367_vm4, %v8114_v0 }
 0x908   : > { %8238 = vmatprep.mubr.bf16.mxu0 %v13778_v28  ;;  %v10970_v28 = vld [vmem:[%s13716_s7 + $0x10] sm:$0xff]  }
 0x909   : > { %9819 = vmatpush3.bf16.msra.mxu1 %v10970_v28 }
 0x90a   : > { %9820 = vmatprep.subr.bf16.mxu1 %v10971_v25 }
 0x90d   : > { %9821 = vmatpush3.bf16.msra.mxu1 %v10972_v52 }
 0x90e   : > { %9822 = vmatprep.subr.bf16.mxu1 %v10973_v59 }
 0x90f   : > { %9284 = vmatmul.mubr.msk.bf16.gmra.mxu0 %vm4367_vm4, %v8115_v18 }
 0x911   : > { %9823 = vmatpush3.bf16.msra.mxu1 %v10974_v37 }
 0x9b7   : > { %v8210_v57 = vpop.f32.mrf.mxu0 }
 0x9b8   : > { %v8249_v27 = vadd.f32 %v8210_v57, %v13514_v35 }
 0x9b9   : > { %v8212_v29 = vpop.f32.mrf.mxu0 }
 0x9ba   : > { %v8250_v22 = vadd.f32 %v8212_v29, %v13517_v46  ;;  %v8277_v56 = vadd.f32 %v13607_v58, %v8249_v27 }
 0x9bb   : > { %v8214_v21 = vpop.f32.mrf.mxu0 }
 0x9bc   : > { %v8251_v39 = vadd.f32 %v8214_v21, %v13520_v54  ;;  %v8278_v17 = vadd.f32 %v13610_v5, %v8250_v22  ;;  %v8293_v30 = vmax.f32 %v8277_v56, 0.0 }
 0x9bd   : > { %v8216_v38 = vpop.f32.mrf.mxu0 }
 0x9be   : > { %v8279_v55 = vadd.f32 %v13607_v58, %v8251_v39  ;;  %v8252_v15 = vadd.f32 %v8216_v38, %v13525_v44  ;;  %v8294_v62 = vmax.f32 %v8278_v17, 0.0 }
 0x9bf   : > { %v8220_v35 = vpop.f32.mrf.mxu0 }
 0x9c0   : > { %v8295_v31 = vmax.f32 %v8279_v55, 0.0  ;;  %v8280_v60 = vadd.f32 %v13610_v5, %v8252_v15  ;;  %v8253_v46 = vadd.f32 %v8220_v35, %v13528_v41 }
 0x9c1   : > { %v8222_v49 = vpop.f32.mrf.mxu0 }
 0x9c2   : > { %v8309_v45 = vpack.c.bf16 %v8295_v31, %v8293_v30  ;;  %v8296_v36 = vmax.f32 %v8280_v60, 0.0  ;;  %v8254_v54 = vadd.f32 %v8222_v49, %v13531_v63  ;;  %v8281_v19 = vadd.f32 %v13607_v58, %v8253_v46 }
 0x9c3   : > { %v8224_v3 = vpop.f32.mrf.mxu0 }
 0x9c4   : > { %v8255_v61 = vadd.f32 %v8224_v3, %v13534_v51  ;;  %v8310_v20 = vpack.c.bf16 %v8296_v36, %v8294_v62  ;;  %v8282_v11 = vadd.f32 %v13610_v5, %v8254_v54  ;;  %v8297_v9 = vmax.f32 %v8281_v19, 0.0 }
 0x9c5   : > { %v8226_v44 = vpop.f32.mrf.mxu0 }
 0x9c6   : > { %v8283_v47 = vadd.f32 %v13607_v58, %v8255_v61  ;;  %v8256_v50 = vadd.f32 %v8226_v44, %v13537_v2  ;;  %8484 = vmatprep.mubr.bf16.mxu1 %v8310_v20  ;;  %v8298_v23 = vmax.f32 %v8282_v11, 0.0 }
 0x9c7   : > { %v8230_v41 = vpop.f32.mrf.mxu0  ;;  %8485 = vmatmul.mubr.bf16.vlgmr.msra.gmra.mxu1 %v8309_v45 }
 0x9c8   : > { %v8299_v40 = vmax.f32 %v8283_v47, 0.0  ;;  %v8284_v63 = vadd.f32 %v13610_v5, %v8256_v50  ;;  %v8257_v26 = vadd.f32 %v8230_v41, %v13540_v12 }
 0x9c9   : > { %v8232_v0 = vpop.f32.mrf.mxu0 }
 0x9ca   : > { %v8311_v51 = vpack.c.bf16 %v8299_v40, %v8297_v9  ;;  %v8300_v32 = vmax.f32 %v8284_v63, 0.0  ;;  %v8258_v7 = vadd.f32 %v8232_v0, %v13543_v48  ;;  %v8285_v16 = vadd.f32 %v13607_v58, %v8257_v26 }
 0x9cb   : > { %v8234_v18 = vpop.f32.mrf.mxu0 }
 0x9cc   : > { %v8259_v2 = vadd.f32 %v8234_v18, %v13546_v4  ;;  %v8312_v1 = vpack.c.bf16 %v8300_v32, %v8298_v23  ;;  %v8286_v28 = vadd.f32 %v13610_v5, %v8258_v7  ;;  %v8301_v59 = vmax.f32 %v8285_v16, 0.0 }
 0x9cd   : > { %v8236_v24 = vpop.f32.mrf.mxu0 }
 0x9ce   : > { %v8287_v25 = vadd.f32 %v13607_v58, %v8259_v2  ;;  %v8260_v52 = vadd.f32 %v8236_v24, %v13549_v13  ;;  %8492 = vmatprep.mubr.bf16.mxu1 %v8312_v1  ;;  %v8302_v42 = vmax.f32 %v8286_v28, 0.0 }
 0x9cf   : > { %v8240_v12 = vpop.f32.mrf.mxu0  ;;  %8493 = vmatmul.mubr.bf16.gmra.mxu1 %v8311_v51 }
 0x9d0   : > { %v8303_v37 = vmax.f32 %v8287_v25, 0.0  ;;  %v8288_v48 = vadd.f32 %v13610_v5, %v8260_v52  ;;  %v8261_v43 = vadd.f32 %v8240_v12, %v13552_v34 }
 0x9d1   : > { %v8242_v8 = vpop.f32.mrf.mxu0 }
 0x9d2   : > { %v8313_v4 = vpack.c.bf16 %v8303_v37, %v8301_v59  ;;  %v8304_v14 = vmax.f32 %v8288_v48, 0.0  ;;  %v8262_v53 = vadd.f32 %v8242_v8, %v13555_v6  ;;  %v8289_v27 = vadd.f32 %v13607_v58, %v8261_v43 }
 0x9d3   : > { %v8244_v57 = vpop.f32.mrf.mxu0 }
 0x9d4   : > { %v8263_v13 = vadd.f32 %v8244_v57, %v13558_v10  ;;  %v8314_v29 = vpack.c.bf16 %v8304_v14, %v8302_v42  ;;  %v8290_v21 = vadd.f32 %v13610_v5, %v8262_v53  ;;  %v8305_v39 = vmax.f32 %v8289_v27, 0.0 }
 0x9d5   : > { %v8246_v22 = vpop.f32.mrf.mxu0 }
 0x9d6   : > { %v8291_v56 = vadd.f32 %v13607_v58, %v8263_v13  ;;  %v8264_v34 = vadd.f32 %v8246_v22, %v13561_v33  ;;  %8500 = vmatprep.mubr.bf16.mxu1 %v8314_v29  ;;  %v8306_v17 = vmax.f32 %v8290_v21, 0.0  ;;  %v9285_v33 = vld [vmem:[%s13717_s8] ss:$0 sm:$0xff] }
 0x9d7   : > { %8501 = vmatmul.mubr.bf16.gmra.mxu1 %v8313_v4 }
 0x9d8   : > { %v8307_v38 = vmax.f32 %v8291_v56, 0.0  ;;  %v8292_v6 = vadd.f32 %v13610_v5, %v8264_v34 }
 0x9da   : > { %v8315_v55 = vpack.c.bf16 %v8307_v38, %v8305_v39  ;;  %v8308_v15 = vmax.f32 %v8292_v6, 0.0 }
 0x9dc   : > { %v8316_v10 = vpack.c.bf16 %v8308_v15, %v8306_v17 }
 0x9de   : > { %8508 = vmatprep.mubr.bf16.mxu1 %v8316_v10 }
 0x9df   : > { %8509 = vmatmul.mubr.bf16.gmra.mxu1 %v8315_v55 }
 0xa87   : > { %v9824_v35 = vpop.f32.mrf.mxu1 }
 0xa89   : > { %v9825_v58 = vpop.f32.mrf.mxu1 }
 0xa8a   : > { %v9826_v30 = vadd.f32 %v9825_v58, %v9824_v35 }
 0xa8b   : > { %v9827_v31 = vpop.f32.mrf.mxu1 }
 0xa8c   : > { %v8487_v60 = vadd.f32 %v9826_v30, %v9285_v33 }
 0xa8d   : > { %v9828_v46 = vpop.f32.mrf.mxu1 }
 0xa8e   : > { %8517 = vst [vmem:[%s13648_s14] sm:$0xff] %v8487_v60  ;;  %v9829_v5 = vadd.f32 %v9828_v46, %v9827_v31 }
 0xa8f   : > { %v9830_v49 = vpop.f32.mrf.mxu1 }
 0xa90   : > { %v8490_v62 = vadd.f32 %v9829_v5, %v9285_v33 }
 0xa91   : > { %v9831_v45 = vpop.f32.mrf.mxu1 }
 0xa92   : > { %8518 = vst [vmem:[%s13648_s14 + $0x8] sm:$0xff] %v8490_v62  ;;  %v9832_v36 = vadd.f32 %v9831_v45, %v9830_v49 }
 0xa93   : > { %v9833_v54 = vpop.f32.mrf.mxu1 }
 0xa94   : > { %v8495_v3 = vadd.f32 %v9832_v36, %v9285_v33 }
 0xa95   : > { %v9834_v19 = vpop.f32.mrf.mxu1 }
 0xa96   : > { %8519 = vst [vmem:[%s13648_s14 + $0x10] sm:$0xff] %v8495_v3  ;;  %v9835_v61 = vadd.f32 %v9834_v19, %v9833_v54 }
 0xa97   : > { %v9836_v20 = vpop.f32.mrf.mxu1 }
 0xa98   : > { %v8498_v44 = vadd.f32 %v9835_v61, %v9285_v33 }
 0xa99   : > { %v9837_v11 = vpop.f32.mrf.mxu1 }
 0xa9a   : > { %8520 = vst [vmem:[%s13648_s14 + $0x18] sm:$0xff] %v8498_v44  ;;  %v9838_v47 = vadd.f32 %v9837_v11, %v9836_v20 }
 0xa9b   : > { %v9839_v50 = vpop.f32.mrf.mxu1 }
 0xa9c   : > { %v8503_v41 = vadd.f32 %v9838_v47, %v9285_v33 }
 0xa9d   : > { %v9840_v9 = vpop.f32.mrf.mxu1 }
 0xa9e   : > { %8521 = vst [vmem:[%s13648_s14 + $0x20] sm:$0xff] %v8503_v41  ;;  %v9841_v40 = vadd.f32 %v9840_v9, %v9839_v50 }
 0xa9f   : > { %v9842_v63 = vpop.f32.mrf.mxu1 }
 0xaa0   : > { %v8506_v26 = vadd.f32 %v9841_v40, %v9285_v33 }
 0xaa1   : > { %v9843_v0 = vpop.f32.mrf.mxu1 }
 0xaa2   : > { %8522 = vst [vmem:[%s13648_s14 + $0x28] sm:$0xff] %v8506_v26  ;;  %v9844_v23 = vadd.f32 %v9843_v0, %v9842_v63 }
 0xaa3   : > { %v9845_v51 = vpop.f32.mrf.mxu1 }
 0xaa4   : > { %v8511_v32 = vadd.f32 %v9844_v23, %v9285_v33 }
 0xaa5   : > { %v9846_v7 = vpop.f32.mrf.mxu1 }
 0xaa6   : > { %8523 = vst [vmem:[%s13648_s14 + $0x30] sm:$0xff] %v8511_v32  ;;  %v9847_v18 = vadd.f32 %v9846_v7, %v9845_v51 }
 0xaa8   : > { %v8514_v16 = vadd.f32 %v9847_v18, %v9285_v33 }
 0xaaa   : > { %8524 = vst [vmem:[%s13648_s14 + $0x38] sm:$0xff] %v8514_v16 }
 0xaab   : > { %11038 = shalt.err (!%p11035_p3)
}
 0xaac   : > { %s11039_s26 = scalar_lea.hbm %s13662_s24, 1024  ;;  %s11043_s16 = scalar_lea.hbm %s13718_s9, 2048 }
 0xaad   : > { %p11040_p4 = scmp.ne.s32.totalorder %s13662_s24, %s11039_s26  ;;  %p11044_p9 = scmp.lt.s32.totalorder %s13662_s24, %s13718_s9 }
 0xaae   : > { %p11045_p10 = scmp.lt.s32.totalorder %s11043_s16, %s11039_s26 }
 0xaaf   : > { %p11041_p7 = pnand %p11040_p4, %p11179_p5 }
 0xab0   : > { %p11046_p11 = por %p11045_p10, %p11044_p9 }
 0xab1   : > { %p11042_p8 = pneg %p11041_p7 }
 0xab3   : > { %p11047_p12 = pnand %p11046_p11, %p11042_p8 }
 0xab5   : > { %11050 = shalt.err (!%p11047_p12)
}
 0xab6   : > { %s11089_s13 = smov 128   ;;  %s11090_s25 = smov 8  }
 0xab7   : > { %10641 = dma.vmem_to_hbm [thread:$0]  (%p11179_p5), %s13664_s17, 1024, %s13662_s24, %s13669_s21, %s11089_s13, %s11089_s13, %s11090_s25  }
 0xab8 PF: > { %p10647_p13 = scmp.ge.s32.totalorder %s11085_s12, 2  ;;  %s8554_s27 = sand.u32 1, %s11073_s30  }
 0xab9   : > { %s8555_s28 = scalar_lea.sflag [#allocation5], %s8554_s27 }
 0xaba   : > { %p10644_p0 = pnand %p10647_p13, %p11183_p6 }
 0xabc   : > { %p10645_p1 = pneg %p10644_p0 }
 0xabe   : > { %11068 = dma.done.wait (%p10645_p1), %s8555_s28, 1024  }
 0xabf   : > { %11070 = vsyncadd (%p10645_p1), %s8555_s28, 4294966272  ;;  %p19_p2 = scmp.ge.s32.totalorder %s11166_s15, 4   ;;  %s13906_s30 = smov %s11077_s10 }
 0xac0   : > { %s13907_s10 = smov %s11081_s11  ;;  %s13908_s11 = smov %s11177_s18 }
 0xac1   : > { %s13909_s12 = smov %s11166_s15  ;;  %21 = sbr.rel (!%p19_p2) target bundleno = 3 (0x3), region = 93 }
 0xac6   :  { %8560 = vsyncpa [#allocation5], 1 }
 0xac7   :  { %8562 = vsyncpa [#allocation5 + $0x1], 1 }

</bundles_post_ra>
